<compile_context>
chip_gen: v7x
topology: tpu7x:2x2x1
jax: 0.10.0
libtpu: 0.0.40
codegen_flags: <defaults>
</compile_context>

<pallas_src>
import functools

import jax
import jax.numpy as jnp
from jax.experimental import pallas as pl
from jax.experimental.pallas import tpu as pltpu

# ---- small BERT config (consistent with BertForSequenceClassification) ----
VOCAB = 100
HIDDEN = 32
N_LAYERS = 2
N_HEADS = 4
HEAD_DIM = HIDDEN // N_HEADS
INTERMEDIATE = 64
MAX_POS = 16
TYPE_VOCAB = 2
NUM_LABELS = 1
LN_EPS = 1e-12

BATCH = 2
SEQ = 8


# ----------------------------- in-kernel helpers ----------------------------

def _layer_norm(x, g, b):
    mu = jnp.mean(x, axis=-1, keepdims=True)
    var = jnp.mean(jnp.square(x - mu), axis=-1, keepdims=True)
    return (x - mu) * jax.lax.rsqrt(var + LN_EPS) * g + b


def _gelu(x):
    # TODO(synk): HF BERT uses exact erf-gelu; tanh approximation used here.
    return 0.5 * x * (1.0 + jnp.tanh(0.7978845608028654 * (x + 0.044715 * x * x * x)))


# ----------------------------- fused BERT kernel ----------------------------

def _bert_fused_kernel(h_ref, mask_ref,
                       emb_ln_g_ref, emb_ln_b_ref,
                       qkv_w_ref, qkv_b_ref,
                       ao_w_ref, ao_b_ref,
                       a_ln_g_ref, a_ln_b_ref,
                       in_w_ref, in_b_ref,
                       fo_w_ref, fo_b_ref,
                       o_ln_g_ref, o_ln_b_ref,
                       pool_w_ref, pool_b_ref,
                       cls_w_ref, cls_b_ref,
                       logits_ref, *, batch, seq):
    scale = 1.0 / (HEAD_DIM ** 0.5)

    # Embedding LayerNorm (pure LN — no pointless zero-residual add).
    h = _layer_norm(h_ref[...], emb_ln_g_ref[...], emb_ln_b_ref[...])
    mask = mask_ref[...]                                     # [B, S] additive (HF -10000 style)

    # Encoder layers — static Python unroll over N_LAYERS (= 2); every weight
    # stays resident in VMEM and every activation lives in vregs.
    for l in range(N_LAYERS):
        # Fused QKV projection: one [B*S, H] x [H, 3H] matmul instead of 3 launches.
        qkv = jnp.dot(h, qkv_w_ref[l], preferred_element_type=jnp.float32) + qkv_b_ref[l]
        q = qkv[:, 0 * HIDDEN:1 * HIDDEN]
        k = qkv[:, 1 * HIDDEN:2 * HIDDEN]
        v = qkv[:, 2 * HIDDEN:3 * HIDDEN]

        # Multi-head self-attention, fully unrolled over (batch, head);
        # head split / merge are in-kernel static slices / concats.
        ctx_batches = []
        for b in range(batch):
            r0, r1 = b * seq, (b + 1) * seq
            mask_b = mask[b:b + 1, :]                        # [1, S] -> broadcast over queries
            ctx_heads = []
            for hd in range(N_HEADS):
                c0, c1 = hd * HEAD_DIM, (hd + 1) * HEAD_DIM
                qh = q[r0:r1, c0:c1]                         # [S, dh]
                kh = k[r0:r1, c0:c1]                         # [S, dh]
                vh = v[r0:r1, c0:c1]                         # [S, dh]
                s = jax.lax.dot_general(qh, kh, (((1,), (1,)), ((), ())),
                                        preferred_element_type=jnp.float32) * scale
                s = s + mask_b
                s = s - jnp.max(s, axis=-1, keepdims=True)
                p = jnp.exp(s)
                p = p / jnp.sum(p, axis=-1, keepdims=True)
                ctx_heads.append(jnp.dot(p, vh, preferred_element_type=jnp.float32))
            ctx_batches.append(jnp.concatenate(ctx_heads, axis=-1))     # [S, H]
        ctx = jnp.concatenate(ctx_batches, axis=0)                      # [B*S, H]

        attn_out = jnp.dot(ctx, ao_w_ref[l], preferred_element_type=jnp.float32) + ao_b_ref[l]
        h = _layer_norm(attn_out + h, a_ln_g_ref[l], a_ln_b_ref[l])

        inter = jnp.dot(h, in_w_ref[l], preferred_element_type=jnp.float32) + in_b_ref[l]
        inter = _gelu(inter)
        ffn_out = jnp.dot(inter, fo_w_ref[l], preferred_element_type=jnp.float32) + fo_b_ref[l]
        h = _layer_norm(ffn_out + h, o_ln_g_ref[l], o_ln_b_ref[l])

    # Pooler on the [CLS] token of each sequence, then classifier head.
    cls_rows = jnp.concatenate([h[b * seq:b * seq + 1, :] for b in range(batch)], axis=0)
    pooled = jnp.tanh(jnp.dot(cls_rows, pool_w_ref[...], preferred_element_type=jnp.float32)
                      + pool_b_ref[...])
    logits_ref[...] = (jnp.dot(pooled, cls_w_ref[...], preferred_element_type=jnp.float32)
                       + cls_b_ref[...])


def _cost_estimate(b, s):
    m = b * s
    per_layer = (2 * m * HIDDEN * 3 * HIDDEN                       # fused QKV
                 + 2 * 2 * b * N_HEADS * s * s * HEAD_DIM          # scores + ctx
                 + 2 * m * HIDDEN * HIDDEN                         # attn out proj
                 + 2 * 2 * m * HIDDEN * INTERMEDIATE)              # FFN in/out
    flops = N_LAYERS * per_layer + 2 * b * HIDDEN * HIDDEN + 2 * b * HIDDEN * NUM_LABELS
    transcendentals = N_LAYERS * (b * N_HEADS * s * s + m * INTERMEDIATE) + b * HIDDEN
    param_elems = N_LAYERS * (HIDDEN * 3 * HIDDEN + 3 * HIDDEN
                              + HIDDEN * HIDDEN + HIDDEN
                              + 2 * HIDDEN * INTERMEDIATE + INTERMEDIATE + HIDDEN
                              + 4 * HIDDEN)
    param_elems += HIDDEN * HIDDEN + HIDDEN + HIDDEN * NUM_LABELS + NUM_LABELS + 2 * HIDDEN
    bytes_accessed = 4 * (m * HIDDEN + b * s + param_elems + b * NUM_LABELS)
    return pl.CostEstimate(flops=flops, transcendentals=transcendentals,
                           bytes_accessed=bytes_accessed)


# ------------------------- parameter initialization -------------------------

def _xavier_uniform(key, fan_in, fan_out, shape):
    limit = (6.0 / (fan_in + fan_out)) ** 0.5
    return jax.random.uniform(key, shape, jnp.float32, -limit, limit)


def init_params(key):
    keys = iter(jax.random.split(key, 128))

    def lin(in_dim, out_dim):
        # PyTorch Linear weight is [out, in]; we store the transpose [in, out].
        w = _xavier_uniform(next(keys), in_dim, out_dim, (in_dim, out_dim))
        b = jnp.zeros((out_dim,), jnp.float32)
        return w, b

    params = {
        "word_emb": 0.02 * jax.random.normal(next(keys), (VOCAB, HIDDEN), jnp.float32),
        "pos_emb": 0.02 * jax.random.normal(next(keys), (MAX_POS, HIDDEN), jnp.float32),
        "type_emb": 0.02 * jax.random.normal(next(keys), (TYPE_VOCAB, HIDDEN), jnp.float32),
        "emb_ln_g": jnp.ones((1, HIDDEN), jnp.float32),
        "emb_ln_b": jnp.zeros((1, HIDDEN), jnp.float32),
    }

    qkv_w, qkv_b, ao_w, ao_b = [], [], [], []
    a_ln_g, a_ln_b, o_ln_g, o_ln_b = [], [], [], []
    in_w, in_b, fo_w, fo_b = [], [], [], []
    for _ in range(N_LAYERS):
        wq, bq = lin(HIDDEN, HIDDEN)
        wk, bk = lin(HIDDEN, HIDDEN)
        wv, bv = lin(HIDDEN, HIDDEN)
        qkv_w.append(jnp.concatenate([wq, wk, wv], axis=1))                 # [H, 3H]
        qkv_b.append(jnp.concatenate([bq, bk, bv]).reshape(1, 3 * HIDDEN))  # [1, 3H]
        w, b = lin(HIDDEN, HIDDEN)
        ao_w.append(w); ao_b.append(b.reshape(1, HIDDEN))
        a_ln_g.append(jnp.ones((1, HIDDEN), jnp.float32))
        a_ln_b.append(jnp.zeros((1, HIDDEN), jnp.float32))
        w, b = lin(HIDDEN, INTERMEDIATE)
        in_w.append(w); in_b.append(b.reshape(1, INTERMEDIATE))
        w, b = lin(INTERMEDIATE, HIDDEN)
        fo_w.append(w); fo_b.append(b.reshape(1, HIDDEN))
        o_ln_g.append(jnp.ones((1, HIDDEN), jnp.float32))
        o_ln_b.append(jnp.zeros((1, HIDDEN), jnp.float32))

    params.update({
        "qkv_w": jnp.stack(qkv_w), "qkv_b": jnp.stack(qkv_b),
        "ao_w": jnp.stack(ao_w), "ao_b": jnp.stack(ao_b),
        "a_ln_g": jnp.stack(a_ln_g), "a_ln_b": jnp.stack(a_ln_b),
        "in_w": jnp.stack(in_w), "in_b": jnp.stack(in_b),
        "fo_w": jnp.stack(fo_w), "fo_b": jnp.stack(fo_b),
        "o_ln_g": jnp.stack(o_ln_g), "o_ln_b": jnp.stack(o_ln_b),
    })

    pw, pb = lin(HIDDEN, HIDDEN)
    params["pool_w"], params["pool_b"] = pw, pb.reshape(1, HIDDEN)
    cw, cb = lin(HIDDEN, NUM_LABELS)
    params["cls_w"], params["cls_b"] = cw, cb.reshape(1, NUM_LABELS)
    return params


# ---------------------------------- forward ---------------------------------

def bert_forward(params, input_ids, attention_masks, target=None):
    b, s = input_ids.shape

    # Embedding gather + position/type add (glue — no clean Pallas gather needed
    # at this size); token_type_ids=None -> all type-0 embeddings.
    h = (params["word_emb"][input_ids]
         + params["pos_emb"][:s][None, :, :]
         + params["type_emb"][0][None, None, :]).astype(jnp.float32)
    h2 = h.reshape(b * s, HIDDEN)

    # HF additive extended attention mask: (1 - mask) * -10000, per key position.
    add_mask = (1.0 - attention_masks.astype(jnp.float32)) * -10000.0       # [B, S]

    logits = pl.pallas_call(
        functools.partial(_bert_fused_kernel, batch=b, seq=s),
        out_shape=jax.ShapeDtypeStruct((b, NUM_LABELS), jnp.float32),
        cost_estimate=_cost_estimate(b, s),
    )(h2, add_mask,
      params["emb_ln_g"], params["emb_ln_b"],
      params["qkv_w"], params["qkv_b"],
      params["ao_w"], params["ao_b"],
      params["a_ln_g"], params["a_ln_b"],
      params["in_w"], params["in_b"],
      params["fo_w"], params["fo_b"],
      params["o_ln_g"], params["o_ln_b"],
      params["pool_w"], params["pool_b"],
      params["cls_w"], params["cls_b"])

    if target is not None:
        # num_labels == 1 -> HF regression branch: MSE on squeezed logits
        # (scalar reduction in plain JAX — a kernel launch here is pure overhead).
        loss = jnp.mean(jnp.square(logits.reshape(-1) - target.reshape(-1).astype(jnp.float32)))
        return loss, logits
    return logits


# ----------------------------------- main ------------------------------------

if __name__ == "__main__":
    key = jax.random.PRNGKey(0)
    k_param, k_ids, k_tgt = jax.random.split(key, 3)

    params = init_params(k_param)

    input_ids = jax.random.randint(k_ids, (BATCH, SEQ), 0, VOCAB, dtype=jnp.int32)
    attention_masks = jnp.ones((BATCH, SEQ), dtype=jnp.int32)
    # mask out the tail of the second sequence to exercise the mask path
    attention_masks = attention_masks.at[1, SEQ - 2:].set(0)
    target = jax.random.normal(k_tgt, (BATCH,), jnp.float32)

    loss, logits = bert_forward(params, input_ids, attention_masks, target)
    logits_only = bert_forward(params, input_ids, attention_masks, None)

    jax.block_until_ready((loss, logits, logits_only))
    assert logits.shape == (BATCH, NUM_LABELS)
    assert logits_only.shape == (BATCH, NUM_LABELS)
    assert loss.shape == ()
    assert bool(jnp.isfinite(loss))
    print("KERNEL_OK")
</pallas_src>

<mosaic_0001>
module attributes {stable_mosaic.version = 11 : i64} {
  func.func @_bert_fused_kernel(%arg0: memref<16x32xf32, #tpu.memory_space<vmem>>, %arg1: memref<2x8xf32, #tpu.memory_space<vmem>>, %arg2: memref<1x32xf32, #tpu.memory_space<vmem>>, %arg3: memref<1x32xf32, #tpu.memory_space<vmem>>, %arg4: memref<2x32x96xf32, #tpu.memory_space<vmem>>, %arg5: memref<2x1x96xf32, #tpu.memory_space<vmem>>, %arg6: memref<2x32x32xf32, #tpu.memory_space<vmem>>, %arg7: memref<2x1x32xf32, #tpu.memory_space<vmem>>, %arg8: memref<2x1x32xf32, #tpu.memory_space<vmem>>, %arg9: memref<2x1x32xf32, #tpu.memory_space<vmem>>, %arg10: memref<2x32x64xf32, #tpu.memory_space<vmem>>, %arg11: memref<2x1x64xf32, #tpu.memory_space<vmem>>, %arg12: memref<2x64x32xf32, #tpu.memory_space<vmem>>, %arg13: memref<2x1x32xf32, #tpu.memory_space<vmem>>, %arg14: memref<2x1x32xf32, #tpu.memory_space<vmem>>, %arg15: memref<2x1x32xf32, #tpu.memory_space<vmem>>, %arg16: memref<32x32xf32, #tpu.memory_space<vmem>>, %arg17: memref<1x32xf32, #tpu.memory_space<vmem>>, %arg18: memref<32x1xf32, #tpu.memory_space<vmem>>, %arg19: memref<1x1xf32, #tpu.memory_space<vmem>>, %arg20: memref<2x1xf32, #tpu.memory_space<vmem>>) attributes {dimension_semantics = [], scalar_prefetch = 0 : i64, scratch_operands = 0 : i64, tpu.core_type = #tpu.core_type<tc>} {
    %c0 = arith.constant 0 : index
    %c0_0 = arith.constant 0 : index
    %0 = vector.load %arg0[%c0, %c0_0] : memref<16x32xf32, #tpu.memory_space<vmem>>, vector<16x32xf32>
    %c0_1 = arith.constant 0 : index
    %c0_2 = arith.constant 0 : index
    %1 = vector.load %arg2[%c0_1, %c0_2] : memref<1x32xf32, #tpu.memory_space<vmem>>, vector<1x32xf32>
    %c0_3 = arith.constant 0 : index
    %c0_4 = arith.constant 0 : index
    %2 = vector.load %arg3[%c0_3, %c0_4] : memref<1x32xf32, #tpu.memory_space<vmem>>, vector<1x32xf32>
    %cst = arith.constant dense<0.000000e+00> : vector<16xf32>
    %3 = vector.multi_reduction <add>, %0, %cst [1] : vector<16x32xf32> to vector<16xf32>
    %4 = vector.shape_cast %3 : vector<16xf32> to vector<16x1xf32>
    %cst_5 = arith.constant 3.200000e+01 : f32
    %5 = vector.broadcast %cst_5 : f32 to vector<16x1xf32>
    %6 = arith.divf %4, %5 : vector<16x1xf32>
    %7 = vector.broadcast %6 : vector<16x1xf32> to vector<16x32xf32>
    %8 = arith.subf %0, %7 : vector<16x32xf32>
    %9 = arith.mulf %8, %8 : vector<16x32xf32>
    %cst_6 = arith.constant dense<0.000000e+00> : vector<16xf32>
    %10 = vector.multi_reduction <add>, %9, %cst_6 [1] : vector<16x32xf32> to vector<16xf32>
    %11 = vector.shape_cast %10 : vector<16xf32> to vector<16x1xf32>
    %cst_7 = arith.constant 3.200000e+01 : f32
    %12 = vector.broadcast %cst_7 : f32 to vector<16x1xf32>
    %13 = arith.divf %11, %12 : vector<16x1xf32>
    %14 = vector.broadcast %6 : vector<16x1xf32> to vector<16x32xf32>
    %15 = arith.subf %0, %14 : vector<16x32xf32>
    %cst_8 = arith.constant 9.99999996E-13 : f32
    %16 = vector.broadcast %cst_8 : f32 to vector<16x1xf32>
    %17 = arith.addf %13, %16 : vector<16x1xf32>
    %18 = math.rsqrt %17 : vector<16x1xf32>
    %19 = vector.broadcast %18 : vector<16x1xf32> to vector<16x32xf32>
    %20 = arith.mulf %15, %19 : vector<16x32xf32>
    %21 = vector.broadcast %1 : vector<1x32xf32> to vector<16x32xf32>
    %22 = arith.mulf %20, %21 : vector<16x32xf32>
    %23 = vector.broadcast %2 : vector<1x32xf32> to vector<16x32xf32>
    %24 = arith.addf %22, %23 : vector<16x32xf32>
    %c0_9 = arith.constant 0 : index
    %c0_10 = arith.constant 0 : index
    %25 = vector.load %arg1[%c0_9, %c0_10] : memref<2x8xf32, #tpu.memory_space<vmem>>, vector<2x8xf32>
    %c0_11 = arith.constant 0 : index
    %c0_12 = arith.constant 0 : index
    %c0_13 = arith.constant 0 : index
    %26 = vector.load %arg4[%c0_11, %c0_12, %c0_13] : memref<2x32x96xf32, #tpu.memory_space<vmem>>, vector<1x32x96xf32>
    %27 = vector.shape_cast %26 : vector<1x32x96xf32> to vector<32x96xf32>
    %cst_14 = arith.constant dense<0.000000e+00> : vector<16x96xf32>
    %28 = tpu.matmul %24, %27, %cst_14 {dimension_numbers = #tpu.dot_dimension_numbers<[1], [0], [0], [1], [0, 0, 1, 1], [], []>} : vector<16x32xf32>, vector<32x96xf32>, vector<16x96xf32> -> vector<16x96xf32>
    %c0_15 = arith.constant 0 : index
    %c0_16 = arith.constant 0 : index
    %c0_17 = arith.constant 0 : index
    %29 = vector.load %arg5[%c0_15, %c0_16, %c0_17] : memref<2x1x96xf32, #tpu.memory_space<vmem>>, vector<1x1x96xf32>
    %30 = vector.shape_cast %29 : vector<1x1x96xf32> to vector<1x96xf32>
    %31 = vector.broadcast %30 : vector<1x96xf32> to vector<16x96xf32>
    %32 = arith.addf %28, %31 : vector<16x96xf32>
    %33 = vector.extract_strided_slice %32 {offsets = [0, 0], sizes = [16, 32], strides = [1, 1]} : vector<16x96xf32> to vector<16x32xf32>
    %34 = vector.extract_strided_slice %32 {offsets = [0, 32], sizes = [16, 32], strides = [1, 1]} : vector<16x96xf32> to vector<16x32xf32>
    %35 = vector.extract_strided_slice %32 {offsets = [0, 64], sizes = [16, 32], strides = [1, 1]} : vector<16x96xf32> to vector<16x32xf32>
    %36 = vector.extract_strided_slice %25 {offsets = [0, 0], sizes = [1, 8], strides = [1, 1]} : vector<2x8xf32> to vector<1x8xf32>
    %37 = vector.extract_strided_slice %33 {offsets = [0, 0], sizes = [8, 8], strides = [1, 1]} : vector<16x32xf32> to vector<8x8xf32>
    %38 = vector.extract_strided_slice %34 {offsets = [0, 0], sizes = [8, 8], strides = [1, 1]} : vector<16x32xf32> to vector<8x8xf32>
    %39 = vector.extract_strided_slice %35 {offsets = [0, 0], sizes = [8, 8], strides = [1, 1]} : vector<16x32xf32> to vector<8x8xf32>
    %cst_18 = arith.constant dense<0.000000e+00> : vector<8x8xf32>
    %40 = tpu.matmul %37, %38, %cst_18 {dimension_numbers = #tpu.dot_dimension_numbers<[1], [1], [0], [0], [0, 0, 1, 0], [], []>} : vector<8x8xf32>, vector<8x8xf32>, vector<8x8xf32> -> vector<8x8xf32>
    %cst_19 = arith.constant 0.353553385 : f32
    %41 = vector.broadcast %cst_19 : f32 to vector<8x8xf32>
    %42 = arith.mulf %40, %41 : vector<8x8xf32>
    %43 = vector.broadcast %36 : vector<1x8xf32> to vector<8x8xf32>
    %44 = arith.addf %42, %43 : vector<8x8xf32>
    %cst_20 = arith.constant dense<0xFF800000> : vector<8xf32>
    %45 = vector.multi_reduction <maximumf>, %44, %cst_20 [1] : vector<8x8xf32> to vector<8xf32>
    %46 = vector.shape_cast %45 : vector<8xf32> to vector<8x1xf32>
    %47 = vector.broadcast %46 : vector<8x1xf32> to vector<8x8xf32>
    %48 = arith.subf %44, %47 : vector<8x8xf32>
    %49 = math.exp %48 : vector<8x8xf32>
    %cst_21 = arith.constant dense<0.000000e+00> : vector<8xf32>
    %50 = vector.multi_reduction <add>, %49, %cst_21 [1] : vector<8x8xf32> to vector<8xf32>
    %51 = vector.shape_cast %50 : vector<8xf32> to vector<8x1xf32>
    %52 = vector.broadcast %51 : vector<8x1xf32> to vector<8x8xf32>
    %53 = arith.divf %49, %52 : vector<8x8xf32>
    %cst_22 = arith.constant dense<0.000000e+00> : vector<8x8xf32>
    %54 = tpu.matmul %53, %39, %cst_22 {dimension_numbers = #tpu.dot_dimension_numbers<[1], [0], [0], [1], [0, 0, 1, 1], [], []>} : vector<8x8xf32>, vector<8x8xf32>, vector<8x8xf32> -> vector<8x8xf32>
    %55 = vector.extract_strided_slice %33 {offsets = [0, 8], sizes = [8, 8], strides = [1, 1]} : vector<16x32xf32> to vector<8x8xf32>
    %56 = vector.extract_strided_slice %34 {offsets = [0, 8], sizes = [8, 8], strides = [1, 1]} : vector<16x32xf32> to vector<8x8xf32>
    %57 = vector.extract_strided_slice %35 {offsets = [0, 8], sizes = [8, 8], strides = [1, 1]} : vector<16x32xf32> to vector<8x8xf32>
    %cst_23 = arith.constant dense<0.000000e+00> : vector<8x8xf32>
    %58 = tpu.matmul %55, %56, %cst_23 {dimension_numbers = #tpu.dot_dimension_numbers<[1], [1], [0], [0], [0, 0, 1, 0], [], []>} : vector<8x8xf32>, vector<8x8xf32>, vector<8x8xf32> -> vector<8x8xf32>
    %cst_24 = arith.constant 0.353553385 : f32
    %59 = vector.broadcast %cst_24 : f32 to vector<8x8xf32>
    %60 = arith.mulf %58, %59 : vector<8x8xf32>
    %61 = vector.broadcast %36 : vector<1x8xf32> to vector<8x8xf32>
    %62 = arith.addf %60, %61 : vector<8x8xf32>
    %cst_25 = arith.constant dense<0xFF800000> : vector<8xf32>
    %63 = vector.multi_reduction <maximumf>, %62, %cst_25 [1] : vector<8x8xf32> to vector<8xf32>
    %64 = vector.shape_cast %63 : vector<8xf32> to vector<8x1xf32>
    %65 = vector.broadcast %64 : vector<8x1xf32> to vector<8x8xf32>
    %66 = arith.subf %62, %65 : vector<8x8xf32>
    %67 = math.exp %66 : vector<8x8xf32>
    %cst_26 = arith.constant dense<0.000000e+00> : vector<8xf32>
    %68 = vector.multi_reduction <add>, %67, %cst_26 [1] : vector<8x8xf32> to vector<8xf32>
    %69 = vector.shape_cast %68 : vector<8xf32> to vector<8x1xf32>
    %70 = vector.broadcast %69 : vector<8x1xf32> to vector<8x8xf32>
    %71 = arith.divf %67, %70 : vector<8x8xf32>
    %cst_27 = arith.constant dense<0.000000e+00> : vector<8x8xf32>
    %72 = tpu.matmul %71, %57, %cst_27 {dimension_numbers = #tpu.dot_dimension_numbers<[1], [0], [0], [1], [0, 0, 1, 1], [], []>} : vector<8x8xf32>, vector<8x8xf32>, vector<8x8xf32> -> vector<8x8xf32>
    %73 = vector.extract_strided_slice %33 {offsets = [0, 16], sizes = [8, 8], strides = [1, 1]} : vector<16x32xf32> to vector<8x8xf32>
    %74 = vector.extract_strided_slice %34 {offsets = [0, 16], sizes = [8, 8], strides = [1, 1]} : vector<16x32xf32> to vector<8x8xf32>
    %75 = vector.extract_strided_slice %35 {offsets = [0, 16], sizes = [8, 8], strides = [1, 1]} : vector<16x32xf32> to vector<8x8xf32>
    %cst_28 = arith.constant dense<0.000000e+00> : vector<8x8xf32>
    %76 = tpu.matmul %73, %74, %cst_28 {dimension_numbers = #tpu.dot_dimension_numbers<[1], [1], [0], [0], [0, 0, 1, 0], [], []>} : vector<8x8xf32>, vector<8x8xf32>, vector<8x8xf32> -> vector<8x8xf32>
    %cst_29 = arith.constant 0.353553385 : f32
    %77 = vector.broadcast %cst_29 : f32 to vector<8x8xf32>
    %78 = arith.mulf %76, %77 : vector<8x8xf32>
    %79 = vector.broadcast %36 : vector<1x8xf32> to vector<8x8xf32>
    %80 = arith.addf %78, %79 : vector<8x8xf32>
    %cst_30 = arith.constant dense<0xFF800000> : vector<8xf32>
    %81 = vector.multi_reduction <maximumf>, %80, %cst_30 [1] : vector<8x8xf32> to vector<8xf32>
    %82 = vector.shape_cast %81 : vector<8xf32> to vector<8x1xf32>
    %83 = vector.broadcast %82 : vector<8x1xf32> to vector<8x8xf32>
    %84 = arith.subf %80, %83 : vector<8x8xf32>
    %85 = math.exp %84 : vector<8x8xf32>
    %cst_31 = arith.constant dense<0.000000e+00> : vector<8xf32>
    %86 = vector.multi_reduction <add>, %85, %cst_31 [1] : vector<8x8xf32> to vector<8xf32>
    %87 = vector.shape_cast %86 : vector<8xf32> to vector<8x1xf32>
    %88 = vector.broadcast %87 : vector<8x1xf32> to vector<8x8xf32>
    %89 = arith.divf %85, %88 : vector<8x8xf32>
    %cst_32 = arith.constant dense<0.000000e+00> : vector<8x8xf32>
    %90 = tpu.matmul %89, %75, %cst_32 {dimension_numbers = #tpu.dot_dimension_numbers<[1], [0], [0], [1], [0, 0, 1, 1], [], []>} : vector<8x8xf32>, vector<8x8xf32>, vector<8x8xf32> -> vector<8x8xf32>
    %91 = vector.extract_strided_slice %33 {offsets = [0, 24], sizes = [8, 8], strides = [1, 1]} : vector<16x32xf32> to vector<8x8xf32>
    %92 = vector.extract_strided_slice %34 {offsets = [0, 24], sizes = [8, 8], strides = [1, 1]} : vector<16x32xf32> to vector<8x8xf32>
    %93 = vector.extract_strided_slice %35 {offsets = [0, 24], sizes = [8, 8], strides = [1, 1]} : vector<16x32xf32> to vector<8x8xf32>
    %cst_33 = arith.constant dense<0.000000e+00> : vector<8x8xf32>
    %94 = tpu.matmul %91, %92, %cst_33 {dimension_numbers = #tpu.dot_dimension_numbers<[1], [1], [0], [0], [0, 0, 1, 0], [], []>} : vector<8x8xf32>, vector<8x8xf32>, vector<8x8xf32> -> vector<8x8xf32>
    %cst_34 = arith.constant 0.353553385 : f32
    %95 = vector.broadcast %cst_34 : f32 to vector<8x8xf32>
    %96 = arith.mulf %94, %95 : vector<8x8xf32>
    %97 = vector.broadcast %36 : vector<1x8xf32> to vector<8x8xf32>
    %98 = arith.addf %96, %97 : vector<8x8xf32>
    %cst_35 = arith.constant dense<0xFF800000> : vector<8xf32>
    %99 = vector.multi_reduction <maximumf>, %98, %cst_35 [1] : vector<8x8xf32> to vector<8xf32>
    %100 = vector.shape_cast %99 : vector<8xf32> to vector<8x1xf32>
    %101 = vector.broadcast %100 : vector<8x1xf32> to vector<8x8xf32>
    %102 = arith.subf %98, %101 : vector<8x8xf32>
    %103 = math.exp %102 : vector<8x8xf32>
    %cst_36 = arith.constant dense<0.000000e+00> : vector<8xf32>
    %104 = vector.multi_reduction <add>, %103, %cst_36 [1] : vector<8x8xf32> to vector<8xf32>
    %105 = vector.shape_cast %104 : vector<8xf32> to vector<8x1xf32>
    %106 = vector.broadcast %105 : vector<8x1xf32> to vector<8x8xf32>
    %107 = arith.divf %103, %106 : vector<8x8xf32>
    %cst_37 = arith.constant dense<0.000000e+00> : vector<8x8xf32>
    %108 = tpu.matmul %107, %93, %cst_37 {dimension_numbers = #tpu.dot_dimension_numbers<[1], [0], [0], [1], [0, 0, 1, 1], [], []>} : vector<8x8xf32>, vector<8x8xf32>, vector<8x8xf32> -> vector<8x8xf32>
    %109 = tpu.concatenate %54, %72, %90, %108 in 1 : vector<8x8xf32>, vector<8x8xf32>, vector<8x8xf32>, vector<8x8xf32> -> vector<8x32xf32>
    %110 = vector.extract_strided_slice %25 {offsets = [1, 0], sizes = [1, 8], strides = [1, 1]} : vector<2x8xf32> to vector<1x8xf32>
    %111 = vector.extract_strided_slice %33 {offsets = [8, 0], sizes = [8, 8], strides = [1, 1]} : vector<16x32xf32> to vector<8x8xf32>
    %112 = vector.extract_strided_slice %34 {offsets = [8, 0], sizes = [8, 8], strides = [1, 1]} : vector<16x32xf32> to vector<8x8xf32>
    %113 = vector.extract_strided_slice %35 {offsets = [8, 0], sizes = [8, 8], strides = [1, 1]} : vector<16x32xf32> to vector<8x8xf32>
    %cst_38 = arith.constant dense<0.000000e+00> : vector<8x8xf32>
    %114 = tpu.matmul %111, %112, %cst_38 {dimension_numbers = #tpu.dot_dimension_numbers<[1], [1], [0], [0], [0, 0, 1, 0], [], []>} : vector<8x8xf32>, vector<8x8xf32>, vector<8x8xf32> -> vector<8x8xf32>
    %cst_39 = arith.constant 0.353553385 : f32
    %115 = vector.broadcast %cst_39 : f32 to vector<8x8xf32>
    %116 = arith.mulf %114, %115 : vector<8x8xf32>
    %117 = vector.broadcast %110 : vector<1x8xf32> to vector<8x8xf32>
    %118 = arith.addf %116, %117 : vector<8x8xf32>
    %cst_40 = arith.constant dense<0xFF800000> : vector<8xf32>
    %119 = vector.multi_reduction <maximumf>, %118, %cst_40 [1] : vector<8x8xf32> to vector<8xf32>
    %120 = vector.shape_cast %119 : vector<8xf32> to vector<8x1xf32>
    %121 = vector.broadcast %120 : vector<8x1xf32> to vector<8x8xf32>
    %122 = arith.subf %118, %121 : vector<8x8xf32>
    %123 = math.exp %122 : vector<8x8xf32>
    %cst_41 = arith.constant dense<0.000000e+00> : vector<8xf32>
    %124 = vector.multi_reduction <add>, %123, %cst_41 [1] : vector<8x8xf32> to vector<8xf32>
    %125 = vector.shape_cast %124 : vector<8xf32> to vector<8x1xf32>
    %126 = vector.broadcast %125 : vector<8x1xf32> to vector<8x8xf32>
    %127 = arith.divf %123, %126 : vector<8x8xf32>
    %cst_42 = arith.constant dense<0.000000e+00> : vector<8x8xf32>
    %128 = tpu.matmul %127, %113, %cst_42 {dimension_numbers = #tpu.dot_dimension_numbers<[1], [0], [0], [1], [0, 0, 1, 1], [], []>} : vector<8x8xf32>, vector<8x8xf32>, vector<8x8xf32> -> vector<8x8xf32>
    %129 = vector.extract_strided_slice %33 {offsets = [8, 8], sizes = [8, 8], strides = [1, 1]} : vector<16x32xf32> to vector<8x8xf32>
    %130 = vector.extract_strided_slice %34 {offsets = [8, 8], sizes = [8, 8], strides = [1, 1]} : vector<16x32xf32> to vector<8x8xf32>
    %131 = vector.extract_strided_slice %35 {offsets = [8, 8], sizes = [8, 8], strides = [1, 1]} : vector<16x32xf32> to vector<8x8xf32>
    %cst_43 = arith.constant dense<0.000000e+00> : vector<8x8xf32>
    %132 = tpu.matmul %129, %130, %cst_43 {dimension_numbers = #tpu.dot_dimension_numbers<[1], [1], [0], [0], [0, 0, 1, 0], [], []>} : vector<8x8xf32>, vector<8x8xf32>, vector<8x8xf32> -> vector<8x8xf32>
    %cst_44 = arith.constant 0.353553385 : f32
    %133 = vector.broadcast %cst_44 : f32 to vector<8x8xf32>
    %134 = arith.mulf %132, %133 : vector<8x8xf32>
    %135 = vector.broadcast %110 : vector<1x8xf32> to vector<8x8xf32>
    %136 = arith.addf %134, %135 : vector<8x8xf32>
    %cst_45 = arith.constant dense<0xFF800000> : vector<8xf32>
    %137 = vector.multi_reduction <maximumf>, %136, %cst_45 [1] : vector<8x8xf32> to vector<8xf32>
    %138 = vector.shape_cast %137 : vector<8xf32> to vector<8x1xf32>
    %139 = vector.broadcast %138 : vector<8x1xf32> to vector<8x8xf32>
    %140 = arith.subf %136, %139 : vector<8x8xf32>
    %141 = math.exp %140 : vector<8x8xf32>
    %cst_46 = arith.constant dense<0.000000e+00> : vector<8xf32>
    %142 = vector.multi_reduction <add>, %141, %cst_46 [1] : vector<8x8xf32> to vector<8xf32>
    %143 = vector.shape_cast %142 : vector<8xf32> to vector<8x1xf32>
    %144 = vector.broadcast %143 : vector<8x1xf32> to vector<8x8xf32>
    %145 = arith.divf %141, %144 : vector<8x8xf32>
    %cst_47 = arith.constant dense<0.000000e+00> : vector<8x8xf32>
    %146 = tpu.matmul %145, %131, %cst_47 {dimension_numbers = #tpu.dot_dimension_numbers<[1], [0], [0], [1], [0, 0, 1, 1], [], []>} : vector<8x8xf32>, vector<8x8xf32>, vector<8x8xf32> -> vector<8x8xf32>
    %147 = vector.extract_strided_slice %33 {offsets = [8, 16], sizes = [8, 8], strides = [1, 1]} : vector<16x32xf32> to vector<8x8xf32>
    %148 = vector.extract_strided_slice %34 {offsets = [8, 16], sizes = [8, 8], strides = [1, 1]} : vector<16x32xf32> to vector<8x8xf32>
    %149 = vector.extract_strided_slice %35 {offsets = [8, 16], sizes = [8, 8], strides = [1, 1]} : vector<16x32xf32> to vector<8x8xf32>
    %cst_48 = arith.constant dense<0.000000e+00> : vector<8x8xf32>
    %150 = tpu.matmul %147, %148, %cst_48 {dimension_numbers = #tpu.dot_dimension_numbers<[1], [1], [0], [0], [0, 0, 1, 0], [], []>} : vector<8x8xf32>, vector<8x8xf32>, vector<8x8xf32> -> vector<8x8xf32>
    %cst_49 = arith.constant 0.353553385 : f32
    %151 = vector.broadcast %cst_49 : f32 to vector<8x8xf32>
    %152 = arith.mulf %150, %151 : vector<8x8xf32>
    %153 = vector.broadcast %110 : vector<1x8xf32> to vector<8x8xf32>
    %154 = arith.addf %152, %153 : vector<8x8xf32>
    %cst_50 = arith.constant dense<0xFF800000> : vector<8xf32>
    %155 = vector.multi_reduction <maximumf>, %154, %cst_50 [1] : vector<8x8xf32> to vector<8xf32>
    %156 = vector.shape_cast %155 : vector<8xf32> to vector<8x1xf32>
    %157 = vector.broadcast %156 : vector<8x1xf32> to vector<8x8xf32>
    %158 = arith.subf %154, %157 : vector<8x8xf32>
    %159 = math.exp %158 : vector<8x8xf32>
    %cst_51 = arith.constant dense<0.000000e+00> : vector<8xf32>
    %160 = vector.multi_reduction <add>, %159, %cst_51 [1] : vector<8x8xf32> to vector<8xf32>
    %161 = vector.shape_cast %160 : vector<8xf32> to vector<8x1xf32>
    %162 = vector.broadcast %161 : vector<8x1xf32> to vector<8x8xf32>
    %163 = arith.divf %159, %162 : vector<8x8xf32>
    %cst_52 = arith.constant dense<0.000000e+00> : vector<8x8xf32>
    %164 = tpu.matmul %163, %149, %cst_52 {dimension_numbers = #tpu.dot_dimension_numbers<[1], [0], [0], [1], [0, 0, 1, 1], [], []>} : vector<8x8xf32>, vector<8x8xf32>, vector<8x8xf32> -> vector<8x8xf32>
    %165 = vector.extract_strided_slice %33 {offsets = [8, 24], sizes = [8, 8], strides = [1, 1]} : vector<16x32xf32> to vector<8x8xf32>
    %166 = vector.extract_strided_slice %34 {offsets = [8, 24], sizes = [8, 8], strides = [1, 1]} : vector<16x32xf32> to vector<8x8xf32>
    %167 = vector.extract_strided_slice %35 {offsets = [8, 24], sizes = [8, 8], strides = [1, 1]} : vector<16x32xf32> to vector<8x8xf32>
    %cst_53 = arith.constant dense<0.000000e+00> : vector<8x8xf32>
    %168 = tpu.matmul %165, %166, %cst_53 {dimension_numbers = #tpu.dot_dimension_numbers<[1], [1], [0], [0], [0, 0, 1, 0], [], []>} : vector<8x8xf32>, vector<8x8xf32>, vector<8x8xf32> -> vector<8x8xf32>
    %cst_54 = arith.constant 0.353553385 : f32
    %169 = vector.broadcast %cst_54 : f32 to vector<8x8xf32>
    %170 = arith.mulf %168, %169 : vector<8x8xf32>
    %171 = vector.broadcast %110 : vector<1x8xf32> to vector<8x8xf32>
    %172 = arith.addf %170, %171 : vector<8x8xf32>
    %cst_55 = arith.constant dense<0xFF800000> : vector<8xf32>
    %173 = vector.multi_reduction <maximumf>, %172, %cst_55 [1] : vector<8x8xf32> to vector<8xf32>
    %174 = vector.shape_cast %173 : vector<8xf32> to vector<8x1xf32>
    %175 = vector.broadcast %174 : vector<8x1xf32> to vector<8x8xf32>
    %176 = arith.subf %172, %175 : vector<8x8xf32>
    %177 = math.exp %176 : vector<8x8xf32>
    %cst_56 = arith.constant dense<0.000000e+00> : vector<8xf32>
    %178 = vector.multi_reduction <add>, %177, %cst_56 [1] : vector<8x8xf32> to vector<8xf32>
    %179 = vector.shape_cast %178 : vector<8xf32> to vector<8x1xf32>
    %180 = vector.broadcast %179 : vector<8x1xf32> to vector<8x8xf32>
    %181 = arith.divf %177, %180 : vector<8x8xf32>
    %cst_57 = arith.constant dense<0.000000e+00> : vector<8x8xf32>
    %182 = tpu.matmul %181, %167, %cst_57 {dimension_numbers = #tpu.dot_dimension_numbers<[1], [0], [0], [1], [0, 0, 1, 1], [], []>} : vector<8x8xf32>, vector<8x8xf32>, vector<8x8xf32> -> vector<8x8xf32>
    %183 = tpu.concatenate %128, %146, %164, %182 in 1 : vector<8x8xf32>, vector<8x8xf32>, vector<8x8xf32>, vector<8x8xf32> -> vector<8x32xf32>
    %184 = tpu.concatenate %109, %183 in 0 : vector<8x32xf32>, vector<8x32xf32> -> vector<16x32xf32>
    %c0_58 = arith.constant 0 : index
    %c0_59 = arith.constant 0 : index
    %c0_60 = arith.constant 0 : index
    %185 = vector.load %arg6[%c0_58, %c0_59, %c0_60] : memref<2x32x32xf32, #tpu.memory_space<vmem>>, vector<1x32x32xf32>
    %186 = vector.shape_cast %185 : vector<1x32x32xf32> to vector<32x32xf32>
    %cst_61 = arith.constant dense<0.000000e+00> : vector<16x32xf32>
    %187 = tpu.matmul %184, %186, %cst_61 {dimension_numbers = #tpu.dot_dimension_numbers<[1], [0], [0], [1], [0, 0, 1, 1], [], []>} : vector<16x32xf32>, vector<32x32xf32>, vector<16x32xf32> -> vector<16x32xf32>
    %c0_62 = arith.constant 0 : index
    %c0_63 = arith.constant 0 : index
    %c0_64 = arith.constant 0 : index
    %188 = vector.load %arg7[%c0_62, %c0_63, %c0_64] : memref<2x1x32xf32, #tpu.memory_space<vmem>>, vector<1x1x32xf32>
    %189 = vector.shape_cast %188 : vector<1x1x32xf32> to vector<1x32xf32>
    %190 = vector.broadcast %189 : vector<1x32xf32> to vector<16x32xf32>
    %191 = arith.addf %187, %190 : vector<16x32xf32>
    %192 = arith.addf %191, %24 : vector<16x32xf32>
    %c0_65 = arith.constant 0 : index
    %c0_66 = arith.constant 0 : index
    %c0_67 = arith.constant 0 : index
    %193 = vector.load %arg8[%c0_65, %c0_66, %c0_67] : memref<2x1x32xf32, #tpu.memory_space<vmem>>, vector<1x1x32xf32>
    %194 = vector.shape_cast %193 : vector<1x1x32xf32> to vector<1x32xf32>
    %c0_68 = arith.constant 0 : index
    %c0_69 = arith.constant 0 : index
    %c0_70 = arith.constant 0 : index
    %195 = vector.load %arg9[%c0_68, %c0_69, %c0_70] : memref<2x1x32xf32, #tpu.memory_space<vmem>>, vector<1x1x32xf32>
    %196 = vector.shape_cast %195 : vector<1x1x32xf32> to vector<1x32xf32>
    %cst_71 = arith.constant dense<0.000000e+00> : vector<16xf32>
    %197 = vector.multi_reduction <add>, %192, %cst_71 [1] : vector<16x32xf32> to vector<16xf32>
    %198 = vector.shape_cast %197 : vector<16xf32> to vector<16x1xf32>
    %cst_72 = arith.constant 3.200000e+01 : f32
    %199 = vector.broadcast %cst_72 : f32 to vector<16x1xf32>
    %200 = arith.divf %198, %199 : vector<16x1xf32>
    %201 = vector.broadcast %200 : vector<16x1xf32> to vector<16x32xf32>
    %202 = arith.subf %192, %201 : vector<16x32xf32>
    %203 = arith.mulf %202, %202 : vector<16x32xf32>
    %cst_73 = arith.constant dense<0.000000e+00> : vector<16xf32>
    %204 = vector.multi_reduction <add>, %203, %cst_73 [1] : vector<16x32xf32> to vector<16xf32>
    %205 = vector.shape_cast %204 : vector<16xf32> to vector<16x1xf32>
    %cst_74 = arith.constant 3.200000e+01 : f32
    %206 = vector.broadcast %cst_74 : f32 to vector<16x1xf32>
    %207 = arith.divf %205, %206 : vector<16x1xf32>
    %208 = vector.broadcast %200 : vector<16x1xf32> to vector<16x32xf32>
    %209 = arith.subf %192, %208 : vector<16x32xf32>
    %cst_75 = arith.constant 9.99999996E-13 : f32
    %210 = vector.broadcast %cst_75 : f32 to vector<16x1xf32>
    %211 = arith.addf %207, %210 : vector<16x1xf32>
    %212 = math.rsqrt %211 : vector<16x1xf32>
    %213 = vector.broadcast %212 : vector<16x1xf32> to vector<16x32xf32>
    %214 = arith.mulf %209, %213 : vector<16x32xf32>
    %215 = vector.broadcast %194 : vector<1x32xf32> to vector<16x32xf32>
    %216 = arith.mulf %214, %215 : vector<16x32xf32>
    %217 = vector.broadcast %196 : vector<1x32xf32> to vector<16x32xf32>
    %218 = arith.addf %216, %217 : vector<16x32xf32>
    %c0_76 = arith.constant 0 : index
    %c0_77 = arith.constant 0 : index
    %c0_78 = arith.constant 0 : index
    %219 = vector.load %arg10[%c0_76, %c0_77, %c0_78] : memref<2x32x64xf32, #tpu.memory_space<vmem>>, vector<1x32x64xf32>
    %220 = vector.shape_cast %219 : vector<1x32x64xf32> to vector<32x64xf32>
    %cst_79 = arith.constant dense<0.000000e+00> : vector<16x64xf32>
    %221 = tpu.matmul %218, %220, %cst_79 {dimension_numbers = #tpu.dot_dimension_numbers<[1], [0], [0], [1], [0, 0, 1, 1], [], []>} : vector<16x32xf32>, vector<32x64xf32>, vector<16x64xf32> -> vector<16x64xf32>
    %c0_80 = arith.constant 0 : index
    %c0_81 = arith.constant 0 : index
    %c0_82 = arith.constant 0 : index
    %222 = vector.load %arg11[%c0_80, %c0_81, %c0_82] : memref<2x1x64xf32, #tpu.memory_space<vmem>>, vector<1x1x64xf32>
    %223 = vector.shape_cast %222 : vector<1x1x64xf32> to vector<1x64xf32>
    %224 = vector.broadcast %223 : vector<1x64xf32> to vector<16x64xf32>
    %225 = arith.addf %221, %224 : vector<16x64xf32>
    %cst_83 = arith.constant 5.000000e-01 : f32
    %226 = vector.broadcast %cst_83 : f32 to vector<16x64xf32>
    %227 = arith.mulf %226, %225 : vector<16x64xf32>
    %cst_84 = arith.constant 4.471500e-02 : f32
    %228 = vector.broadcast %cst_84 : f32 to vector<16x64xf32>
    %229 = arith.mulf %228, %225 : vector<16x64xf32>
    %230 = arith.mulf %229, %225 : vector<16x64xf32>
    %231 = arith.mulf %230, %225 : vector<16x64xf32>
    %232 = arith.addf %225, %231 : vector<16x64xf32>
    %cst_85 = arith.constant 0.797884583 : f32
    %233 = vector.broadcast %cst_85 : f32 to vector<16x64xf32>
    %234 = arith.mulf %233, %232 : vector<16x64xf32>
    %235 = math.tanh %234 : vector<16x64xf32>
    %cst_86 = arith.constant 1.000000e+00 : f32
    %236 = vector.broadcast %cst_86 : f32 to vector<16x64xf32>
    %237 = arith.addf %236, %235 : vector<16x64xf32>
    %238 = arith.mulf %227, %237 : vector<16x64xf32>
    %c0_87 = arith.constant 0 : index
    %c0_88 = arith.constant 0 : index
    %c0_89 = arith.constant 0 : index
    %239 = vector.load %arg12[%c0_87, %c0_88, %c0_89] : memref<2x64x32xf32, #tpu.memory_space<vmem>>, vector<1x64x32xf32>
    %240 = vector.shape_cast %239 : vector<1x64x32xf32> to vector<64x32xf32>
    %cst_90 = arith.constant dense<0.000000e+00> : vector<16x32xf32>
    %241 = tpu.matmul %238, %240, %cst_90 {dimension_numbers = #tpu.dot_dimension_numbers<[1], [0], [0], [1], [0, 0, 1, 1], [], []>} : vector<16x64xf32>, vector<64x32xf32>, vector<16x32xf32> -> vector<16x32xf32>
    %c0_91 = arith.constant 0 : index
    %c0_92 = arith.constant 0 : index
    %c0_93 = arith.constant 0 : index
    %242 = vector.load %arg13[%c0_91, %c0_92, %c0_93] : memref<2x1x32xf32, #tpu.memory_space<vmem>>, vector<1x1x32xf32>
    %243 = vector.shape_cast %242 : vector<1x1x32xf32> to vector<1x32xf32>
    %244 = vector.broadcast %243 : vector<1x32xf32> to vector<16x32xf32>
    %245 = arith.addf %241, %244 : vector<16x32xf32>
    %246 = arith.addf %245, %218 : vector<16x32xf32>
    %c0_94 = arith.constant 0 : index
    %c0_95 = arith.constant 0 : index
    %c0_96 = arith.constant 0 : index
    %247 = vector.load %arg14[%c0_94, %c0_95, %c0_96] : memref<2x1x32xf32, #tpu.memory_space<vmem>>, vector<1x1x32xf32>
    %248 = vector.shape_cast %247 : vector<1x1x32xf32> to vector<1x32xf32>
    %c0_97 = arith.constant 0 : index
    %c0_98 = arith.constant 0 : index
    %c0_99 = arith.constant 0 : index
    %249 = vector.load %arg15[%c0_97, %c0_98, %c0_99] : memref<2x1x32xf32, #tpu.memory_space<vmem>>, vector<1x1x32xf32>
    %250 = vector.shape_cast %249 : vector<1x1x32xf32> to vector<1x32xf32>
    %cst_100 = arith.constant dense<0.000000e+00> : vector<16xf32>
    %251 = vector.multi_reduction <add>, %246, %cst_100 [1] : vector<16x32xf32> to vector<16xf32>
    %252 = vector.shape_cast %251 : vector<16xf32> to vector<16x1xf32>
    %cst_101 = arith.constant 3.200000e+01 : f32
    %253 = vector.broadcast %cst_101 : f32 to vector<16x1xf32>
    %254 = arith.divf %252, %253 : vector<16x1xf32>
    %255 = vector.broadcast %254 : vector<16x1xf32> to vector<16x32xf32>
    %256 = arith.subf %246, %255 : vector<16x32xf32>
    %257 = arith.mulf %256, %256 : vector<16x32xf32>
    %cst_102 = arith.constant dense<0.000000e+00> : vector<16xf32>
    %258 = vector.multi_reduction <add>, %257, %cst_102 [1] : vector<16x32xf32> to vector<16xf32>
    %259 = vector.shape_cast %258 : vector<16xf32> to vector<16x1xf32>
    %cst_103 = arith.constant 3.200000e+01 : f32
    %260 = vector.broadcast %cst_103 : f32 to vector<16x1xf32>
    %261 = arith.divf %259, %260 : vector<16x1xf32>
    %262 = vector.broadcast %254 : vector<16x1xf32> to vector<16x32xf32>
    %263 = arith.subf %246, %262 : vector<16x32xf32>
    %cst_104 = arith.constant 9.99999996E-13 : f32
    %264 = vector.broadcast %cst_104 : f32 to vector<16x1xf32>
    %265 = arith.addf %261, %264 : vector<16x1xf32>
    %266 = math.rsqrt %265 : vector<16x1xf32>
    %267 = vector.broadcast %266 : vector<16x1xf32> to vector<16x32xf32>
    %268 = arith.mulf %263, %267 : vector<16x32xf32>
    %269 = vector.broadcast %248 : vector<1x32xf32> to vector<16x32xf32>
    %270 = arith.mulf %268, %269 : vector<16x32xf32>
    %271 = vector.broadcast %250 : vector<1x32xf32> to vector<16x32xf32>
    %272 = arith.addf %270, %271 : vector<16x32xf32>
    %c1 = arith.constant 1 : index
    %c0_105 = arith.constant 0 : index
    %c0_106 = arith.constant 0 : index
    %273 = vector.load %arg4[%c1, %c0_105, %c0_106] : memref<2x32x96xf32, #tpu.memory_space<vmem>>, vector<1x32x96xf32>
    %274 = vector.shape_cast %273 : vector<1x32x96xf32> to vector<32x96xf32>
    %cst_107 = arith.constant dense<0.000000e+00> : vector<16x96xf32>
    %275 = tpu.matmul %272, %274, %cst_107 {dimension_numbers = #tpu.dot_dimension_numbers<[1], [0], [0], [1], [0, 0, 1, 1], [], []>} : vector<16x32xf32>, vector<32x96xf32>, vector<16x96xf32> -> vector<16x96xf32>
    %c1_108 = arith.constant 1 : index
    %c0_109 = arith.constant 0 : index
    %c0_110 = arith.constant 0 : index
    %276 = vector.load %arg5[%c1_108, %c0_109, %c0_110] : memref<2x1x96xf32, #tpu.memory_space<vmem>>, vector<1x1x96xf32>
    %277 = vector.shape_cast %276 : vector<1x1x96xf32> to vector<1x96xf32>
    %278 = vector.broadcast %277 : vector<1x96xf32> to vector<16x96xf32>
    %279 = arith.addf %275, %278 : vector<16x96xf32>
    %280 = vector.extract_strided_slice %279 {offsets = [0, 0], sizes = [16, 32], strides = [1, 1]} : vector<16x96xf32> to vector<16x32xf32>
    %281 = vector.extract_strided_slice %279 {offsets = [0, 32], sizes = [16, 32], strides = [1, 1]} : vector<16x96xf32> to vector<16x32xf32>
    %282 = vector.extract_strided_slice %279 {offsets = [0, 64], sizes = [16, 32], strides = [1, 1]} : vector<16x96xf32> to vector<16x32xf32>
    %283 = vector.extract_strided_slice %25 {offsets = [0, 0], sizes = [1, 8], strides = [1, 1]} : vector<2x8xf32> to vector<1x8xf32>
    %284 = vector.extract_strided_slice %280 {offsets = [0, 0], sizes = [8, 8], strides = [1, 1]} : vector<16x32xf32> to vector<8x8xf32>
    %285 = vector.extract_strided_slice %281 {offsets = [0, 0], sizes = [8, 8], strides = [1, 1]} : vector<16x32xf32> to vector<8x8xf32>
    %286 = vector.extract_strided_slice %282 {offsets = [0, 0], sizes = [8, 8], strides = [1, 1]} : vector<16x32xf32> to vector<8x8xf32>
    %cst_111 = arith.constant dense<0.000000e+00> : vector<8x8xf32>
    %287 = tpu.matmul %284, %285, %cst_111 {dimension_numbers = #tpu.dot_dimension_numbers<[1], [1], [0], [0], [0, 0, 1, 0], [], []>} : vector<8x8xf32>, vector<8x8xf32>, vector<8x8xf32> -> vector<8x8xf32>
    %cst_112 = arith.constant 0.353553385 : f32
    %288 = vector.broadcast %cst_112 : f32 to vector<8x8xf32>
    %289 = arith.mulf %287, %288 : vector<8x8xf32>
    %290 = vector.broadcast %283 : vector<1x8xf32> to vector<8x8xf32>
    %291 = arith.addf %289, %290 : vector<8x8xf32>
    %cst_113 = arith.constant dense<0xFF800000> : vector<8xf32>
    %292 = vector.multi_reduction <maximumf>, %291, %cst_113 [1] : vector<8x8xf32> to vector<8xf32>
    %293 = vector.shape_cast %292 : vector<8xf32> to vector<8x1xf32>
    %294 = vector.broadcast %293 : vector<8x1xf32> to vector<8x8xf32>
    %295 = arith.subf %291, %294 : vector<8x8xf32>
    %296 = math.exp %295 : vector<8x8xf32>
    %cst_114 = arith.constant dense<0.000000e+00> : vector<8xf32>
    %297 = vector.multi_reduction <add>, %296, %cst_114 [1] : vector<8x8xf32> to vector<8xf32>
    %298 = vector.shape_cast %297 : vector<8xf32> to vector<8x1xf32>
    %299 = vector.broadcast %298 : vector<8x1xf32> to vector<8x8xf32>
    %300 = arith.divf %296, %299 : vector<8x8xf32>
    %cst_115 = arith.constant dense<0.000000e+00> : vector<8x8xf32>
    %301 = tpu.matmul %300, %286, %cst_115 {dimension_numbers = #tpu.dot_dimension_numbers<[1], [0], [0], [1], [0, 0, 1, 1], [], []>} : vector<8x8xf32>, vector<8x8xf32>, vector<8x8xf32> -> vector<8x8xf32>
    %302 = vector.extract_strided_slice %280 {offsets = [0, 8], sizes = [8, 8], strides = [1, 1]} : vector<16x32xf32> to vector<8x8xf32>
    %303 = vector.extract_strided_slice %281 {offsets = [0, 8], sizes = [8, 8], strides = [1, 1]} : vector<16x32xf32> to vector<8x8xf32>
    %304 = vector.extract_strided_slice %282 {offsets = [0, 8], sizes = [8, 8], strides = [1, 1]} : vector<16x32xf32> to vector<8x8xf32>
    %cst_116 = arith.constant dense<0.000000e+00> : vector<8x8xf32>
    %305 = tpu.matmul %302, %303, %cst_116 {dimension_numbers = #tpu.dot_dimension_numbers<[1], [1], [0], [0], [0, 0, 1, 0], [], []>} : vector<8x8xf32>, vector<8x8xf32>, vector<8x8xf32> -> vector<8x8xf32>
    %cst_117 = arith.constant 0.353553385 : f32
    %306 = vector.broadcast %cst_117 : f32 to vector<8x8xf32>
    %307 = arith.mulf %305, %306 : vector<8x8xf32>
    %308 = vector.broadcast %283 : vector<1x8xf32> to vector<8x8xf32>
    %309 = arith.addf %307, %308 : vector<8x8xf32>
    %cst_118 = arith.constant dense<0xFF800000> : vector<8xf32>
    %310 = vector.multi_reduction <maximumf>, %309, %cst_118 [1] : vector<8x8xf32> to vector<8xf32>
    %311 = vector.shape_cast %310 : vector<8xf32> to vector<8x1xf32>
    %312 = vector.broadcast %311 : vector<8x1xf32> to vector<8x8xf32>
    %313 = arith.subf %309, %312 : vector<8x8xf32>
    %314 = math.exp %313 : vector<8x8xf32>
    %cst_119 = arith.constant dense<0.000000e+00> : vector<8xf32>
    %315 = vector.multi_reduction <add>, %314, %cst_119 [1] : vector<8x8xf32> to vector<8xf32>
    %316 = vector.shape_cast %315 : vector<8xf32> to vector<8x1xf32>
    %317 = vector.broadcast %316 : vector<8x1xf32> to vector<8x8xf32>
    %318 = arith.divf %314, %317 : vector<8x8xf32>
    %cst_120 = arith.constant dense<0.000000e+00> : vector<8x8xf32>
    %319 = tpu.matmul %318, %304, %cst_120 {dimension_numbers = #tpu.dot_dimension_numbers<[1], [0], [0], [1], [0, 0, 1, 1], [], []>} : vector<8x8xf32>, vector<8x8xf32>, vector<8x8xf32> -> vector<8x8xf32>
    %320 = vector.extract_strided_slice %280 {offsets = [0, 16], sizes = [8, 8], strides = [1, 1]} : vector<16x32xf32> to vector<8x8xf32>
    %321 = vector.extract_strided_slice %281 {offsets = [0, 16], sizes = [8, 8], strides = [1, 1]} : vector<16x32xf32> to vector<8x8xf32>
    %322 = vector.extract_strided_slice %282 {offsets = [0, 16], sizes = [8, 8], strides = [1, 1]} : vector<16x32xf32> to vector<8x8xf32>
    %cst_121 = arith.constant dense<0.000000e+00> : vector<8x8xf32>
    %323 = tpu.matmul %320, %321, %cst_121 {dimension_numbers = #tpu.dot_dimension_numbers<[1], [1], [0], [0], [0, 0, 1, 0], [], []>} : vector<8x8xf32>, vector<8x8xf32>, vector<8x8xf32> -> vector<8x8xf32>
    %cst_122 = arith.constant 0.353553385 : f32
    %324 = vector.broadcast %cst_122 : f32 to vector<8x8xf32>
    %325 = arith.mulf %323, %324 : vector<8x8xf32>
    %326 = vector.broadcast %283 : vector<1x8xf32> to vector<8x8xf32>
    %327 = arith.addf %325, %326 : vector<8x8xf32>
    %cst_123 = arith.constant dense<0xFF800000> : vector<8xf32>
    %328 = vector.multi_reduction <maximumf>, %327, %cst_123 [1] : vector<8x8xf32> to vector<8xf32>
    %329 = vector.shape_cast %328 : vector<8xf32> to vector<8x1xf32>
    %330 = vector.broadcast %329 : vector<8x1xf32> to vector<8x8xf32>
    %331 = arith.subf %327, %330 : vector<8x8xf32>
    %332 = math.exp %331 : vector<8x8xf32>
    %cst_124 = arith.constant dense<0.000000e+00> : vector<8xf32>
    %333 = vector.multi_reduction <add>, %332, %cst_124 [1] : vector<8x8xf32> to vector<8xf32>
    %334 = vector.shape_cast %333 : vector<8xf32> to vector<8x1xf32>
    %335 = vector.broadcast %334 : vector<8x1xf32> to vector<8x8xf32>
    %336 = arith.divf %332, %335 : vector<8x8xf32>
    %cst_125 = arith.constant dense<0.000000e+00> : vector<8x8xf32>
    %337 = tpu.matmul %336, %322, %cst_125 {dimension_numbers = #tpu.dot_dimension_numbers<[1], [0], [0], [1], [0, 0, 1, 1], [], []>} : vector<8x8xf32>, vector<8x8xf32>, vector<8x8xf32> -> vector<8x8xf32>
    %338 = vector.extract_strided_slice %280 {offsets = [0, 24], sizes = [8, 8], strides = [1, 1]} : vector<16x32xf32> to vector<8x8xf32>
    %339 = vector.extract_strided_slice %281 {offsets = [0, 24], sizes = [8, 8], strides = [1, 1]} : vector<16x32xf32> to vector<8x8xf32>
    %340 = vector.extract_strided_slice %282 {offsets = [0, 24], sizes = [8, 8], strides = [1, 1]} : vector<16x32xf32> to vector<8x8xf32>
    %cst_126 = arith.constant dense<0.000000e+00> : vector<8x8xf32>
    %341 = tpu.matmul %338, %339, %cst_126 {dimension_numbers = #tpu.dot_dimension_numbers<[1], [1], [0], [0], [0, 0, 1, 0], [], []>} : vector<8x8xf32>, vector<8x8xf32>, vector<8x8xf32> -> vector<8x8xf32>
    %cst_127 = arith.constant 0.353553385 : f32
    %342 = vector.broadcast %cst_127 : f32 to vector<8x8xf32>
    %343 = arith.mulf %341, %342 : vector<8x8xf32>
    %344 = vector.broadcast %283 : vector<1x8xf32> to vector<8x8xf32>
    %345 = arith.addf %343, %344 : vector<8x8xf32>
    %cst_128 = arith.constant dense<0xFF800000> : vector<8xf32>
    %346 = vector.multi_reduction <maximumf>, %345, %cst_128 [1] : vector<8x8xf32> to vector<8xf32>
    %347 = vector.shape_cast %346 : vector<8xf32> to vector<8x1xf32>
    %348 = vector.broadcast %347 : vector<8x1xf32> to vector<8x8xf32>
    %349 = arith.subf %345, %348 : vector<8x8xf32>
    %350 = math.exp %349 : vector<8x8xf32>
    %cst_129 = arith.constant dense<0.000000e+00> : vector<8xf32>
    %351 = vector.multi_reduction <add>, %350, %cst_129 [1] : vector<8x8xf32> to vector<8xf32>
    %352 = vector.shape_cast %351 : vector<8xf32> to vector<8x1xf32>
    %353 = vector.broadcast %352 : vector<8x1xf32> to vector<8x8xf32>
    %354 = arith.divf %350, %353 : vector<8x8xf32>
    %cst_130 = arith.constant dense<0.000000e+00> : vector<8x8xf32>
    %355 = tpu.matmul %354, %340, %cst_130 {dimension_numbers = #tpu.dot_dimension_numbers<[1], [0], [0], [1], [0, 0, 1, 1], [], []>} : vector<8x8xf32>, vector<8x8xf32>, vector<8x8xf32> -> vector<8x8xf32>
    %356 = tpu.concatenate %301, %319, %337, %355 in 1 : vector<8x8xf32>, vector<8x8xf32>, vector<8x8xf32>, vector<8x8xf32> -> vector<8x32xf32>
    %357 = vector.extract_strided_slice %25 {offsets = [1, 0], sizes = [1, 8], strides = [1, 1]} : vector<2x8xf32> to vector<1x8xf32>
    %358 = vector.extract_strided_slice %280 {offsets = [8, 0], sizes = [8, 8], strides = [1, 1]} : vector<16x32xf32> to vector<8x8xf32>
    %359 = vector.extract_strided_slice %281 {offsets = [8, 0], sizes = [8, 8], strides = [1, 1]} : vector<16x32xf32> to vector<8x8xf32>
    %360 = vector.extract_strided_slice %282 {offsets = [8, 0], sizes = [8, 8], strides = [1, 1]} : vector<16x32xf32> to vector<8x8xf32>
    %cst_131 = arith.constant dense<0.000000e+00> : vector<8x8xf32>
    %361 = tpu.matmul %358, %359, %cst_131 {dimension_numbers = #tpu.dot_dimension_numbers<[1], [1], [0], [0], [0, 0, 1, 0], [], []>} : vector<8x8xf32>, vector<8x8xf32>, vector<8x8xf32> -> vector<8x8xf32>
    %cst_132 = arith.constant 0.353553385 : f32
    %362 = vector.broadcast %cst_132 : f32 to vector<8x8xf32>
    %363 = arith.mulf %361, %362 : vector<8x8xf32>
    %364 = vector.broadcast %357 : vector<1x8xf32> to vector<8x8xf32>
    %365 = arith.addf %363, %364 : vector<8x8xf32>
    %cst_133 = arith.constant dense<0xFF800000> : vector<8xf32>
    %366 = vector.multi_reduction <maximumf>, %365, %cst_133 [1] : vector<8x8xf32> to vector<8xf32>
    %367 = vector.shape_cast %366 : vector<8xf32> to vector<8x1xf32>
    %368 = vector.broadcast %367 : vector<8x1xf32> to vector<8x8xf32>
    %369 = arith.subf %365, %368 : vector<8x8xf32>
    %370 = math.exp %369 : vector<8x8xf32>
    %cst_134 = arith.constant dense<0.000000e+00> : vector<8xf32>
    %371 = vector.multi_reduction <add>, %370, %cst_134 [1] : vector<8x8xf32> to vector<8xf32>
    %372 = vector.shape_cast %371 : vector<8xf32> to vector<8x1xf32>
    %373 = vector.broadcast %372 : vector<8x1xf32> to vector<8x8xf32>
    %374 = arith.divf %370, %373 : vector<8x8xf32>
    %cst_135 = arith.constant dense<0.000000e+00> : vector<8x8xf32>
    %375 = tpu.matmul %374, %360, %cst_135 {dimension_numbers = #tpu.dot_dimension_numbers<[1], [0], [0], [1], [0, 0, 1, 1], [], []>} : vector<8x8xf32>, vector<8x8xf32>, vector<8x8xf32> -> vector<8x8xf32>
    %376 = vector.extract_strided_slice %280 {offsets = [8, 8], sizes = [8, 8], strides = [1, 1]} : vector<16x32xf32> to vector<8x8xf32>
    %377 = vector.extract_strided_slice %281 {offsets = [8, 8], sizes = [8, 8], strides = [1, 1]} : vector<16x32xf32> to vector<8x8xf32>
    %378 = vector.extract_strided_slice %282 {offsets = [8, 8], sizes = [8, 8], strides = [1, 1]} : vector<16x32xf32> to vector<8x8xf32>
    %cst_136 = arith.constant dense<0.000000e+00> : vector<8x8xf32>
    %379 = tpu.matmul %376, %377, %cst_136 {dimension_numbers = #tpu.dot_dimension_numbers<[1], [1], [0], [0], [0, 0, 1, 0], [], []>} : vector<8x8xf32>, vector<8x8xf32>, vector<8x8xf32> -> vector<8x8xf32>
    %cst_137 = arith.constant 0.353553385 : f32
    %380 = vector.broadcast %cst_137 : f32 to vector<8x8xf32>
    %381 = arith.mulf %379, %380 : vector<8x8xf32>
    %382 = vector.broadcast %357 : vector<1x8xf32> to vector<8x8xf32>
    %383 = arith.addf %381, %382 : vector<8x8xf32>
    %cst_138 = arith.constant dense<0xFF800000> : vector<8xf32>
    %384 = vector.multi_reduction <maximumf>, %383, %cst_138 [1] : vector<8x8xf32> to vector<8xf32>
    %385 = vector.shape_cast %384 : vector<8xf32> to vector<8x1xf32>
    %386 = vector.broadcast %385 : vector<8x1xf32> to vector<8x8xf32>
    %387 = arith.subf %383, %386 : vector<8x8xf32>
    %388 = math.exp %387 : vector<8x8xf32>
    %cst_139 = arith.constant dense<0.000000e+00> : vector<8xf32>
    %389 = vector.multi_reduction <add>, %388, %cst_139 [1] : vector<8x8xf32> to vector<8xf32>
    %390 = vector.shape_cast %389 : vector<8xf32> to vector<8x1xf32>
    %391 = vector.broadcast %390 : vector<8x1xf32> to vector<8x8xf32>
    %392 = arith.divf %388, %391 : vector<8x8xf32>
    %cst_140 = arith.constant dense<0.000000e+00> : vector<8x8xf32>
    %393 = tpu.matmul %392, %378, %cst_140 {dimension_numbers = #tpu.dot_dimension_numbers<[1], [0], [0], [1], [0, 0, 1, 1], [], []>} : vector<8x8xf32>, vector<8x8xf32>, vector<8x8xf32> -> vector<8x8xf32>
    %394 = vector.extract_strided_slice %280 {offsets = [8, 16], sizes = [8, 8], strides = [1, 1]} : vector<16x32xf32> to vector<8x8xf32>
    %395 = vector.extract_strided_slice %281 {offsets = [8, 16], sizes = [8, 8], strides = [1, 1]} : vector<16x32xf32> to vector<8x8xf32>
    %396 = vector.extract_strided_slice %282 {offsets = [8, 16], sizes = [8, 8], strides = [1, 1]} : vector<16x32xf32> to vector<8x8xf32>
    %cst_141 = arith.constant dense<0.000000e+00> : vector<8x8xf32>
    %397 = tpu.matmul %394, %395, %cst_141 {dimension_numbers = #tpu.dot_dimension_numbers<[1], [1], [0], [0], [0, 0, 1, 0], [], []>} : vector<8x8xf32>, vector<8x8xf32>, vector<8x8xf32> -> vector<8x8xf32>
    %cst_142 = arith.constant 0.353553385 : f32
    %398 = vector.broadcast %cst_142 : f32 to vector<8x8xf32>
    %399 = arith.mulf %397, %398 : vector<8x8xf32>
    %400 = vector.broadcast %357 : vector<1x8xf32> to vector<8x8xf32>
    %401 = arith.addf %399, %400 : vector<8x8xf32>
    %cst_143 = arith.constant dense<0xFF800000> : vector<8xf32>
    %402 = vector.multi_reduction <maximumf>, %401, %cst_143 [1] : vector<8x8xf32> to vector<8xf32>
    %403 = vector.shape_cast %402 : vector<8xf32> to vector<8x1xf32>
    %404 = vector.broadcast %403 : vector<8x1xf32> to vector<8x8xf32>
    %405 = arith.subf %401, %404 : vector<8x8xf32>
    %406 = math.exp %405 : vector<8x8xf32>
    %cst_144 = arith.constant dense<0.000000e+00> : vector<8xf32>
    %407 = vector.multi_reduction <add>, %406, %cst_144 [1] : vector<8x8xf32> to vector<8xf32>
    %408 = vector.shape_cast %407 : vector<8xf32> to vector<8x1xf32>
    %409 = vector.broadcast %408 : vector<8x1xf32> to vector<8x8xf32>
    %410 = arith.divf %406, %409 : vector<8x8xf32>
    %cst_145 = arith.constant dense<0.000000e+00> : vector<8x8xf32>
    %411 = tpu.matmul %410, %396, %cst_145 {dimension_numbers = #tpu.dot_dimension_numbers<[1], [0], [0], [1], [0, 0, 1, 1], [], []>} : vector<8x8xf32>, vector<8x8xf32>, vector<8x8xf32> -> vector<8x8xf32>
    %412 = vector.extract_strided_slice %280 {offsets = [8, 24], sizes = [8, 8], strides = [1, 1]} : vector<16x32xf32> to vector<8x8xf32>
    %413 = vector.extract_strided_slice %281 {offsets = [8, 24], sizes = [8, 8], strides = [1, 1]} : vector<16x32xf32> to vector<8x8xf32>
    %414 = vector.extract_strided_slice %282 {offsets = [8, 24], sizes = [8, 8], strides = [1, 1]} : vector<16x32xf32> to vector<8x8xf32>
    %cst_146 = arith.constant dense<0.000000e+00> : vector<8x8xf32>
    %415 = tpu.matmul %412, %413, %cst_146 {dimension_numbers = #tpu.dot_dimension_numbers<[1], [1], [0], [0], [0, 0, 1, 0], [], []>} : vector<8x8xf32>, vector<8x8xf32>, vector<8x8xf32> -> vector<8x8xf32>
    %cst_147 = arith.constant 0.353553385 : f32
    %416 = vector.broadcast %cst_147 : f32 to vector<8x8xf32>
    %417 = arith.mulf %415, %416 : vector<8x8xf32>
    %418 = vector.broadcast %357 : vector<1x8xf32> to vector<8x8xf32>
    %419 = arith.addf %417, %418 : vector<8x8xf32>
    %cst_148 = arith.constant dense<0xFF800000> : vector<8xf32>
    %420 = vector.multi_reduction <maximumf>, %419, %cst_148 [1] : vector<8x8xf32> to vector<8xf32>
    %421 = vector.shape_cast %420 : vector<8xf32> to vector<8x1xf32>
    %422 = vector.broadcast %421 : vector<8x1xf32> to vector<8x8xf32>
    %423 = arith.subf %419, %422 : vector<8x8xf32>
    %424 = math.exp %423 : vector<8x8xf32>
    %cst_149 = arith.constant dense<0.000000e+00> : vector<8xf32>
    %425 = vector.multi_reduction <add>, %424, %cst_149 [1] : vector<8x8xf32> to vector<8xf32>
    %426 = vector.shape_cast %425 : vector<8xf32> to vector<8x1xf32>
    %427 = vector.broadcast %426 : vector<8x1xf32> to vector<8x8xf32>
    %428 = arith.divf %424, %427 : vector<8x8xf32>
    %cst_150 = arith.constant dense<0.000000e+00> : vector<8x8xf32>
    %429 = tpu.matmul %428, %414, %cst_150 {dimension_numbers = #tpu.dot_dimension_numbers<[1], [0], [0], [1], [0, 0, 1, 1], [], []>} : vector<8x8xf32>, vector<8x8xf32>, vector<8x8xf32> -> vector<8x8xf32>
    %430 = tpu.concatenate %375, %393, %411, %429 in 1 : vector<8x8xf32>, vector<8x8xf32>, vector<8x8xf32>, vector<8x8xf32> -> vector<8x32xf32>
    %431 = tpu.concatenate %356, %430 in 0 : vector<8x32xf32>, vector<8x32xf32> -> vector<16x32xf32>
    %c1_151 = arith.constant 1 : index
    %c0_152 = arith.constant 0 : index
    %c0_153 = arith.constant 0 : index
    %432 = vector.load %arg6[%c1_151, %c0_152, %c0_153] : memref<2x32x32xf32, #tpu.memory_space<vmem>>, vector<1x32x32xf32>
    %433 = vector.shape_cast %432 : vector<1x32x32xf32> to vector<32x32xf32>
    %cst_154 = arith.constant dense<0.000000e+00> : vector<16x32xf32>
    %434 = tpu.matmul %431, %433, %cst_154 {dimension_numbers = #tpu.dot_dimension_numbers<[1], [0], [0], [1], [0, 0, 1, 1], [], []>} : vector<16x32xf32>, vector<32x32xf32>, vector<16x32xf32> -> vector<16x32xf32>
    %c1_155 = arith.constant 1 : index
    %c0_156 = arith.constant 0 : index
    %c0_157 = arith.constant 0 : index
    %435 = vector.load %arg7[%c1_155, %c0_156, %c0_157] : memref<2x1x32xf32, #tpu.memory_space<vmem>>, vector<1x1x32xf32>
    %436 = vector.shape_cast %435 : vector<1x1x32xf32> to vector<1x32xf32>
    %437 = vector.broadcast %436 : vector<1x32xf32> to vector<16x32xf32>
    %438 = arith.addf %434, %437 : vector<16x32xf32>
    %439 = arith.addf %438, %272 : vector<16x32xf32>
    %c1_158 = arith.constant 1 : index
    %c0_159 = arith.constant 0 : index
    %c0_160 = arith.constant 0 : index
    %440 = vector.load %arg8[%c1_158, %c0_159, %c0_160] : memref<2x1x32xf32, #tpu.memory_space<vmem>>, vector<1x1x32xf32>
    %441 = vector.shape_cast %440 : vector<1x1x32xf32> to vector<1x32xf32>
    %c1_161 = arith.constant 1 : index
    %c0_162 = arith.constant 0 : index
    %c0_163 = arith.constant 0 : index
    %442 = vector.load %arg9[%c1_161, %c0_162, %c0_163] : memref<2x1x32xf32, #tpu.memory_space<vmem>>, vector<1x1x32xf32>
    %443 = vector.shape_cast %442 : vector<1x1x32xf32> to vector<1x32xf32>
    %cst_164 = arith.constant dense<0.000000e+00> : vector<16xf32>
    %444 = vector.multi_reduction <add>, %439, %cst_164 [1] : vector<16x32xf32> to vector<16xf32>
    %445 = vector.shape_cast %444 : vector<16xf32> to vector<16x1xf32>
    %cst_165 = arith.constant 3.200000e+01 : f32
    %446 = vector.broadcast %cst_165 : f32 to vector<16x1xf32>
    %447 = arith.divf %445, %446 : vector<16x1xf32>
    %448 = vector.broadcast %447 : vector<16x1xf32> to vector<16x32xf32>
    %449 = arith.subf %439, %448 : vector<16x32xf32>
    %450 = arith.mulf %449, %449 : vector<16x32xf32>
    %cst_166 = arith.constant dense<0.000000e+00> : vector<16xf32>
    %451 = vector.multi_reduction <add>, %450, %cst_166 [1] : vector<16x32xf32> to vector<16xf32>
    %452 = vector.shape_cast %451 : vector<16xf32> to vector<16x1xf32>
    %cst_167 = arith.constant 3.200000e+01 : f32
    %453 = vector.broadcast %cst_167 : f32 to vector<16x1xf32>
    %454 = arith.divf %452, %453 : vector<16x1xf32>
    %455 = vector.broadcast %447 : vector<16x1xf32> to vector<16x32xf32>
    %456 = arith.subf %439, %455 : vector<16x32xf32>
    %cst_168 = arith.constant 9.99999996E-13 : f32
    %457 = vector.broadcast %cst_168 : f32 to vector<16x1xf32>
    %458 = arith.addf %454, %457 : vector<16x1xf32>
    %459 = math.rsqrt %458 : vector<16x1xf32>
    %460 = vector.broadcast %459 : vector<16x1xf32> to vector<16x32xf32>
    %461 = arith.mulf %456, %460 : vector<16x32xf32>
    %462 = vector.broadcast %441 : vector<1x32xf32> to vector<16x32xf32>
    %463 = arith.mulf %461, %462 : vector<16x32xf32>
    %464 = vector.broadcast %443 : vector<1x32xf32> to vector<16x32xf32>
    %465 = arith.addf %463, %464 : vector<16x32xf32>
    %c1_169 = arith.constant 1 : index
    %c0_170 = arith.constant 0 : index
    %c0_171 = arith.constant 0 : index
    %466 = vector.load %arg10[%c1_169, %c0_170, %c0_171] : memref<2x32x64xf32, #tpu.memory_space<vmem>>, vector<1x32x64xf32>
    %467 = vector.shape_cast %466 : vector<1x32x64xf32> to vector<32x64xf32>
    %cst_172 = arith.constant dense<0.000000e+00> : vector<16x64xf32>
    %468 = tpu.matmul %465, %467, %cst_172 {dimension_numbers = #tpu.dot_dimension_numbers<[1], [0], [0], [1], [0, 0, 1, 1], [], []>} : vector<16x32xf32>, vector<32x64xf32>, vector<16x64xf32> -> vector<16x64xf32>
    %c1_173 = arith.constant 1 : index
    %c0_174 = arith.constant 0 : index
    %c0_175 = arith.constant 0 : index
    %469 = vector.load %arg11[%c1_173, %c0_174, %c0_175] : memref<2x1x64xf32, #tpu.memory_space<vmem>>, vector<1x1x64xf32>
    %470 = vector.shape_cast %469 : vector<1x1x64xf32> to vector<1x64xf32>
    %471 = vector.broadcast %470 : vector<1x64xf32> to vector<16x64xf32>
    %472 = arith.addf %468, %471 : vector<16x64xf32>
    %cst_176 = arith.constant 5.000000e-01 : f32
    %473 = vector.broadcast %cst_176 : f32 to vector<16x64xf32>
    %474 = arith.mulf %473, %472 : vector<16x64xf32>
    %cst_177 = arith.constant 4.471500e-02 : f32
    %475 = vector.broadcast %cst_177 : f32 to vector<16x64xf32>
    %476 = arith.mulf %475, %472 : vector<16x64xf32>
    %477 = arith.mulf %476, %472 : vector<16x64xf32>
    %478 = arith.mulf %477, %472 : vector<16x64xf32>
    %479 = arith.addf %472, %478 : vector<16x64xf32>
    %cst_178 = arith.constant 0.797884583 : f32
    %480 = vector.broadcast %cst_178 : f32 to vector<16x64xf32>
    %481 = arith.mulf %480, %479 : vector<16x64xf32>
    %482 = math.tanh %481 : vector<16x64xf32>
    %cst_179 = arith.constant 1.000000e+00 : f32
    %483 = vector.broadcast %cst_179 : f32 to vector<16x64xf32>
    %484 = arith.addf %483, %482 : vector<16x64xf32>
    %485 = arith.mulf %474, %484 : vector<16x64xf32>
    %c1_180 = arith.constant 1 : index
    %c0_181 = arith.constant 0 : index
    %c0_182 = arith.constant 0 : index
    %486 = vector.load %arg12[%c1_180, %c0_181, %c0_182] : memref<2x64x32xf32, #tpu.memory_space<vmem>>, vector<1x64x32xf32>
    %487 = vector.shape_cast %486 : vector<1x64x32xf32> to vector<64x32xf32>
    %cst_183 = arith.constant dense<0.000000e+00> : vector<16x32xf32>
    %488 = tpu.matmul %485, %487, %cst_183 {dimension_numbers = #tpu.dot_dimension_numbers<[1], [0], [0], [1], [0, 0, 1, 1], [], []>} : vector<16x64xf32>, vector<64x32xf32>, vector<16x32xf32> -> vector<16x32xf32>
    %c1_184 = arith.constant 1 : index
    %c0_185 = arith.constant 0 : index
    %c0_186 = arith.constant 0 : index
    %489 = vector.load %arg13[%c1_184, %c0_185, %c0_186] : memref<2x1x32xf32, #tpu.memory_space<vmem>>, vector<1x1x32xf32>
    %490 = vector.shape_cast %489 : vector<1x1x32xf32> to vector<1x32xf32>
    %491 = vector.broadcast %490 : vector<1x32xf32> to vector<16x32xf32>
    %492 = arith.addf %488, %491 : vector<16x32xf32>
    %493 = arith.addf %492, %465 : vector<16x32xf32>
    %c1_187 = arith.constant 1 : index
    %c0_188 = arith.constant 0 : index
    %c0_189 = arith.constant 0 : index
    %494 = vector.load %arg14[%c1_187, %c0_188, %c0_189] : memref<2x1x32xf32, #tpu.memory_space<vmem>>, vector<1x1x32xf32>
    %495 = vector.shape_cast %494 : vector<1x1x32xf32> to vector<1x32xf32>
    %c1_190 = arith.constant 1 : index
    %c0_191 = arith.constant 0 : index
    %c0_192 = arith.constant 0 : index
    %496 = vector.load %arg15[%c1_190, %c0_191, %c0_192] : memref<2x1x32xf32, #tpu.memory_space<vmem>>, vector<1x1x32xf32>
    %497 = vector.shape_cast %496 : vector<1x1x32xf32> to vector<1x32xf32>
    %cst_193 = arith.constant dense<0.000000e+00> : vector<16xf32>
    %498 = vector.multi_reduction <add>, %493, %cst_193 [1] : vector<16x32xf32> to vector<16xf32>
    %499 = vector.shape_cast %498 : vector<16xf32> to vector<16x1xf32>
    %cst_194 = arith.constant 3.200000e+01 : f32
    %500 = vector.broadcast %cst_194 : f32 to vector<16x1xf32>
    %501 = arith.divf %499, %500 : vector<16x1xf32>
    %502 = vector.broadcast %501 : vector<16x1xf32> to vector<16x32xf32>
    %503 = arith.subf %493, %502 : vector<16x32xf32>
    %504 = arith.mulf %503, %503 : vector<16x32xf32>
    %cst_195 = arith.constant dense<0.000000e+00> : vector<16xf32>
    %505 = vector.multi_reduction <add>, %504, %cst_195 [1] : vector<16x32xf32> to vector<16xf32>
    %506 = vector.shape_cast %505 : vector<16xf32> to vector<16x1xf32>
    %cst_196 = arith.constant 3.200000e+01 : f32
    %507 = vector.broadcast %cst_196 : f32 to vector<16x1xf32>
    %508 = arith.divf %506, %507 : vector<16x1xf32>
    %509 = vector.broadcast %501 : vector<16x1xf32> to vector<16x32xf32>
    %510 = arith.subf %493, %509 : vector<16x32xf32>
    %cst_197 = arith.constant 9.99999996E-13 : f32
    %511 = vector.broadcast %cst_197 : f32 to vector<16x1xf32>
    %512 = arith.addf %508, %511 : vector<16x1xf32>
    %513 = math.rsqrt %512 : vector<16x1xf32>
    %514 = vector.broadcast %513 : vector<16x1xf32> to vector<16x32xf32>
    %515 = arith.mulf %510, %514 : vector<16x32xf32>
    %516 = vector.broadcast %495 : vector<1x32xf32> to vector<16x32xf32>
    %517 = arith.mulf %515, %516 : vector<16x32xf32>
    %518 = vector.broadcast %497 : vector<1x32xf32> to vector<16x32xf32>
    %519 = arith.addf %517, %518 : vector<16x32xf32>
    %520 = vector.extract_strided_slice %519 {offsets = [0, 0], sizes = [1, 32], strides = [1, 1]} : vector<16x32xf32> to vector<1x32xf32>
    %521 = vector.extract_strided_slice %519 {offsets = [8, 0], sizes = [1, 32], strides = [1, 1]} : vector<16x32xf32> to vector<1x32xf32>
    %522 = tpu.concatenate %520, %521 in 0 : vector<1x32xf32>, vector<1x32xf32> -> vector<2x32xf32>
    %c0_198 = arith.constant 0 : index
    %c0_199 = arith.constant 0 : index
    %523 = vector.load %arg16[%c0_198, %c0_199] : memref<32x32xf32, #tpu.memory_space<vmem>>, vector<32x32xf32>
    %cst_200 = arith.constant dense<0.000000e+00> : vector<2x32xf32>
    %524 = tpu.matmul %522, %523, %cst_200 {dimension_numbers = #tpu.dot_dimension_numbers<[1], [0], [0], [1], [0, 0, 1, 1], [], []>} : vector<2x32xf32>, vector<32x32xf32>, vector<2x32xf32> -> vector<2x32xf32>
    %c0_201 = arith.constant 0 : index
    %c0_202 = arith.constant 0 : index
    %525 = vector.load %arg17[%c0_201, %c0_202] : memref<1x32xf32, #tpu.memory_space<vmem>>, vector<1x32xf32>
    %526 = vector.broadcast %525 : vector<1x32xf32> to vector<2x32xf32>
    %527 = arith.addf %524, %526 : vector<2x32xf32>
    %528 = math.tanh %527 : vector<2x32xf32>
    %c0_203 = arith.constant 0 : index
    %c0_204 = arith.constant 0 : index
    %529 = vector.load %arg18[%c0_203, %c0_204] : memref<32x1xf32, #tpu.memory_space<vmem>>, vector<32x1xf32>
    %cst_205 = arith.constant dense<0.000000e+00> : vector<2x1xf32>
    %530 = tpu.matmul %528, %529, %cst_205 {dimension_numbers = #tpu.dot_dimension_numbers<[1], [0], [0], [1], [0, 0, 1, 1], [], []>} : vector<2x32xf32>, vector<32x1xf32>, vector<2x1xf32> -> vector<2x1xf32>
    %c0_206 = arith.constant 0 : index
    %c0_207 = arith.constant 0 : index
    %531 = vector.load %arg19[%c0_206, %c0_207] : memref<1x1xf32, #tpu.memory_space<vmem>>, vector<1x1xf32>
    %532 = vector.broadcast %531 : vector<1x1xf32> to vector<2x1xf32>
    %533 = arith.addf %530, %532 : vector<2x1xf32>
    %c0_208 = arith.constant 0 : index
    %c0_209 = arith.constant 0 : index
    %534 = vector.load %arg20[%c0_208, %c0_209] : memref<2x1xf32, #tpu.memory_space<vmem>>, vector<2x1xf32>
    tpu.vector_store %arg20[%c0_208, %c0_209], %533 {strides = array<i32>} : memref<2x1xf32, #tpu.memory_space<vmem>>, vector<2x1xf32>,
    return
  }
}

</mosaic_0001>

<bundles_post_ra>
// kernel: tpu_custom_call.1
= control target key start
LH: loop header
LB: loop body
LE: loop exit
PB: predicated region body
PF: predicated region fallthrough
CT: control target
= control target key end

     0   :  { %s6060_s0 = inlined_call_operand.hbm [shape: f32[16,32], index: 0, kind: input, shape index: {}]   ;;  %s6061_s1 = inlined_call_operand.hbm [shape: f32[2,8], index: 1, kind: input, shape index: {}]   ;;  %s6062_s2 = inlined_call_operand.vmem [shape: f32[1,32], index: 2, kind: input, shape index: {}]   ;;  %s6063_s3 = inlined_call_operand.hbm [shape: f32[1,32], index: 3, kind: input, shape index: {}]   ;;  %s6064_s4 = inlined_call_operand.vmem [shape: f32[2,32,96], index: 4, kind: input, shape index: {}]   ;;  %s6065_s5 = inlined_call_operand.hbm [shape: f32[2,1,96], index: 5, kind: input, shape index: {}]   ;;  %s6066_s6 = inlined_call_operand.vmem [shape: f32[2,32,32], index: 6, kind: input, shape index: {}]   ;;  %s6067_s7 = inlined_call_operand.hbm [shape: f32[2,1,32], index: 7, kind: input, shape index: {}]   ;;  %s6068_s8 = inlined_call_operand.hbm [shape: f32[2,1,32], index: 8, kind: input, shape index: {}]   ;;  %s6069_s9 = inlined_call_operand.hbm [shape: f32[2,1,32], index: 9, kind: input, shape index: {}]   ;;  %s6070_s10 = inlined_call_operand.vmem [shape: f32[2,32,64], index: 10, kind: input, shape index: {}]   ;;  %s6071_s11 = inlined_call_operand.hbm [shape: f32[2,1,64], index: 11, kind: input, shape index: {}]   ;;  %s6072_s12 = inlined_call_operand.vmem [shape: f32[2,64,32], index: 12, kind: input, shape index: {}]   ;;  %s6073_s13 = inlined_call_operand.hbm [shape: f32[2,1,32], index: 13, kind: input, shape index: {}]   ;;  %s6074_s14 = inlined_call_operand.hbm [shape: f32[2,1,32], index: 14, kind: input, shape index: {}]   ;;  %s6075_s15 = inlined_call_operand.hbm [shape: f32[2,1,32], index: 15, kind: input, shape index: {}]   ;;  %s6076_s16 = inlined_call_operand.vmem [shape: f32[32,32], index: 16, kind: input, shape index: {}]   ;;  %s6077_s17 = inlined_call_operand.vmem [shape: f32[1,32], index: 17, kind: input, shape index: {}]   ;;  %s6078_s18 = inlined_call_operand.vmem [shape: f32[32,1], index: 18, kind: input, shape index: {}]   ;;  %s6079_s19 = inlined_call_operand.<no memory space> [shape: f32[1,1], index: 19, kind: input, shape index: {}]   ;;  %s6080_s20 = inlined_call_operand.vmem [shape: f32[2,1], index: 20, kind: output, shape index: {}]  }
   0x1   :  { %6087 = sst [smem:[#allocation26_spill]] %s6060_s0  ;;  %v25_v0 = vstv %s6079_s19 }
   0x2   :  { %6088 = sst [smem:[#allocation27_spill]] %s6061_s1  ;;  %26 = vst [vmem:[#allocation2] sm:$0x1] %v25_v0 }
   0x3   :  { %6089 = sst [smem:[#allocation28_spill]] %s6062_s2 }
   0x4   :  { %6090 = sst [smem:[#allocation29_spill]] %s6063_s3 }
   0x5   :  { %6091 = sst [smem:[#allocation30_spill]] %s6064_s4 }
   0x6   :  { %27 = vsyncpa [#allocation4], 0 }
   0x7   :  { %28 = vsyncpa [#allocation6], 0 }
   0x8   :  { %29 = vsyncpa [#allocation9], 0 }
   0x9   :  { %30 = vsyncpa [#allocation12], 0 }
   0xa   :  { %31 = vsyncpa [#allocation15], 0 }
   0xb   :  { %32 = vsyncpa [#allocation18], 0  ;;  %s5155_s23 = smov [#allocation5]   ;;  %s5156_s2 = smov [#allocation8]  }
   0xc   :  { %s51_s24 = sshll.u32 %s5155_s23, 4  ;;  %s74_s25 = sshll.u32 %s5156_s2, 4  ;;  %s52_s24 = int_to_ptr.vmem [resolvable:$true] %s51_s24  ;;  %s5293_s25 = int_to_ptr.vmem [resolvable:$true] %s74_s25 }
   0xd   :  { %s6092_s27 = sld [smem:[#allocation27_spill]] }
  0x13   :  { %s4901_s28 = scalar_lea.hbm %s6092_s27, 32 }
  0x14   :  { %p4902_p0 = scmp.ne.s32.totalorder %s6092_s27, %s4901_s28  ;;  %p4905_p1 = scmp.lt.u32.totalorder %s4901_s28, %s6092_s27 }
  0x16   :  { %p4907_p2 = pnand %p4905_p1, %p4902_p0 }
  0x18   :  { %4910 = shalt.err (!%p4907_p2)
}
  0x19   :  { %s4911_s0 = scalar_lea.vmem %s52_s24, 32  ;;  %p4916_p4 = scmp.lt.s32.totalorder %s52_s24, %s52_s24 }
  0x1a   :  { %p4912_p3 = scmp.ne.s32.totalorder %s52_s24, %s4911_s0  ;;  %p4917_p5 = scmp.lt.s32.totalorder %s4911_s0, %s4911_s0 }
  0x1c   :  { %p4918_p6 = por %p4917_p5, %p4916_p4 }
  0x1e   :  { %p4919_p7 = pnand %p4918_p6, %p4912_p3 }
  0x20   :  { %4922 = shalt.err (!%p4919_p7)
}
  0x21   :  { %54 = dma.hbm_to_vmem [thread:$0]  %s6092_s27, 32, %s52_s24, [#allocation6]  }
  0x22   :  { %s4923_s2 = scalar_lea.hbm %s6065_s5, 32 }
  0x23   :  { %p4924_p8 = scmp.ne.s32.totalorder %s6065_s5, %s4923_s2  ;;  %p4927_p9 = scmp.lt.u32.totalorder %s4923_s2, %s6065_s5 }
  0x25   :  { %p4929_p10 = pnand %p4927_p9, %p4924_p8 }
  0x27   :  { %4932 = shalt.err (!%p4929_p10)
}
  0x28   :  { %s4933_s19 = scalar_lea.vmem %s5293_s25, 32  ;;  %p4938_p12 = scmp.lt.s32.totalorder %s5293_s25, %s5293_s25 }
  0x29   :  { %p4934_p11 = scmp.ne.s32.totalorder %s5293_s25, %s4933_s19  ;;  %p4939_p13 = scmp.lt.s32.totalorder %s4933_s19, %s4933_s19 }
  0x2b   :  { %p4940_p0 = por %p4939_p13, %p4938_p12 }
  0x2d   :  { %p4941_p1 = pnand %p4940_p0, %p4934_p11 }
  0x2f   :  { %4944 = shalt.err (!%p4941_p1)
}
  0x30   :  { %s5157_s24 = smov 16   ;;  %s5158_s27 = smov 1  }
  0x31   :  { %80 = dma.hbm_to_vmem [thread:$0]  %s6065_s5, 32, %s5293_s25, [#allocation9], %s5157_s24, %s5157_s24, %s5158_s27  }
  0x32   :  { %s5159_s0 = smov [#allocation11]   ;;  %s5160_s1 = smov [#allocation14]  }
  0x33   :  { %s100_s21 = sshll.u32 %s5159_s0, 4  ;;  %s126_s22 = sshll.u32 %s5160_s1, 4  ;;  %s101_s21 = int_to_ptr.vmem [resolvable:$true] %s100_s21  ;;  %s5327_s22 = int_to_ptr.vmem [resolvable:$true] %s126_s22 }
  0x34   :  { %s4945_s3 = scalar_lea.hbm %s6068_s8, 32 }
  0x35   :  { %p4946_p2 = scmp.ne.s32.totalorder %s6068_s8, %s4945_s3  ;;  %p4949_p3 = scmp.lt.u32.totalorder %s4945_s3, %s6068_s8 }
  0x37   :  { %p4951_p4 = pnand %p4949_p3, %p4946_p2 }
  0x39   :  { %4954 = shalt.err (!%p4951_p4)
}
  0x3a   :  { %s4955_s5 = scalar_lea.vmem %s101_s21, 32  ;;  %p4960_p6 = scmp.lt.s32.totalorder %s101_s21, %s101_s21 }
  0x3b   :  { %p4956_p5 = scmp.ne.s32.totalorder %s101_s21, %s4955_s5  ;;  %p4961_p7 = scmp.lt.s32.totalorder %s4955_s5, %s4955_s5 }
  0x3d   :  { %p4962_p8 = por %p4961_p7, %p4960_p6 }
  0x3f   :  { %p4963_p9 = pnand %p4962_p8, %p4956_p5 }
  0x41   :  { %4966 = shalt.err (!%p4963_p9)
}
  0x42   :  { %106 = dma.hbm_to_vmem [thread:$0]  %s6068_s8, 32, %s101_s21, [#allocation12], %s5157_s24, %s5157_s24, %s5158_s27  }
  0x43   :  { %s4967_s1 = scalar_lea.hbm %s6071_s11, 32 }
  0x44   :  { %p4968_p10 = scmp.ne.s32.totalorder %s6071_s11, %s4967_s1  ;;  %p4971_p11 = scmp.lt.u32.totalorder %s4967_s1, %s6071_s11 }
  0x46   :  { %p4973_p12 = pnand %p4971_p11, %p4968_p10 }
  0x48   :  { %4976 = shalt.err (!%p4973_p12)
}
  0x49   :  { %s4977_s28 = scalar_lea.vmem %s5327_s22, 32  ;;  %p4982_p0 = scmp.lt.s32.totalorder %s5327_s22, %s5327_s22 }
  0x4a   :  { %p4978_p13 = scmp.ne.s32.totalorder %s5327_s22, %s4977_s28  ;;  %p4983_p1 = scmp.lt.s32.totalorder %s4977_s28, %s4977_s28 }
  0x4c   :  { %p4984_p2 = por %p4983_p1, %p4982_p0 }
  0x4e   :  { %p4985_p3 = pnand %p4984_p2, %p4978_p13 }
  0x50   :  { %4988 = shalt.err (!%p4985_p3)
}
  0x51   :  { %132 = dma.hbm_to_vmem [thread:$0]  %s6071_s11, 32, %s5327_s22, [#allocation15], %s5157_s24, %s5157_s24, %s5158_s27  }
  0x52   :  { %s5161_s4 = smov [#allocation17]   ;;  %s5162_s5 = smov [#allocation3]  }
  0x53   :  { %s152_s19 = sshll.u32 %s5161_s4, 4  ;;  %s38_s25 = sshll.u32 %s5162_s5, 4  ;;  %s153_s19 = int_to_ptr.vmem [resolvable:$true] %s152_s19  ;;  %s5364_s25 = int_to_ptr.vmem [resolvable:$true] %s38_s25 }
  0x54   :  { %s4989_s0 = scalar_lea.hbm %s6074_s14, 32 }
  0x55   :  { %p4990_p4 = scmp.ne.s32.totalorder %s6074_s14, %s4989_s0  ;;  %p4993_p5 = scmp.lt.u32.totalorder %s4989_s0, %s6074_s14 }
  0x57   :  { %p4995_p6 = pnand %p4993_p5, %p4990_p4 }
  0x59   :  { %4998 = shalt.err (!%p4995_p6)
}
  0x5a   :  { %s4999_s11 = scalar_lea.vmem %s153_s19, 32  ;;  %p5004_p8 = scmp.lt.s32.totalorder %s153_s19, %s153_s19 }
  0x5b   :  { %p5000_p7 = scmp.ne.s32.totalorder %s153_s19, %s4999_s11  ;;  %p5005_p9 = scmp.lt.s32.totalorder %s4999_s11, %s4999_s11 }
  0x5d   :  { %p5006_p10 = por %p5005_p9, %p5004_p8 }
  0x5f   :  { %p5007_p11 = pnand %p5006_p10, %p5000_p7 }
  0x61   :  { %5010 = shalt.err (!%p5007_p11)
}
  0x62   :  { %158 = dma.hbm_to_vmem [thread:$0]  %s6074_s14, 32, %s153_s19, [#allocation18], %s5157_s24, %s5157_s24, %s5158_s27  }
  0x63   :  { %s6093_s21 = sld [smem:[#allocation26_spill]] }
  0x69   :  { %s5011_s4 = scalar_lea.hbm %s6093_s21, 256 }
  0x6a   :  { %p5012_p12 = scmp.ne.s32.totalorder %s6093_s21, %s5011_s4  ;;  %p5015_p13 = scmp.lt.u32.totalorder %s5011_s4, %s6093_s21 }
  0x6c   :  { %p5017_p0 = pnand %p5015_p13, %p5012_p12 }
  0x6e   :  { %5020 = shalt.err (!%p5017_p0)
}
  0x6f   :  { %s5021_s1 = scalar_lea.vmem %s5364_s25, 256  ;;  %p5026_p2 = scmp.lt.s32.totalorder %s5364_s25, %s5364_s25 }
  0x70   :  { %p5022_p1 = scmp.ne.s32.totalorder %s5364_s25, %s5021_s1  ;;  %p5027_p3 = scmp.lt.s32.totalorder %s5021_s1, %s5021_s1 }
  0x72   :  { %p5028_p4 = por %p5027_p3, %p5026_p2 }
  0x74   :  { %p5029_p5 = pnand %p5028_p4, %p5022_p1 }
  0x76   :  { %5032 = shalt.err (!%p5029_p5)
}
  0x77   :  { %s5163_s14 = smov 128   ;;  %s5164_s19 = smov 8  }
  0x78   :  { %44 = dma.hbm_to_vmem [thread:$0]  %s6093_s21, 256, %s5364_s25, [#allocation4], %s5163_s14, %s5163_s14, %s5164_s19  }
  0x79   :  { %s5165_s3 = smov [#allocation7]   ;;  %s5166_s22 = smov [#allocation10]  }
  0x7a   :  { %s63_s11 = sshll.u32 %s5165_s3, 4  ;;  %s88_s26 = sshll.u32 %s5166_s22, 4  ;;  %s64_s11 = int_to_ptr.vmem [resolvable:$true] %s63_s11  ;;  %s5399_s26 = int_to_ptr.vmem [resolvable:$true] %s88_s26 }
  0x7b   :  { %s6094_s4 = sld [smem:[#allocation29_spill]] }
  0x81   :  { %s5033_s5 = scalar_lea.hbm %s6094_s4, 16 }
  0x82   :  { %p5034_p6 = scmp.ne.s32.totalorder %s6094_s4, %s5033_s5  ;;  %p5037_p7 = scmp.lt.u32.totalorder %s5033_s5, %s6094_s4 }
  0x84   :  { %p5039_p8 = pnand %p5037_p7, %p5034_p6 }
  0x86   :  { %5042 = shalt.err (!%p5039_p8)
}
  0x87   :  { %s5043_s25 = scalar_lea.vmem %s64_s11, 16  ;;  %s5047_s21 = scalar_lea.vmem %s64_s11, 32 }
  0x88   :  { %p5044_p9 = scmp.ne.s32.totalorder %s64_s11, %s5043_s25  ;;  %p5048_p10 = scmp.lt.s32.totalorder %s64_s11, %s64_s11 }
  0x89   :  { %p5049_p11 = scmp.lt.s32.totalorder %s5047_s21, %s5043_s25 }
  0x8b   :  { %p5050_p12 = por %p5049_p11, %p5048_p10 }
  0x8d   :  { %p5051_p13 = pnand %p5050_p12, %p5044_p9 }
  0x8f   :  { %5054 = shalt.err (!%p5051_p13)
}
  0x90   :  { %66 = dma.hbm_to_vmem [thread:$0]  %s6094_s4, 16, %s64_s11, [#allocation6]  }
  0x91   :  { %s5055_s22 = scalar_lea.hbm %s6067_s7, 32 }
  0x92   :  { %p5056_p0 = scmp.ne.s32.totalorder %s6067_s7, %s5055_s22  ;;  %p5059_p1 = scmp.lt.u32.totalorder %s5055_s22, %s6067_s7 }
  0x94   :  { %p5061_p2 = pnand %p5059_p1, %p5056_p0 }
  0x96   :  { %5064 = shalt.err (!%p5061_p2)
}
  0x97   :  { %s5065_s30 = scalar_lea.vmem %s5399_s26, 32  ;;  %p5070_p4 = scmp.lt.s32.totalorder %s5399_s26, %s5399_s26 }
  0x98   :  { %p5066_p3 = scmp.ne.s32.totalorder %s5399_s26, %s5065_s30  ;;  %p5071_p5 = scmp.lt.s32.totalorder %s5065_s30, %s5065_s30 }
  0x9a   :  { %p5072_p6 = por %p5071_p5, %p5070_p4 }
  0x9c   :  { %p5073_p7 = pnand %p5072_p6, %p5066_p3 }
  0x9e   :  { %5076 = shalt.err (!%p5073_p7)
}
  0x9f   :  { %94 = dma.hbm_to_vmem [thread:$0]  %s6067_s7, 32, %s5399_s26, [#allocation9], %s5157_s24, %s5157_s24, %s5158_s27  }
  0xa0   :  { %s5167_s0 = smov [#allocation13]   ;;  %s5168_s25 = smov [#allocation16]  }
  0xa1   :  { %s112_s1 = sshll.u32 %s5167_s0, 4  ;;  %s140_s21 = sshll.u32 %s5168_s25, 4  ;;  %s113_s1 = int_to_ptr.vmem [resolvable:$true] %s112_s1  ;;  %s5433_s21 = int_to_ptr.vmem [resolvable:$true] %s140_s21 }
  0xa2   :  { %s5077_s2 = scalar_lea.hbm %s6069_s9, 32 }
  0xa3   :  { %p5078_p8 = scmp.ne.s32.totalorder %s6069_s9, %s5077_s2  ;;  %p5081_p9 = scmp.lt.u32.totalorder %s5077_s2, %s6069_s9 }
  0xa5   :  { %p5083_p10 = pnand %p5081_p9, %p5078_p8 }
  0xa7   :  { %5086 = shalt.err (!%p5083_p10)
}
  0xa8   :  { %s5087_s7 = scalar_lea.vmem %s113_s1, 32  ;;  %p5092_p12 = scmp.lt.s32.totalorder %s113_s1, %s113_s1 }
  0xa9   :  { %p5088_p11 = scmp.ne.s32.totalorder %s113_s1, %s5087_s7  ;;  %p5093_p13 = scmp.lt.s32.totalorder %s5087_s7, %s5087_s7 }
  0xab   :  { %p5094_p0 = por %p5093_p13, %p5092_p12 }
  0xad   :  { %p5095_p1 = pnand %p5094_p0, %p5088_p11 }
  0xaf   :  { %5098 = shalt.err (!%p5095_p1)
}
  0xb0   :  { %118 = dma.hbm_to_vmem [thread:$0]  %s6069_s9, 32, %s113_s1, [#allocation12], %s5157_s24, %s5157_s24, %s5158_s27  }
  0xb1   :  { %s5099_s11 = scalar_lea.hbm %s6073_s13, 32 }
  0xb2   :  { %p5100_p2 = scmp.ne.s32.totalorder %s6073_s13, %s5099_s11  ;;  %p5103_p3 = scmp.lt.u32.totalorder %s5099_s11, %s6073_s13 }
  0xb4   :  { %p5105_p4 = pnand %p5103_p3, %p5100_p2 }
  0xb6   :  { %5108 = shalt.err (!%p5105_p4)
}
  0xb7   :  { %s5109_s23 = scalar_lea.vmem %s5433_s21, 32  ;;  %p5114_p6 = scmp.lt.s32.totalorder %s5433_s21, %s5433_s21 }
  0xb8   :  { %p5110_p5 = scmp.ne.s32.totalorder %s5433_s21, %s5109_s23  ;;  %p5115_p7 = scmp.lt.s32.totalorder %s5109_s23, %s5109_s23 }
  0xba   :  { %p5116_p8 = por %p5115_p7, %p5114_p6 }
  0xbc   :  { %p5117_p9 = pnand %p5116_p8, %p5110_p5 }
  0xbe   :  { %5120 = shalt.err (!%p5117_p9)
}
  0xbf   :  { %146 = dma.hbm_to_vmem [thread:$0]  %s6073_s13, 32, %s5433_s21, [#allocation15], %s5157_s24, %s5157_s24, %s5158_s27  }
  0xc0   :  { %s5169_s2 = smov [#allocation19]   ;;  %s5121_s8 = scalar_lea.hbm %s6075_s15, 32 }
  0xc1   :  { %s164_s3 = sshll.u32 %s5169_s2, 4  ;;  %p5122_p10 = scmp.ne.s32.totalorder %s6075_s15, %s5121_s8  ;;  %s165_s3 = int_to_ptr.vmem [resolvable:$true] %s164_s3 }
  0xc2   :  { %p5125_p11 = scmp.lt.u32.totalorder %s5121_s8, %s6075_s15 }
  0xc4   :  { %p5127_p12 = pnand %p5125_p11, %p5122_p10 }
  0xc6   :  { %5130 = shalt.err (!%p5127_p12)
}
  0xc7   :  { %s5131_s30 = scalar_lea.vmem %s165_s3, 32  ;;  %p5136_p0 = scmp.lt.s32.totalorder %s165_s3, %s165_s3 }
  0xc8   :  { %p5132_p13 = scmp.ne.s32.totalorder %s165_s3, %s5131_s30  ;;  %p5137_p1 = scmp.lt.s32.totalorder %s5131_s30, %s5131_s30 }
  0xca   :  { %p5138_p2 = por %p5137_p1, %p5136_p0 }
  0xcc   :  { %p5139_p3 = pnand %p5138_p2, %p5132_p13 }
  0xce   :  { %5142 = shalt.err (!%p5139_p3)
}
  0xcf   :  { %170 = dma.hbm_to_vmem [thread:$0]  %s6075_s15, 32, %s165_s3, [#allocation18], %s5157_s24, %s5157_s24, %s5158_s27  }
  0xd0   :  { %5143 = dma.done.wait [#allocation4], 256  }
  0xd1   :  { %5144 = vsyncadd [#allocation4], 4294967040 }
  0xd2   :  { %5145 = dma.done.wait [#allocation6], 48  }
  0xd3   :  { %5146 = vsyncadd [#allocation6], 4294967248 }
  0xd4   :  { %5147 = dma.done.wait [#allocation9], 64  }
  0xd5   :  { %5148 = vsyncadd [#allocation9], 4294967232 }
  0xd6   :  { %5149 = dma.done.wait [#allocation12], 64  }
  0xd7   :  { %5150 = vsyncadd [#allocation12], 4294967232 }
  0xd8   :  { %5151 = dma.done.wait [#allocation15], 64  }
  0xd9   :  { %5152 = vsyncadd [#allocation15], 4294967232 }
  0xda   :  { %5153 = dma.done.wait [#allocation18], 64  }
  0xdb   :  { %5154 = vsyncadd [#allocation18], 4294967232  ;;  %vm216_vm0 = vcmask 261120   ;;  %v212_v1 = vld [vmem:[#allocation3] sm:$0xff]  ;;  %v213_v2 = vld [vmem:[#allocation3 + $0x8] sm:$0xff]  ;;  %s6095_s11 = sld [smem:[#allocation30_spill]]  ;;  %v432_v57 = vlaneseq }
  0xdc   :  { %v217_v3 = vsel %vm216_vm0, %v212_v1, 0.0  ;;  %v220_v4 = vsel %vm216_vm0, %v213_v2, 0.0  ;;  %s6096_s3 = sld [smem:[#allocation28_spill]]  ;;  %v4164_v30 = vld [vmem:[#allocation7] ss:$0 sm:$0xff]  ;;  %v5170_v37 = vmov 0.0  }
  0xdd   :  { %218 = vadd.xlane.f32.xlu0 %v217_v3  ;;  %4410 = vmatprep.subr.mxu1 %v5170_v37  ;;  %vm5171_vm1 = vmmov 0   ;;  %v4165_v38 = vld [vmem:[#allocation8] ss:$0 sm:$0xff]  ;;  %s5172_s22 = smov 88   ;;  %s5173_s28 = smov 96   ;;  %vm356_vm2 = vcmask 64512  }
  0xde   :  { %4412 = vmatprep.mubr.msk.f32.mxu1 %vm5171_vm1, %v5170_v37  ;;  %s5174_s8 = smov 120   ;;  %s5175_s7 = smov 112   ;;  %v433_v58 = vshrl.u32 %v432_v57, 7  ;;  %v260_v60 = vld [vmem:[#allocation5] sm:$0x3]  ;;  %vm1038_vm3 = vcmask 130048  }
  0xdf   :  { %s5176_s26 = smov 80   ;;  %s5177_s5 = smov 104   ;;  %vm1040_vm4 = vcmask 195584   ;;  %vm1991_vm5 = vcmask 523264   ;;  %vm3980_vm6 = vcmask 1040384   ;;  %vm4151_vm7 = vcmask 1024  }
  0xe0   :  { %s5178_s29 = smov 72   ;;  %v434_v59 = vsub.s32 0, %v433_v58  ;;  %s5179_s30 = smov 64  }
  0xe1   :  { %221 = vadd.xlane.f32.xlu0 %v220_v4  ;;  %v261_v15 = vld [vmem:[%s6095_s11] sm:$0xff]  ;;  %v262_v16 = vld [vmem:[%s6095_s11 + $0x8] sm:$0xff]  ;;  %v263_v17 = vld [vmem:[%s6095_s11 + $0x10] sm:$0xff]  ;;  %s5180_s13 = smov 48   ;;  %s5181_s21 = smov 40  }
  0xe2   :  { %v4685_v18 = vpack.c.bf16 %v262_v16, %v261_v15  ;;  %v264_v19 = vld [vmem:[%s6095_s11 + $0x18] sm:$0xff]  ;;  %v4163_v28 = vld [vmem:[%s6096_s3] ss:$0 sm:$0xff]  ;;  %v5589_v61 = vrot.slane %v260_v60, %v434_v59  ;;  %s5182_s15 = smov 56   ;;  %s6085_s2 = smov 24  }
  0xe3   :  { %v4689_v20 = vpack.c.bf16 %v264_v19, %v263_v17 }
  0xe4   :  { %4686 = vmatprep.subr.bf16.mxu0 %v4685_v18 }
  0xe5   :  { %4688 = vmatpush3.bf16.msra.mxu0 %v4685_v18 }
  0xe6   :  { %4690 = vmatprep.subr.bf16.mxu0 %v4689_v20 }
  0xe9   :  { %4692 = vmatpush3.bf16.msra.mxu0 %v4689_v20 }
  0xea   :  { %4420 = vmatprep.subr.mxu0 %v5170_v37 }
 0x16a   :  { %v219_v5 = vpop.xlane.xlu0 %218 }
 0x16b   :  { %v224_v6 = vmul.f32 0.03125, %v219_v5 }
 0x16d   :  { %v226_v7 = vsub.f32 %v212_v1, %v224_v6 }
 0x16e   :  { %v222_v8 = vpop.xlane.xlu0 %221 }
 0x16f   :  { %v225_v9 = vmul.f32 0.03125, %v222_v8  ;;  %v228_v10 = vmul.f32 %v226_v7, %v226_v7 }
 0x171   :  { %v227_v11 = vsub.f32 %v213_v2, %v225_v9  ;;  %v230_v12 = vsel %vm216_vm0, %v228_v10, 0.0 }
 0x172   :  { %231 = vadd.xlane.f32.xlu1 %v230_v12  ;;  %v1122_v12 = vsub.s32 1, %v433_v58 }
 0x173   :  { %v229_v13 = vmul.f32 %v227_v11, %v227_v11 }
 0x174   :  { %v5601_v18 = vrot.slane %v260_v60, %v1122_v12 }
 0x175   :  { %v233_v14 = vsel %vm216_vm0, %v229_v13, 0.0 }
 0x176   :  { %234 = vadd.xlane.f32.xlu1 %v233_v14 }
 0x1ff   :  { %v232_v21 = vpop.xlane.xlu1 %231 }
 0x200   :  { %v236_v22 = vmul.f32 0.03125, %v232_v21 }
 0x202   :  { %v238_v23 = vadd.f32 1e-12, %v236_v22 }
 0x203   :  { %v235_v24 = vpop.xlane.xlu1 %234 }
 0x204   :  { %4807 = vrsqrt.f32 %v238_v23  ;;  %v237_v25 = vmul.f32 0.03125, %v235_v24 }
 0x206   :  { %v239_v26 = vadd.f32 1e-12, %v237_v25 }
 0x208   :  { %4809 = vrsqrt.f32 %v239_v26 }
 0x20e   :  { %v4808_v27 = vpop.eup %4807 }
 0x20f   :  { %v242_v29 = vmul.f32 %v4808_v27, %v226_v7 }
 0x211   :  { %v250_v31 = vmul.f32 %v4163_v28, %v242_v29 }
 0x212   :  { %v4810_v32 = vpop.eup %4809 }
 0x213   :  { %v243_v33 = vmul.f32 %v4810_v32, %v227_v11  ;;  %v5504_v34 = vadd.f32 %v4164_v30, %v250_v31 }
 0x215   :  { %v251_v35 = vmul.f32 %v4163_v28, %v243_v33  ;;  %4407 = vmatprep.mubr.msk.f32.mxu0 %vm216_vm0, %v5504_v34 }
 0x217   :  { %v5508_v36 = vadd.f32 %v4164_v30, %v251_v35 }
 0x219   :  { %4408 = vmatmul.mubr.msk.f32.vlgmr.msra.gmra.mrb[0].mxu0 %vm216_vm0, %v5508_v36 }
 0x21a   :  { %4422 = vmatprep.mubr.msk.f32.mxu0 %vm5171_vm1, %v5170_v37 }
 0x2ec   :  { %v4409_v39 = vpop.f32.mrb[0].mxu0 }
 0x2ed   :  { %v344_v40 = vpop.f32.mrb[1].mxu0  ;;  %v5532_v42 = vadd.f32 %v4409_v39, %v4165_v38 }
 0x2ee   :  { %v5518_v41 = vadd.f32 %v4165_v38, %v344_v40 }
 0x2f0   :  { %526 = vrot.lane.b32.xlu1 %v5518_v41, %s5172_s22  ;;  %354 = vrot.lane.b32.xlu0 %v5518_v41, %s5173_s28 }
 0x2f4   :  { %524 = vrot.lane.b32.xlu1 %v5518_v41, %s5174_s8  ;;  %691 = vrot.lane.b32.xlu0 %v5518_v41, %s5175_s7 }
 0x2f8   :  { %693 = vrot.lane.b32.xlu1 %v5518_v41, %s5176_s26  ;;  %858 = vrot.lane.b32.xlu0 %v5518_v41, %s5177_s5 }
 0x2fc   :  { %860 = vrot.lane.b32.xlu1 %v5518_v41, %s5178_s29  ;;  %1214 = vrot.lane.b32.xlu0 %v5532_v42, %s5172_s22 }
 0x300   :  { %1043 = vrot.lane.b32.xlu1 %v5532_v42, %s5173_s28  ;;  %1381 = vrot.lane.b32.xlu0 %v5532_v42, %s5176_s26 }
 0x304   :  { %1212 = vrot.lane.b32.xlu1 %v5532_v42, %s5174_s8  ;;  %1548 = vrot.lane.b32.xlu0 %v5532_v42, %s5178_s29 }
 0x308   :  { %1379 = vrot.lane.b32.xlu1 %v5532_v42, %s5175_s7 }
 0x30c   :  { %1546 = vrot.lane.b32.xlu1 %v5532_v42, %s5177_s5 }
 0x362   :  { %v527_v43 = vpop.permute.xlu1 %526  ;;  %v355_v44 = vpop.permute.xlu0 %354 }
 0x363   :  { %4411 = vmatpush3.xpose.msk.msra.mxu1 %vm356_vm2, %v355_v44  ;;  %4421 = vmatpush3.xpose.msk.msra.mxu0 %vm356_vm2, %v527_v43 }
 0x364   :  { %4430 = vmatprep.subr.mxu0 %v5170_v37  ;;  %4415 = vmatprep.subr.mxu1 %v5170_v37 }
 0x366   :  { %v525_v45 = vpop.permute.xlu1 %524  ;;  %4413 = vmatmul.mubr.msk.f32.vlgmr.msra.gmra.mrb[0].mxu1 %vm356_vm2, %v5518_v41  ;;  %v692_v46 = vpop.permute.xlu0 %691 }
 0x367   :  { %4423 = vmatmul.mubr.msk.f32.vlgmr.msra.gmra.mrb[2].mxu0 %vm356_vm2, %v525_v45  ;;  %4417 = vmatprep.mubr.msk.f32.mxu1 %vm5171_vm1, %v5170_v37 }
 0x368   :  { %4432 = vmatprep.mubr.msk.f32.mxu0 %vm5171_vm1, %v5170_v37 }
 0x36a   :  { %v694_v47 = vpop.permute.xlu1 %693  ;;  %v859_v48 = vpop.permute.xlu0 %858 }
 0x36b   :  { %4431 = vmatpush3.xpose.msk.msra.mxu0 %vm356_vm2, %v694_v47 }
 0x36c   :  { %4440 = vmatprep.subr.mxu0 %v5170_v37 }
 0x36e   :  { %v861_v49 = vpop.permute.xlu1 %860  ;;  %4433 = vmatmul.mubr.msk.f32.vlgmr.msra.gmra.mrb[4].mxu0 %vm356_vm2, %v692_v46  ;;  %v1215_v50 = vpop.permute.xlu0 %1214 }
 0x36f   :  { %4441 = vmatpush3.xpose.msk.msra.mxu0 %vm356_vm2, %v861_v49  ;;  %4442 = vmatprep.mubr.msk.f32.mxu0 %vm5171_vm1, %v5170_v37 }
 0x370   :  { %4450 = vmatprep.subr.mxu0 %v5170_v37 }
 0x372   :  { %v1044_v51 = vpop.permute.xlu1 %1043  ;;  %4443 = vmatmul.mubr.msk.f32.vlgmr.msra.gmra.mrb[6].mxu0 %vm356_vm2, %v859_v48  ;;  %v1382_v53 = vpop.permute.xlu0 %1381 }
 0x373   :  { %4451 = vmatpush3.xpose.msk.msra.mxu0 %vm356_vm2, %v1044_v51  ;;  %4452 = vmatprep.mubr.msk.f32.mxu0 %vm5171_vm1, %v5170_v37 }
 0x374   :  { %4460 = vmatprep.subr.mxu0 %v5170_v37 }
 0x376   :  { %v1213_v52 = vpop.permute.xlu1 %1212  ;;  %4453 = vmatmul.mubr.msk.f32.vlgmr.msra.gmra.mrb[8].mxu0 %vm356_vm2, %v5532_v42  ;;  %v1549_v55 = vpop.permute.xlu0 %1548 }
 0x377   :  { %4461 = vmatpush3.xpose.msk.msra.mxu0 %vm356_vm2, %v1215_v50  ;;  %4462 = vmatprep.mubr.msk.f32.mxu0 %vm5171_vm1, %v5170_v37 }
 0x378   :  { %4470 = vmatprep.subr.mxu0 %v5170_v37 }
 0x37a   :  { %4463 = vmatmul.mubr.msk.f32.vlgmr.msra.gmra.mrb[10].mxu0 %vm356_vm2, %v1213_v52  ;;  %v1380_v54 = vpop.permute.xlu1 %1379 }
 0x37b   :  { %4471 = vmatpush3.xpose.msk.msra.mxu0 %vm356_vm2, %v1382_v53  ;;  %4472 = vmatprep.mubr.msk.f32.mxu0 %vm5171_vm1, %v5170_v37 }
 0x37c   :  { %4480 = vmatprep.subr.mxu0 %v5170_v37 }
 0x37e   :  { %4473 = vmatmul.mubr.msk.f32.vlgmr.msra.gmra.mrb[12].mxu0 %vm356_vm2, %v1380_v54  ;;  %v1547_v56 = vpop.permute.xlu1 %1546 }
 0x37f   :  { %4481 = vmatpush3.xpose.msk.msra.mxu0 %vm356_vm2, %v1549_v55  ;;  %4482 = vmatprep.mubr.msk.f32.mxu0 %vm5171_vm1, %v5170_v37 }
 0x382   :  { %4483 = vmatmul.mubr.msk.f32.vlgmr.msra.gmra.mrb[14].mxu0 %vm356_vm2, %v1547_v56 }
 0x439   :  { %v427_v62 = vpop.f32.mrb[0].mxu1 }
 0x43a   :  { %v431_v63 = vmul.f32 0.35355338, %v427_v62  ;;  %v4414_v0 = vpop.f32.mrb[1].mxu1  ;;  %v598_v1 = vpop.f32.mrb[2].mxu0 }
 0x43b   :  { %v602_v2 = vmul.f32 0.35355338, %v598_v1  ;;  %v4424_v3 = vpop.f32.mrb[3].mxu0 }
 0x43c   :  { %v436_v4 = vadd.f32 %v5589_v61, %v431_v63 }
 0x43d   :  { %v603_v5 = vadd.f32 %v602_v2, %v5589_v61 }
 0x43e   :  { %v437_v6 = vsel %vm356_vm2, %v436_v4, -inf }
 0x43f   :  { %438 = vmax.xlane.f32.xlu0 %v437_v6  ;;  %v604_v7 = vsel %vm356_vm2, %v603_v5, -inf }
 0x440   :  { %605 = vmax.xlane.f32.xlu1 %v604_v7 }
 0x441   :  { %v765_v8 = vpop.f32.mrb[4].mxu0 }
 0x442   :  { %v769_v9 = vmul.f32 0.35355338, %v765_v8  ;;  %v4434_v10 = vpop.f32.mrb[5].mxu0 }
 0x444   :  { %v5596_v11 = vadd.f32 %v769_v9, %v5589_v61 }
 0x445   :  { %v932_v13 = vpop.f32.mrb[6].mxu0 }
 0x446   :  { %v936_v14 = vmul.f32 0.35355338, %v932_v13  ;;  %v4444_v15 = vpop.f32.mrb[7].mxu0  ;;  %v771_v16 = vsel %vm356_vm2, %v5596_v11, -inf }
 0x447   :  { %772 = vmax.xlane.f32.xlu0 %v771_v16 }
 0x448   :  { %v937_v17 = vadd.f32 %v936_v14, %v5589_v61 }
 0x449   :  { %v1115_v19 = vpop.f32.mrb[8].mxu0 }
 0x44a   :  { %v1119_v20 = vmul.f32 0.35355338, %v1115_v19  ;;  %v4454_v21 = vpop.f32.mrb[9].mxu0  ;;  %v938_v22 = vsel %vm356_vm2, %v937_v17, -inf }
 0x44b   :  { %939 = vmax.xlane.f32.xlu0 %v938_v22 }
 0x44c   :  { %v5605_v23 = vadd.f32 %v5601_v18, %v1119_v20 }
 0x44d   :  { %v1286_v24 = vpop.f32.mrb[10].mxu0 }
 0x44e   :  { %v1290_v25 = vmul.f32 0.35355338, %v1286_v24  ;;  %v4464_v26 = vpop.f32.mrb[11].mxu0  ;;  %v1125_v27 = vsel %vm356_vm2, %v5605_v23, -inf }
 0x44f   :  { %1126 = vmax.xlane.f32.xlu0 %v1125_v27 }
 0x450   :  { %v1291_v28 = vadd.f32 %v1290_v25, %v5601_v18 }
 0x451   :  { %v1453_v29 = vpop.f32.mrb[12].mxu0 }
 0x452   :  { %v1457_v30 = vmul.f32 0.35355338, %v1453_v29  ;;  %v4474_v31 = vpop.f32.mrb[13].mxu0  ;;  %v1292_v32 = vsel %vm356_vm2, %v1291_v28, -inf }
 0x453   :  { %1293 = vmax.xlane.f32.xlu1 %v1292_v32 }
 0x454   :  { %v1458_v33 = vadd.f32 %v1457_v30, %v5601_v18 }
 0x455   :  { %v1620_v35 = vpop.f32.mrb[14].mxu0 }
 0x456   :  { %v4484_v38 = vpop.f32.mrb[15].mxu0  ;;  %v1459_v39 = vsel %vm356_vm2, %v1458_v33, -inf  ;;  %v1624_v40 = vmul.f32 0.35355338, %v1620_v35 }
 0x457   :  { %1460 = vmax.xlane.f32.xlu0 %v1459_v39 }
 0x458   :  { %v1625_v43 = vadd.f32 %v1624_v40, %v5601_v18 }
 0x45a   :  { %v1626_v44 = vsel %vm356_vm2, %v1625_v43, -inf }
 0x464   :  { %448 = vrot.lane.b32.xlu1 %v5518_v41, %s5179_s30 }
 0x488   :  { %1627 = vmax.xlane.f32.xlu1 %v1626_v44 }
 0x499   :  { %782 = vrot.lane.b32.xlu1 %v5518_v41, %s5180_s13 }
 0x49d   :  { %949 = vrot.lane.b32.xlu1 %v5518_v41, %s5181_s21 }
 0x4a1   :  { %1136 = vrot.lane.b32.xlu1 %v5532_v42, %s5179_s30 }
 0x4cc   :  { %v439_v45 = vpop.xlane.xlu0 %438 }
 0x4cd   :  { %v440_v46 = vsub.f32 %v436_v4, %v439_v45  ;;  %v606_v47 = vpop.xlane.xlu1 %605 }
 0x4ce   :  { %v607_v48 = vsub.f32 %v603_v5, %v606_v47 }
 0x4cf   :  { %v441_v49 = vmul.f32 1.442695, %v440_v46 }
 0x4d0   :  { %v608_v50 = vmul.f32 1.442695, %v607_v48 }
 0x4d1   :  { %4811 = vpow2.f32 %v441_v49 }
 0x4d2   :  { %4813 = vpow2.f32 %v608_v50 }
 0x4d4   :  { %v773_v51 = vpop.xlane.xlu0 %772 }
 0x4d5   :  { %v774_v0 = vsub.f32 %v5596_v11, %v773_v51 }
 0x4d7   :  { %v775_v2 = vmul.f32 1.442695, %v774_v0  ;;  %v1729_v0 = vld [vmem:[%s6066_s6 + $0x8] sm:$0xff] }
 0x4d8   :  { %v940_v52 = vpop.xlane.xlu0 %939 }
 0x4d9   :  { %v941_v53 = vsub.f32 %v937_v17, %v940_v52 }
 0x4db   :  { %v4812_v54 = vpop.eup %4811  ;;  %v942_v55 = vmul.f32 1.442695, %v941_v53 }
 0x4dc   :  { %v5623_v56 = vpop.eup %4813  ;;  %v443_v57 = vsel %vm356_vm2, %v4812_v54, 0.0  ;;  %v1127_v1 = vpop.xlane.xlu0 %1126 }
 0x4dd   :  { %4815 = vpow2.f32 %v942_v55  ;;  %444 = vadd.xlane.f32.xlu0 %v443_v57  ;;  %v610_v58 = vsel %vm356_vm2, %v5623_v56, 0.0  ;;  %v1128_v3 = vsub.f32 %v5605_v23, %v1127_v1 }
 0x4de   :  { %611 = vadd.xlane.f32.xlu1 %v610_v58  ;;  %4817 = vpow2.f32 %v775_v2 }
 0x4df   :  { %v1129_v5 = vmul.f32 1.442695, %v1128_v3 }
 0x4e0   :  { %v1294_v59 = vpop.xlane.xlu1 %1293 }
 0x4e1   :  { %4819 = vpow2.f32 %v1129_v5  ;;  %v1295_v7 = vsub.f32 %v1291_v28, %v1294_v59  ;;  %v1731_v5 = vld [vmem:[%s6066_s6 + $0x18] sm:$0xff] }
 0x4e3   :  { %v1296_v9 = vmul.f32 1.442695, %v1295_v7 }
 0x4e4   :  { %v449_v60 = vpop.permute.xlu1 %448  ;;  %v1461_v4 = vpop.xlane.xlu0 %1460 }
 0x4e5   :  { %4416 = vmatpush3.msra.mxu1 %v449_v60  ;;  %v1462_v6 = vsub.f32 %v1458_v33, %v1461_v4  ;;  %v1730_v4 = vld [vmem:[%s6066_s6 + $0x10] sm:$0xff] }
 0x4e6   :  { %4425 = vmatprep.subr.mxu1 %v5170_v37  ;;  %v4697_v7 = vpack.c.bf16 %v1731_v5, %v1730_v4 }
 0x4e7   :  { %v5629_v62 = vpop.eup %4815  ;;  %v1463_v8 = vmul.f32 1.442695, %v1462_v6 }
 0x4e8   :  { %v944_v63 = vsel %vm356_vm2, %v5629_v62, 0.0  ;;  %v4818_v10 = vpop.eup %4817 }
 0x4e9   :  { %945 = vadd.xlane.f32.xlu1 %v944_v63  ;;  %4821 = vpow2.f32 %v1463_v8  ;;  %v1728_v63 = vld [vmem:[%s6066_s6] sm:$0xff] }
 0x4ea   :  { %4823 = vpow2.f32 %v1296_v9  ;;  %v4693_v2 = vpack.c.bf16 %v1729_v0, %v1728_v63  ;;  %v4195_v0 = vld [vmem:[#allocation11] ss:$0 sm:$0xff] }
 0x4eb   :  { %v4820_v12 = vpop.eup %4819 }
 0x4ec   :  { %v1131_v13 = vsel %vm356_vm2, %v4820_v12, 0.0  ;;  %4694 = vmatprep.subr.bf16.mxu0 %v4693_v2 }
 0x4ed   :  { %4696 = vmatpush3.bf16.msra.mxu0 %v4693_v2  ;;  %v4196_v2 = vld [vmem:[#allocation13] ss:$0 sm:$0xff] }
 0x4ee   :  { %4698 = vmatprep.subr.bf16.mxu0 %v4697_v7 }
 0x4f1   :  { %4700 = vmatpush3.bf16.msra.mxu0 %v4697_v7 }
 0x4f3   :  { %615 = vrot.lane.b32.xlu0 %v5518_v41, %s5182_s15  ;;  %v777_v41 = vsel %vm356_vm2, %v4818_v10, 0.0  ;;  %v5641_v14 = vpop.eup %4821 }
 0x4f4   :  { %v1465_v17 = vsel %vm356_vm2, %v5641_v14, 0.0  ;;  %v4824_v19 = vpop.eup %4823 }
 0x4f5   :  { %v1298_v20 = vsel %vm356_vm2, %v4824_v19, 0.0 }
 0x4fa   :  { %1303 = vrot.lane.b32.xlu1 %v5532_v42, %s5182_s15 }
 0x512   :  { %778 = vadd.xlane.f32.xlu0 %v777_v41 }
 0x515   :  { %v1628_v11 = vpop.xlane.xlu1 %1627 }
 0x516   :  { %v1629_v15 = vsub.f32 %v1625_v43, %v1628_v11  ;;  %1132 = vadd.xlane.f32.xlu0 %v1131_v13 }
 0x518   :  { %v1630_v16 = vmul.f32 1.442695, %v1629_v15 }
 0x519   :  { %v783_v23 = vpop.permute.xlu1 %782 }
 0x51a   :  { %4825 = vpow2.f32 %v1630_v16  ;;  %1466 = vadd.xlane.f32.xlu0 %v1465_v17 }
 0x51d   :  { %v950_v24 = vpop.permute.xlu1 %949 }
 0x51e   :  { %1299 = vadd.xlane.f32.xlu1 %v1298_v20 }
 0x521   :  { %v1137_v25 = vpop.permute.xlu1 %1136 }
 0x524   :  { %v5646_v21 = vpop.eup %4825 }
 0x525   :  { %v1632_v22 = vsel %vm356_vm2, %v5646_v21, 0.0 }
 0x526   :  { %1633 = vadd.xlane.f32.xlu0 %v1632_v22 }
 0x52f   :  { %1637 = vrot.lane.b32.xlu1 %v5532_v42, %s5181_s21 }
 0x53c   :  { %1470 = vrot.lane.b32.xlu0 %v5532_v42, %s5180_s13 }
 0x56a   :  { %v445_v26 = vpop.xlane.xlu0 %444 }
 0x56b   :  { %4827 = vrcp.f32 %v445_v26  ;;  %v612_v27 = vpop.xlane.xlu1 %611 }
 0x56c   :  { %4829 = vrcp.f32 %v612_v27 }
 0x56e   :  { %v616_v31 = vpop.permute.xlu0 %615 }
 0x575   :  { %v4828_v28 = vpop.eup %4827 }
 0x576   :  { %v447_v29 = vmul.f32 %v4828_v28, %v4812_v54  ;;  %v4830_v30 = vpop.eup %4829  ;;  %v946_v42 = vpop.xlane.xlu1 %945 }
 0x577   :  { %v614_v32 = vmul.f32 %v4830_v30, %v5623_v56 }
 0x578   :  { %4418 = vmatmul.mubr.msk.f32.vlgmr.msra.gmra.mrb[2].mxu1 %vm356_vm2, %v447_v29  ;;  %v4192_v29 = vld [vmem:[#allocation10] ss:$0 sm:$0xff] }
 0x579   :  { %4426 = vmatpush3.msra.mxu1 %v616_v31  ;;  %4427 = vmatprep.mubr.msk.f32.mxu1 %vm5171_vm1, %v5170_v37 }
 0x57a   :  { %4435 = vmatprep.subr.mxu1 %v5170_v37  ;;  %v1304_v38 = vpop.permute.xlu1 %1303 }
 0x57c   :  { %4428 = vmatmul.mubr.msk.f32.vlgmr.msra.gmra.mrb[4].mxu1 %vm356_vm2, %v614_v32 }
 0x57d   :  { %4436 = vmatpush3.msra.mxu1 %v783_v23  ;;  %4437 = vmatprep.mubr.msk.f32.mxu1 %vm5171_vm1, %v5170_v37 }
 0x57e   :  { %4445 = vmatprep.subr.mxu1 %v5170_v37 }
 0x59f   :  { %v779_v33 = vpop.xlane.xlu0 %778 }
 0x5a0   :  { %4831 = vrcp.f32 %v779_v33 }
 0x5a1   :  { %4833 = vrcp.f32 %v946_v42 }
 0x5a3   :  { %v1133_v35 = vpop.xlane.xlu0 %1132 }
 0x5a4   :  { %4835 = vrcp.f32 %v1133_v35 }
 0x5a7   :  { %v1467_v43 = vpop.xlane.xlu0 %1466 }
 0x5aa   :  { %v4832_v39 = vpop.eup %4831 }
 0x5ab   :  { %v781_v40 = vmul.f32 %v4832_v39, %v4818_v10  ;;  %v1300_v44 = vpop.xlane.xlu1 %1299  ;;  %v4834_v45 = vpop.eup %4833 }
 0x5ac   :  { %4837 = vrcp.f32 %v1300_v44  ;;  %v948_v46 = vmul.f32 %v4834_v45, %v5629_v62 }
 0x5ad   :  { %4438 = vmatmul.mubr.msk.f32.vlgmr.msra.gmra.mrb[6].mxu1 %vm356_vm2, %v781_v40  ;;  %4839 = vrcp.f32 %v1467_v43 }
 0x5ae   :  { %4446 = vmatpush3.msra.mxu1 %v950_v24  ;;  %4447 = vmatprep.mubr.msk.f32.mxu1 %vm5171_vm1, %v5170_v37  ;;  %v4836_v47 = vpop.eup %4835 }
 0x5af   :  { %4455 = vmatprep.subr.mxu1 %v5170_v37  ;;  %v1135_v48 = vmul.f32 %v4836_v47, %v4820_v12  ;;  %v1638_v55 = vpop.permute.xlu1 %1637 }
 0x5b1   :  { %4448 = vmatmul.mubr.msk.f32.vlgmr.msra.gmra.mrb[8].mxu1 %vm356_vm2, %v948_v46 }
 0x5b2   :  { %4456 = vmatpush3.msra.mxu1 %v1137_v25  ;;  %4457 = vmatprep.mubr.msk.f32.mxu1 %vm5171_vm1, %v5170_v37 }
 0x5b3   :  { %v1634_v49 = vpop.xlane.xlu0 %1633  ;;  %4465 = vmatprep.subr.mxu1 %v5170_v37 }
 0x5b4   :  { %4841 = vrcp.f32 %v1634_v49 }
 0x5b5   :  { %4458 = vmatmul.mubr.msk.f32.vlgmr.msra.gmra.mrb[10].mxu1 %vm356_vm2, %v1135_v48 }
 0x5b6   :  { %v4838_v50 = vpop.eup %4837  ;;  %4466 = vmatpush3.msra.mxu1 %v1304_v38  ;;  %4467 = vmatprep.mubr.msk.f32.mxu1 %vm5171_vm1, %v5170_v37 }
 0x5b7   :  { %v1302_v51 = vmul.f32 %v4838_v50, %v4824_v19  ;;  %v1471_v52 = vpop.permute.xlu0 %1470  ;;  %4475 = vmatprep.subr.mxu1 %v5170_v37  ;;  %v4840_v53 = vpop.eup %4839 }
 0x5b8   :  { %v1469_v54 = vmul.f32 %v4840_v53, %v5641_v14  ;;  %v1868_v53 = vld [vmem:[%s6070_s10 + $0x10] sm:$0xff] }
 0x5b9   :  { %4468 = vmatmul.mubr.msk.f32.vlgmr.msra.gmra.mrb[12].mxu1 %vm356_vm2, %v1302_v51  ;;  %v1867_v51 = vld [vmem:[%s6070_s10 + $0x8] sm:$0xff] }
 0x5ba   :  { %4476 = vmatpush3.msra.mxu1 %v1471_v52  ;;  %4477 = vmatprep.mubr.msk.f32.mxu1 %vm5171_vm1, %v5170_v37 }
 0x5bb   :  { %4485 = vmatprep.subr.mxu1 %v5170_v37 }
 0x5bd   :  { %4478 = vmatmul.mubr.msk.f32.vlgmr.msra.gmra.mrb[14].mxu1 %vm356_vm2, %v1469_v54  ;;  %v1869_v54 = vld [vmem:[%s6070_s10 + $0x18] sm:$0xff] }
 0x5be   :  { %v4842_v56 = vpop.eup %4841  ;;  %4486 = vmatpush3.msra.mxu1 %v1638_v55  ;;  %4487 = vmatprep.mubr.msk.f32.mxu1 %vm5171_vm1, %v5170_v37  ;;  %v4705_v55 = vpack.c.bf16 %v1869_v54, %v1868_v53 }
 0x5bf   :  { %v1636_v57 = vmul.f32 %v4842_v56, %v5646_v21 }
 0x5c1   :  { %4488 = vmatmul.mubr.msk.f32.vlgmr.msra.gmra.mrb[16].mxu1 %vm356_vm2, %v1636_v57 }
 0x64b   :  { %v520_v58 = vpop.f32.mrb[2].mxu1 }
 0x64c   :  { %v4419_v59 = vpop.f32.mrb[3].mxu1 }
 0x64f   :  { %v687_v60 = vpop.f32.mrb[4].mxu1 }
 0x650   :  { %1026 = vrot.lane.b32.xlu0 %v687_v60, %s5164_s19  ;;  %v4429_v62 = vpop.f32.mrb[5].mxu1 }
 0x680   :  { %v854_v1 = vpop.f32.mrb[6].mxu1 }
 0x681   :  { %1030 = vrot.lane.b32.xlu1 %v854_v1, %s5157_s24  ;;  %v4439_v3 = vpop.f32.mrb[7].mxu1 }
 0x684   :  { %v1021_v6 = vpop.f32.mrb[8].mxu1 }
 0x685   :  { %1034 = vrot.lane.b32.xlu1 %v1021_v6, %s6085_s2  ;;  %v4449_v8 = vpop.f32.mrb[9].mxu1 }
 0x688   :  { %v1208_v9 = vpop.f32.mrb[10].mxu1 }
 0x689   :  { %v4459_v10 = vpop.f32.mrb[11].mxu1 }
 0x68a   :  { %v1977_v10 = vld [vmem:[%s6072_s12 + $0x8] sm:$0xff] }
 0x68c   :  { %v1375_v41 = vpop.f32.mrb[12].mxu1 }
 0x68d   :  { %1714 = vrot.lane.b32.xlu0 %v1375_v41, %s5164_s19  ;;  %v4469_v12 = vpop.f32.mrb[13].mxu1 }
 0x68e   :  { %v1978_v12 = vld [vmem:[%s6072_s12 + $0x10] sm:$0xff] }
 0x690   :  { %v1542_v11 = vpop.f32.mrb[14].mxu1 }
 0x691   :  { %1718 = vrot.lane.b32.xlu0 %v1542_v11, %s5157_s24  ;;  %v4479_v13 = vpop.f32.mrb[15].mxu1  ;;  %v1979_v11 = vld [vmem:[%s6072_s12 + $0x18] sm:$0xff] }
 0x692   :  { %v4713_v13 = vpack.c.bf16 %v1979_v11, %v1978_v12 }
 0x694   :  { %v1709_v14 = vpop.f32.mrb[16].mxu1 }
 0x695   :  { %1722 = vrot.lane.b32.xlu1 %v1709_v14, %s6085_s2  ;;  %v4489_v15 = vpop.f32.mrb[17].mxu1  ;;  %v1980_v14 = vld [vmem:[%s6072_s12 + $0x20] sm:$0xff] }
 0x696   :  { %v1981_v15 = vld [vmem:[%s6072_s12 + $0x28] sm:$0xff] }
 0x6c2   :  { %v1027_v16 = vpop.permute.xlu0 %1026 }
 0x6c3   :  { %v1037_v19 = vsel %vm356_vm2, %v520_v58, %v1027_v16  ;;  %v4717_v16 = vpack.c.bf16 %v1981_v15, %v1980_v14  ;;  %v4203_v14 = vld [vmem:[#allocation17] ss:$0 sm:$0xff] }
 0x6f3   :  { %v1031_v17 = vpop.permute.xlu1 %1030 }
 0x6f4   :  { %v1039_v20 = vsel %vm1038_vm3, %v1037_v19, %v1031_v17  ;;  %v1982_v17 = vld [vmem:[%s6072_s12 + $0x30] sm:$0xff]  ;;  %v1983_v19 = vld [vmem:[%s6072_s12 + $0x38] sm:$0xff] }
 0x6f7   :  { %v1035_v21 = vpop.permute.xlu1 %1034 }
 0x6f8   :  { %v1041_v22 = vsel %vm1040_vm4, %v1039_v20, %v1035_v21  ;;  %v4721_v20 = vpack.c.bf16 %v1983_v19, %v1982_v17  ;;  %v4197_v21 = vld [vmem:[#allocation14] ss:$0 sm:$0xff]  ;;  %v4204_v19 = vld [vmem:[#allocation19] ss:$0 sm:$0xff] }
 0x6f9   :  { %4498 = vmatprep.mubr.msk.f32.mxu0 %vm216_vm0, %v1041_v22 }
 0x6ff   :  { %v1715_v23 = vpop.permute.xlu0 %1714 }
 0x700   :  { %v1725_v25 = vsel %vm356_vm2, %v1208_v9, %v1715_v23  ;;  %v1976_v9 = vld [vmem:[%s6072_s12] sm:$0xff] }
 0x701   :  { %v4709_v41 = vpack.c.bf16 %v1977_v10, %v1976_v9 }
 0x703   :  { %v1719_v24 = vpop.permute.xlu0 %1718  ;;  %4710 = vmatprep.subr.bf16.mxu0 %v4709_v41 }
 0x704   :  { %v1726_v26 = vsel %vm1038_vm3, %v1725_v25, %v1719_v24 }
 0x707   :  { %v1723_v27 = vpop.permute.xlu1 %1722 }
 0x708   :  { %v1727_v28 = vsel %vm1040_vm4, %v1726_v26, %v1723_v27 }
 0x709   :  { %4499 = vmatmul.mubr.msk.f32.vlgmr.msra.gmra.mrb[16].mxu0 %vm216_vm0, %v1727_v28 }
 0x70a   :  { %4712 = vmatpush3.bf16.msra.mxu0 %v4709_v41 }
 0x70b   :  { %4714 = vmatprep.subr.bf16.mxu0 %v4713_v13 }
 0x70e   :  { %4716 = vmatpush3.bf16.msra.mxu0 %v4713_v13 }
 0x70f   :  { %4718 = vmatprep.subr.bf16.mxu0 %v4717_v16 }
 0x712   :  { %4720 = vmatpush3.bf16.msra.mxu0 %v4717_v16 }
 0x713   :  { %4722 = vmatprep.subr.bf16.mxu0 %v4721_v20 }
 0x716   :  { %4724 = vmatpush3.bf16.msra.mxu0 %v4721_v20 }
 0x717   :  { %4552 = vmatprep.subr.mxu0 %v5170_v37 }
 0x7dc   :  { %v4500_v30 = vpop.f32.mrb[16].mxu0 }
 0x7dd   :  { %v1817_v31 = vadd.f32 %v4500_v30, %v4192_v29  ;;  %v1811_v32 = vpop.f32.mrb[17].mxu0 }
 0x7de   :  { %v1812_v42 = vadd.f32 %v4192_v29, %v1811_v32 }
 0x7df   :  { %v1821_v33 = vadd.f32 %v1817_v31, %v5508_v36 }
 0x7e0   :  { %v1820_v35 = vadd.f32 %v1812_v42, %v5504_v34  ;;  %v1866_v34 = vld [vmem:[%s6070_s10] sm:$0xff] }
 0x7e1   :  { %v1827_v38 = vsel %vm216_vm0, %v1821_v33, 0.0  ;;  %v4701_v52 = vpack.c.bf16 %v1867_v51, %v1866_v34 }
 0x7e2   :  { %1828 = vadd.xlane.f32.xlu1 %v1827_v38  ;;  %v1824_v39 = vsel %vm216_vm0, %v1820_v35, 0.0 }
 0x7e3   :  { %1825 = vadd.xlane.f32.xlu0 %v1824_v39  ;;  %4702 = vmatprep.subr.bf16.mxu1 %v4701_v52 }
 0x7e4   :  { %4704 = vmatpush3.bf16.msra.mxu1 %v4701_v52 }
 0x7e5   :  { %4706 = vmatprep.subr.bf16.mxu1 %v4705_v55 }
 0x7e8   :  { %4708 = vmatpush3.bf16.msra.mxu1 %v4705_v55 }
 0x86f   :  { %v1829_v40 = vpop.xlane.xlu1 %1828 }
 0x870   :  { %v1831_v43 = vmul.f32 0.03125, %v1829_v40  ;;  %v1826_v44 = vpop.xlane.xlu0 %1825 }
 0x871   :  { %v1830_v45 = vmul.f32 0.03125, %v1826_v44 }
 0x872   :  { %v1833_v46 = vsub.f32 %v1821_v33, %v1831_v43 }
 0x873   :  { %v1832_v47 = vsub.f32 %v1820_v35, %v1830_v45 }
 0x874   :  { %v1835_v50 = vmul.f32 %v1833_v46, %v1833_v46 }
 0x875   :  { %v1834_v48 = vmul.f32 %v1832_v47, %v1832_v47 }
 0x876   :  { %v1839_v36 = vsel %vm216_vm0, %v1835_v50, 0.0 }
 0x877   :  { %v1836_v49 = vsel %vm216_vm0, %v1834_v48, 0.0  ;;  %v4200_v48 = vld [vmem:[#allocation16] ss:$0 sm:$0xff] }
 0x878   :  { %1837 = vadd.xlane.f32.xlu0 %v1836_v49 }
 0x87c   :  { %1840 = vadd.xlane.f32.xlu0 %v1839_v36 }
 0x905   :  { %v1838_v56 = vpop.xlane.xlu0 %1837 }
 0x906   :  { %v1842_v57 = vmul.f32 0.03125, %v1838_v56 }
 0x908   :  { %v1844_v58 = vadd.f32 1e-12, %v1842_v57 }
 0x909   :  { %v1841_v59 = vpop.xlane.xlu0 %1840 }
 0x90a   :  { %4843 = vrsqrt.f32 %v1844_v58  ;;  %v1843_v60 = vmul.f32 0.03125, %v1841_v59 }
 0x90c   :  { %v1845_v62 = vadd.f32 1e-12, %v1843_v60 }
 0x90e   :  { %4845 = vrsqrt.f32 %v1845_v62 }
 0x914   :  { %v4844_v63 = vpop.eup %4843 }
 0x915   :  { %v1848_v1 = vmul.f32 %v4844_v63, %v1832_v47 }
 0x917   :  { %v1856_v3 = vmul.f32 %v4195_v0, %v1848_v1 }
 0x918   :  { %v4846_v4 = vpop.eup %4845 }
 0x919   :  { %v1849_v5 = vmul.f32 %v4846_v4, %v1833_v46  ;;  %v1864_v6 = vadd.f32 %v4196_v2, %v1856_v3  ;;  %v4206_v3 = vld [vmem:[%s6095_s11 + $0x28] sm:$0xff] }
 0x91b   :  { %v1857_v7 = vmul.f32 %v4195_v0, %v1849_v5  ;;  %4509 = vmatprep.mubr.msk.f32.mxu1 %vm216_vm0, %v1864_v6  ;;  %v4207_v5 = vld [vmem:[%s6095_s11 + $0x30] sm:$0xff] }
 0x91d   :  { %v1865_v8 = vadd.f32 %v4196_v2, %v1857_v7  ;;  %v4205_v2 = vld [vmem:[%s6095_s11 + $0x20] sm:$0xff] }
 0x91e   :  { %v4725_v4 = vpack.c.bf16 %v4206_v3, %v4205_v2 }
 0x91f   :  { %4510 = vmatmul.mubr.msk.f32.vlgmr.msra.gmra.mrb[18].mxu1 %vm216_vm0, %v1865_v8 }
 0x920   :  { %4726 = vmatprep.subr.bf16.mxu1 %v4725_v4 }
 0x921   :  { %4728 = vmatpush3.bf16.msra.mxu1 %v4725_v4 }
 0x9f2   :  { %v4511_v22 = vpop.f32.mrb[18].mxu1 }
 0x9f3   :  { %v1955_v23 = vadd.f32 %v4511_v22, %v4197_v21  ;;  %v1949_v24 = vpop.f32.mrb[19].mxu1 }
 0x9f4   :  { %v1950_v25 = vadd.f32 %v4197_v21, %v1949_v24  ;;  %v4209_v24 = vld [vmem:[#allocation8 + $0x1] ss:$0 sm:$0xff] }
 0x9f5   :  { %v1961_v26 = vmul.f32 0.044715, %v1955_v23  ;;  %v1959_v45 = vmul.f32 0.5, %v1955_v23 }
 0x9f6   :  { %v1960_v27 = vmul.f32 0.044715, %v1950_v25  ;;  %v1958_v43 = vmul.f32 0.5, %v1950_v25 }
 0x9f7   :  { %v1963_v28 = vmul.f32 %v1961_v26, %v1955_v23 }
 0x9f8   :  { %v1962_v29 = vmul.f32 %v1960_v27, %v1950_v25 }
 0x9f9   :  { %v1965_v30 = vmul.f32 %v1963_v28, %v1955_v23 }
 0x9fa   :  { %v1964_v31 = vmul.f32 %v1962_v29, %v1950_v25 }
 0x9fb   :  { %v1967_v32 = vadd.f32 %v1965_v30, %v1955_v23 }
 0x9fc   :  { %v1966_v42 = vadd.f32 %v1964_v31, %v1950_v25 }
 0x9fd   :  { %v1969_v33 = vmul.f32 0.7978846, %v1967_v32 }
 0x9fe   :  { %v1968_v35 = vmul.f32 0.7978846, %v1966_v42 }
 0x9ff   :  { %4847 = vtanh.f32 %v1969_v33 }
 0xa00   :  { %4849 = vtanh.f32 %v1968_v35 }
 0xa09   :  { %v4848_v38 = vpop.eup %4847 }
 0xa0a   :  { %v4850_v39 = vpop.eup %4849  ;;  %v1973_v40 = vadd.f32 1.0, %v4848_v38 }
 0xa0b   :  { %v1972_v44 = vadd.f32 1.0, %v4850_v39 }
 0xa0c   :  { %v1975_v47 = vmul.f32 %v1973_v40, %v1959_v45 }
 0xa0d   :  { %v1974_v46 = vmul.f32 %v1972_v44, %v1958_v43 }
 0xa0f   :  { %4528 = vmatprep.mubr.msk.f32.mxu0 %vm1991_vm5, %v1974_v46 }
 0xa10   :  { %4529 = vmatmul.mubr.msk.f32.vlgmr.msra.gmra.mrb[18].mxu0 %vm1991_vm5, %v1975_v47 }
 0xa11   :  { %4554 = vmatprep.mubr.msk.f32.mxu0 %vm5171_vm1, %v5170_v37 }
 0xae3   :  { %v4530_v49 = vpop.f32.mrb[18].mxu0 }
 0xae4   :  { %v2070_v50 = vadd.f32 %v4530_v49, %v4200_v48  ;;  %v2064_v36 = vpop.f32.mrb[19].mxu0 }
 0xae5   :  { %v2065_v34 = vadd.f32 %v4200_v48, %v2064_v36 }
 0xae6   :  { %v2074_v51 = vadd.f32 %v2070_v50, %v1865_v8 }
 0xae7   :  { %v2073_v52 = vadd.f32 %v2065_v34, %v1864_v6  ;;  %v4208_v6 = vld [vmem:[%s6095_s11 + $0x38] sm:$0xff] }
 0xae8   :  { %v2080_v53 = vsel %vm216_vm0, %v2074_v51, 0.0  ;;  %v4729_v7 = vpack.c.bf16 %v4208_v6, %v4207_v5 }
 0xae9   :  { %2081 = vadd.xlane.f32.xlu1 %v2080_v53  ;;  %v2077_v54 = vsel %vm216_vm0, %v2073_v52, 0.0 }
 0xaea   :  { %2078 = vadd.xlane.f32.xlu0 %v2077_v54  ;;  %4730 = vmatprep.subr.bf16.mxu1 %v4729_v7 }
 0xaeb   :  { %4732 = vmatpush3.bf16.msra.mxu1 %v4729_v7 }
 0xaec   :  { %4542 = vmatprep.subr.mxu1 %v5170_v37 }
 0xb76   :  { %v2082_v55 = vpop.xlane.xlu1 %2081 }
 0xb77   :  { %v2084_v56 = vmul.f32 0.03125, %v2082_v55  ;;  %v2079_v57 = vpop.xlane.xlu0 %2078 }
 0xb78   :  { %v2083_v58 = vmul.f32 0.03125, %v2079_v57 }
 0xb79   :  { %v2086_v59 = vsub.f32 %v2074_v51, %v2084_v56 }
 0xb7a   :  { %v2085_v60 = vsub.f32 %v2073_v52, %v2083_v58 }
 0xb7b   :  { %v2088_v62 = vmul.f32 %v2086_v59, %v2086_v59 }
 0xb7c   :  { %v2087_v63 = vmul.f32 %v2085_v60, %v2085_v60 }
 0xb7d   :  { %v2092_v0 = vsel %vm216_vm0, %v2088_v62, 0.0 }
 0xb7e   :  { %2093 = vadd.xlane.f32.xlu1 %v2092_v0  ;;  %v2089_v1 = vsel %vm216_vm0, %v2087_v63, 0.0 }
 0xb7f   :  { %2090 = vadd.xlane.f32.xlu0 %v2089_v1 }
 0xc0b   :  { %v2094_v8 = vpop.xlane.xlu1 %2093 }
 0xc0c   :  { %v2096_v9 = vmul.f32 0.03125, %v2094_v8  ;;  %v2091_v10 = vpop.xlane.xlu0 %2090 }
 0xc0d   :  { %v2095_v41 = vmul.f32 0.03125, %v2091_v10 }
 0xc0e   :  { %v2098_v12 = vadd.f32 1e-12, %v2096_v9 }
 0xc0f   :  { %v2097_v11 = vadd.f32 1e-12, %v2095_v41 }
 0xc10   :  { %4851 = vrsqrt.f32 %v2098_v12 }
 0xc11   :  { %4853 = vrsqrt.f32 %v2097_v11 }
 0xc1a   :  { %v4852_v13 = vpop.eup %4851 }
 0xc1b   :  { %v4854_v15 = vpop.eup %4853  ;;  %v2102_v16 = vmul.f32 %v4852_v13, %v2086_v59 }
 0xc1c   :  { %v2101_v17 = vmul.f32 %v4854_v15, %v2085_v60 }
 0xc1d   :  { %v2110_v20 = vmul.f32 %v4203_v14, %v2102_v16 }
 0xc1e   :  { %v2109_v21 = vmul.f32 %v4203_v14, %v2101_v17 }
 0xc1f   :  { %v5780_v23 = vadd.f32 %v4204_v19, %v2110_v20 }
 0xc20   :  { %v5778_v22 = vadd.f32 %v4204_v19, %v2109_v21 }
 0xc22   :  { %4539 = vmatprep.mubr.msk.f32.mxu1 %vm216_vm0, %v5778_v22 }
 0xc23   :  { %4540 = vmatmul.mubr.msk.f32.vlgmr.msra.gmra.mrb[20].mxu1 %vm216_vm0, %v5780_v23 }
 0xc24   :  { %4544 = vmatprep.mubr.msk.f32.mxu1 %vm5171_vm1, %v5170_v37 }
 0xcf6   :  { %v4541_v25 = vpop.f32.mrb[20].mxu1 }
 0xcf7   :  { %v2204_v26 = vpop.f32.mrb[21].mxu1  ;;  %v5802_v28 = vadd.f32 %v4541_v25, %v4209_v24 }
 0xcf8   :  { %v5788_v27 = vadd.f32 %v4209_v24, %v2204_v26 }
 0xcfa   :  { %2381 = vrot.lane.b32.xlu1 %v5788_v27, %s5172_s22  ;;  %2214 = vrot.lane.b32.xlu0 %v5788_v27, %s5173_s28 }
 0xcfe   :  { %2379 = vrot.lane.b32.xlu1 %v5788_v27, %s5174_s8  ;;  %2546 = vrot.lane.b32.xlu0 %v5788_v27, %s5175_s7 }
 0xd02   :  { %2548 = vrot.lane.b32.xlu1 %v5788_v27, %s5176_s26  ;;  %2713 = vrot.lane.b32.xlu0 %v5788_v27, %s5177_s5 }
 0xd06   :  { %2715 = vrot.lane.b32.xlu1 %v5788_v27, %s5178_s29  ;;  %3063 = vrot.lane.b32.xlu0 %v5802_v28, %s5172_s22 }
 0xd0a   :  { %2896 = vrot.lane.b32.xlu1 %v5802_v28, %s5173_s28  ;;  %3230 = vrot.lane.b32.xlu0 %v5802_v28, %s5176_s26 }
 0xd0e   :  { %3061 = vrot.lane.b32.xlu1 %v5802_v28, %s5174_s8  ;;  %3397 = vrot.lane.b32.xlu0 %v5802_v28, %s5178_s29 }
 0xd12   :  { %3228 = vrot.lane.b32.xlu1 %v5802_v28, %s5175_s7 }
 0xd16   :  { %3395 = vrot.lane.b32.xlu1 %v5802_v28, %s5177_s5 }
 0xd6c   :  { %v2382_v29 = vpop.permute.xlu1 %2381  ;;  %v2215_v30 = vpop.permute.xlu0 %2214 }
 0xd6d   :  { %4543 = vmatpush3.xpose.msk.msra.mxu1 %vm356_vm2, %v2215_v30  ;;  %4553 = vmatpush3.xpose.msk.msra.mxu0 %vm356_vm2, %v2382_v29 }
 0xd6e   :  { %4562 = vmatprep.subr.mxu0 %v5170_v37  ;;  %4547 = vmatprep.subr.mxu1 %v5170_v37 }
 0xd70   :  { %v2380_v31 = vpop.permute.xlu1 %2379  ;;  %4545 = vmatmul.mubr.msk.f32.vlgmr.msra.gmra.mrb[22].mxu1 %vm356_vm2, %v5788_v27  ;;  %v2547_v32 = vpop.permute.xlu0 %2546 }
 0xd71   :  { %4555 = vmatmul.mubr.msk.f32.vlgmr.msra.gmra.mrb[20].mxu0 %vm356_vm2, %v2380_v31  ;;  %4549 = vmatprep.mubr.msk.f32.mxu1 %vm5171_vm1, %v5170_v37 }
 0xd72   :  { %4564 = vmatprep.mubr.msk.f32.mxu0 %vm5171_vm1, %v5170_v37 }
 0xd74   :  { %v2549_v42 = vpop.permute.xlu1 %2548  ;;  %v2714_v33 = vpop.permute.xlu0 %2713 }
 0xd75   :  { %4563 = vmatpush3.xpose.msk.msra.mxu0 %vm356_vm2, %v2549_v42 }
 0xd76   :  { %4572 = vmatprep.subr.mxu0 %v5170_v37 }
 0xd78   :  { %v2716_v35 = vpop.permute.xlu1 %2715  ;;  %4565 = vmatmul.mubr.msk.f32.vlgmr.msra.gmra.mrb[22].mxu0 %vm356_vm2, %v2547_v32  ;;  %v3064_v38 = vpop.permute.xlu0 %3063 }
 0xd79   :  { %4573 = vmatpush3.xpose.msk.msra.mxu0 %vm356_vm2, %v2716_v35  ;;  %4574 = vmatprep.mubr.msk.f32.mxu0 %vm5171_vm1, %v5170_v37 }
 0xd7a   :  { %4582 = vmatprep.subr.mxu0 %v5170_v37 }
 0xd7c   :  { %v2897_v39 = vpop.permute.xlu1 %2896  ;;  %4575 = vmatmul.mubr.msk.f32.vlgmr.msra.gmra.mrb[24].mxu0 %vm356_vm2, %v2714_v33  ;;  %v3231_v43 = vpop.permute.xlu0 %3230 }
 0xd7d   :  { %4583 = vmatpush3.xpose.msk.msra.mxu0 %vm356_vm2, %v2897_v39  ;;  %4584 = vmatprep.mubr.msk.f32.mxu0 %vm5171_vm1, %v5170_v37 }
 0xd7e   :  { %4592 = vmatprep.subr.mxu0 %v5170_v37 }
 0xd80   :  { %v3062_v40 = vpop.permute.xlu1 %3061  ;;  %4585 = vmatmul.mubr.msk.f32.vlgmr.msra.gmra.mrb[26].mxu0 %vm356_vm2, %v5802_v28  ;;  %v3398_v45 = vpop.permute.xlu0 %3397 }
 0xd81   :  { %4593 = vmatpush3.xpose.msk.msra.mxu0 %vm356_vm2, %v3064_v38  ;;  %4594 = vmatprep.mubr.msk.f32.mxu0 %vm5171_vm1, %v5170_v37 }
 0xd82   :  { %4602 = vmatprep.subr.mxu0 %v5170_v37 }
 0xd84   :  { %4595 = vmatmul.mubr.msk.f32.vlgmr.msra.gmra.mrb[28].mxu0 %vm356_vm2, %v3062_v40  ;;  %v3229_v44 = vpop.permute.xlu1 %3228 }
 0xd85   :  { %4603 = vmatpush3.xpose.msk.msra.mxu0 %vm356_vm2, %v3231_v43  ;;  %4604 = vmatprep.mubr.msk.f32.mxu0 %vm5171_vm1, %v5170_v37 }
 0xd86   :  { %4612 = vmatprep.subr.mxu0 %v5170_v37 }
 0xd88   :  { %4605 = vmatmul.mubr.msk.f32.vlgmr.msra.gmra.mrb[30].mxu0 %vm356_vm2, %v3229_v44  ;;  %v3396_v46 = vpop.permute.xlu1 %3395 }
 0xd89   :  { %4613 = vmatpush3.xpose.msk.msra.mxu0 %vm356_vm2, %v3398_v45  ;;  %4614 = vmatprep.mubr.msk.f32.mxu0 %vm5171_vm1, %v5170_v37 }
 0xd8c   :  { %4615 = vmatmul.mubr.msk.f32.vlgmr.msra.gmra.mrb[32].mxu0 %vm356_vm2, %v3396_v46 }
 0xe43   :  { %v2286_v47 = vpop.f32.mrb[22].mxu1 }
 0xe44   :  { %v2290_v48 = vmul.f32 0.35355338, %v2286_v47  ;;  %v4546_v49 = vpop.f32.mrb[23].mxu1  ;;  %v2453_v50 = vpop.f32.mrb[20].mxu0 }
 0xe45   :  { %v2457_v36 = vmul.f32 0.35355338, %v2453_v50  ;;  %v4556_v34 = vpop.f32.mrb[21].mxu0 }
 0xe46   :  { %v2291_v51 = vadd.f32 %v2290_v48, %v5589_v61 }
 0xe47   :  { %v2458_v52 = vadd.f32 %v2457_v36, %v5589_v61 }
 0xe48   :  { %v2292_v53 = vsel %vm356_vm2, %v2291_v51, -inf }
 0xe49   :  { %2293 = vmax.xlane.f32.xlu0 %v2292_v53  ;;  %v2459_v54 = vsel %vm356_vm2, %v2458_v52, -inf }
 0xe4a   :  { %2460 = vmax.xlane.f32.xlu1 %v2459_v54 }
 0xe4b   :  { %v2620_v55 = vpop.f32.mrb[22].mxu0 }
 0xe4c   :  { %v2624_v56 = vmul.f32 0.35355338, %v2620_v55  ;;  %v4566_v57 = vpop.f32.mrb[23].mxu0 }
 0xe4e   :  { %v5864_v58 = vadd.f32 %v2624_v56, %v5589_v61 }
 0xe4f   :  { %v2787_v59 = vpop.f32.mrb[24].mxu0 }
 0xe50   :  { %v2791_v60 = vmul.f32 0.35355338, %v2787_v59  ;;  %v4576_v62 = vpop.f32.mrb[25].mxu0  ;;  %v2626_v63 = vsel %vm356_vm2, %v5864_v58, -inf }
 0xe51   :  { %2627 = vmax.xlane.f32.xlu0 %v2626_v63 }
 0xe52   :  { %v2792_v0 = vadd.f32 %v2791_v60, %v5589_v61 }
 0xe53   :  { %v2968_v1 = vpop.f32.mrb[26].mxu0 }
 0xe54   :  { %v2972_v2 = vmul.f32 0.35355338, %v2968_v1  ;;  %v4586_v3 = vpop.f32.mrb[27].mxu0  ;;  %v2793_v4 = vsel %vm356_vm2, %v2792_v0, -inf }
 0xe55   :  { %2794 = vmax.xlane.f32.xlu0 %v2793_v4 }
 0xe56   :  { %v2973_v5 = vadd.f32 %v2972_v2, %v5601_v18 }
 0xe57   :  { %v3135_v6 = vpop.f32.mrb[28].mxu0 }
 0xe58   :  { %v3139_v7 = vmul.f32 0.35355338, %v3135_v6  ;;  %v4596_v8 = vpop.f32.mrb[29].mxu0  ;;  %v2974_v9 = vsel %vm356_vm2, %v2973_v5, -inf }
 0xe59   :  { %2975 = vmax.xlane.f32.xlu0 %v2974_v9 }
 0xe5a   :  { %v3140_v10 = vadd.f32 %v3139_v7, %v5601_v18 }
 0xe5b   :  { %v3302_v41 = vpop.f32.mrb[30].mxu0 }
 0xe5c   :  { %v3306_v12 = vmul.f32 0.35355338, %v3302_v41  ;;  %v4606_v11 = vpop.f32.mrb[31].mxu0  ;;  %v3141_v61 = vsel %vm356_vm2, %v3140_v10, -inf }
 0xe5d   :  { %3142 = vmax.xlane.f32.xlu1 %v3141_v61 }
 0xe5e   :  { %v3307_v13 = vadd.f32 %v3306_v12, %v5601_v18 }
 0xe5f   :  { %v3469_v14 = vpop.f32.mrb[32].mxu0 }
 0xe60   :  { %v4616_v15 = vpop.f32.mrb[33].mxu0  ;;  %v3308_v16 = vsel %vm356_vm2, %v3307_v13, -inf  ;;  %v3473_v17 = vmul.f32 0.35355338, %v3469_v14 }
 0xe61   :  { %3309 = vmax.xlane.f32.xlu0 %v3308_v16 }
 0xe62   :  { %v3474_v19 = vadd.f32 %v3473_v17, %v5601_v18 }
 0xe64   :  { %v3475_v20 = vsel %vm356_vm2, %v3474_v19, -inf }
 0xe6e   :  { %2303 = vrot.lane.b32.xlu1 %v5788_v27, %s5179_s30 }
 0xe92   :  { %3476 = vmax.xlane.f32.xlu1 %v3475_v20 }
 0xea3   :  { %2637 = vrot.lane.b32.xlu1 %v5788_v27, %s5180_s13 }
 0xea7   :  { %2804 = vrot.lane.b32.xlu1 %v5788_v27, %s5181_s21 }
 0xeab   :  { %2985 = vrot.lane.b32.xlu1 %v5802_v28, %s5179_s30  ;;  %s6097_s30 = smov 24  }
 0xed6   :  { %v2294_v21 = vpop.xlane.xlu0 %2293 }
 0xed7   :  { %v2295_v24 = vsub.f32 %v2291_v51, %v2294_v21  ;;  %v2461_v25 = vpop.xlane.xlu1 %2460 }
 0xed8   :  { %v2462_v26 = vsub.f32 %v2458_v52, %v2461_v25 }
 0xed9   :  { %v2296_v29 = vmul.f32 1.442695, %v2295_v24 }
 0xeda   :  { %v2463_v30 = vmul.f32 1.442695, %v2462_v26 }
 0xedb   :  { %4855 = vpow2.f32 %v2296_v29 }
 0xedc   :  { %4857 = vpow2.f32 %v2463_v30 }
 0xede   :  { %v2628_v18 = vpop.xlane.xlu0 %2627 }
 0xedf   :  { %v2629_v46 = vsub.f32 %v5864_v58, %v2628_v18 }
 0xee1   :  { %v2630_v48 = vmul.f32 1.442695, %v2629_v46 }
 0xee2   :  { %v2795_v31 = vpop.xlane.xlu0 %2794 }
 0xee3   :  { %v2796_v32 = vsub.f32 %v2792_v0, %v2795_v31 }
 0xee5   :  { %v4856_v42 = vpop.eup %4855  ;;  %v2797_v33 = vmul.f32 1.442695, %v2796_v32 }
 0xee6   :  { %v5886_v35 = vpop.eup %4857  ;;  %v2298_v38 = vsel %vm356_vm2, %v4856_v42, 0.0  ;;  %v2976_v47 = vpop.xlane.xlu0 %2975 }
 0xee7   :  { %4859 = vpow2.f32 %v2797_v33  ;;  %2299 = vadd.xlane.f32.xlu0 %v2298_v38  ;;  %v2465_v39 = vsel %vm356_vm2, %v5886_v35, 0.0  ;;  %v2977_v49 = vsub.f32 %v2973_v5, %v2976_v47 }
 0xee8   :  { %2466 = vadd.xlane.f32.xlu1 %v2465_v39  ;;  %4861 = vpow2.f32 %v2630_v48  ;;  %v4238_v48 = vld [vmem:[%s6066_s6 + $0x30] sm:$0xff] }
 0xee9   :  { %v2978_v36 = vmul.f32 1.442695, %v2977_v49  ;;  %v4239_v49 = vld [vmem:[%s6066_s6 + $0x38] sm:$0xff] }
 0xeea   :  { %v3143_v40 = vpop.xlane.xlu1 %3142 }
 0xeeb   :  { %4863 = vpow2.f32 %v2978_v36  ;;  %v3144_v51 = vsub.f32 %v3140_v10, %v3143_v40  ;;  %v4737_v36 = vpack.c.bf16 %v4239_v49, %v4238_v48 }
 0xeed   :  { %v3145_v53 = vmul.f32 1.442695, %v3144_v51 }
 0xeee   :  { %v2304_v43 = vpop.permute.xlu1 %2303  ;;  %v3310_v50 = vpop.xlane.xlu0 %3309 }
 0xeef   :  { %4548 = vmatpush3.msra.mxu1 %v2304_v43  ;;  %v3311_v34 = vsub.f32 %v3307_v13, %v3310_v50  ;;  %v4236_v43 = vld [vmem:[%s6066_s6 + $0x20] sm:$0xff] }
 0xef0   :  { %4557 = vmatprep.subr.mxu1 %v5170_v37 }
 0xef1   :  { %v5892_v44 = vpop.eup %4859  ;;  %v3312_v52 = vmul.f32 1.442695, %v3311_v34 }
 0xef2   :  { %v2799_v45 = vsel %vm356_vm2, %v5892_v44, 0.0  ;;  %v4862_v54 = vpop.eup %4861 }
 0xef3   :  { %2800 = vadd.xlane.f32.xlu1 %v2799_v45  ;;  %4865 = vpow2.f32 %v3312_v52 }
 0xef4   :  { %4867 = vpow2.f32 %v3145_v53 }
 0xef5   :  { %v4864_v55 = vpop.eup %4863 }
 0xef6   :  { %v2980_v57 = vsel %vm356_vm2, %v4864_v55, 0.0 }
 0xefd   :  { %2470 = vrot.lane.b32.xlu0 %v5788_v27, %s5182_s15  ;;  %v2632_v27 = vsel %vm356_vm2, %v4862_v54, 0.0  ;;  %v5903_v58 = vpop.eup %4865 }
 0xefe   :  { %v3314_v62 = vsel %vm356_vm2, %v5903_v58, 0.0  ;;  %v4868_v63 = vpop.eup %4867 }
 0xeff   :  { %v3147_v0 = vsel %vm356_vm2, %v4868_v63, 0.0 }
 0xf04   :  { %3152 = vrot.lane.b32.xlu1 %v5802_v28, %s5182_s15 }
 0xf1c   :  { %2633 = vadd.xlane.f32.xlu0 %v2632_v27 }
 0xf1f   :  { %v3477_v56 = vpop.xlane.xlu1 %3476 }
 0xf20   :  { %v3478_v59 = vsub.f32 %v3474_v19, %v3477_v56  ;;  %2981 = vadd.xlane.f32.xlu0 %v2980_v57 }
 0xf22   :  { %v3479_v60 = vmul.f32 1.442695, %v3478_v59 }
 0xf23   :  { %v2638_v3 = vpop.permute.xlu1 %2637 }
 0xf24   :  { %4869 = vpow2.f32 %v3479_v60  ;;  %3315 = vadd.xlane.f32.xlu0 %v3314_v62 }
 0xf27   :  { %v2805_v4 = vpop.permute.xlu1 %2804 }
 0xf28   :  { %3148 = vadd.xlane.f32.xlu1 %v3147_v0 }
 0xf2b   :  { %v2986_v5 = vpop.permute.xlu1 %2985 }
 0xf2e   :  { %v5908_v1 = vpop.eup %4869 }
 0xf2f   :  { %v3481_v2 = vsel %vm356_vm2, %v5908_v1, 0.0 }
 0xf30   :  { %3482 = vadd.xlane.f32.xlu0 %v3481_v2 }
 0xf39   :  { %3486 = vrot.lane.b32.xlu1 %v5802_v28, %s5181_s21 }
 0xf46   :  { %3319 = vrot.lane.b32.xlu0 %v5802_v28, %s5180_s13 }
 0xf74   :  { %v2300_v6 = vpop.xlane.xlu0 %2299 }
 0xf75   :  { %4871 = vrcp.f32 %v2300_v6  ;;  %v2467_v7 = vpop.xlane.xlu1 %2466 }
 0xf76   :  { %4873 = vrcp.f32 %v2467_v7  ;;  %v4240_v7 = vld [vmem:[#allocation10 + $0x1] ss:$0 sm:$0xff] }
 0xf78   :  { %v2471_v41 = vpop.permute.xlu0 %2470 }
 0xf7f   :  { %v4872_v8 = vpop.eup %4871 }
 0xf80   :  { %v2302_v9 = vmul.f32 %v4872_v8, %v4856_v42  ;;  %v4874_v10 = vpop.eup %4873  ;;  %v2801_v28 = vpop.xlane.xlu1 %2800 }
 0xf81   :  { %v2469_v12 = vmul.f32 %v4874_v10, %v5886_v35 }
 0xf82   :  { %4550 = vmatmul.mubr.msk.f32.vlgmr.msra.gmra.mrb[24].mxu1 %vm356_vm2, %v2302_v9 }
 0xf83   :  { %4558 = vmatpush3.msra.mxu1 %v2471_v41  ;;  %4559 = vmatprep.mubr.msk.f32.mxu1 %vm5171_vm1, %v5170_v37 }
 0xf84   :  { %4567 = vmatprep.subr.mxu1 %v5170_v37  ;;  %v3153_v13 = vpop.permute.xlu1 %3152 }
 0xf86   :  { %4560 = vmatmul.mubr.msk.f32.vlgmr.msra.gmra.mrb[26].mxu1 %vm356_vm2, %v2469_v12 }
 0xf87   :  { %4568 = vmatpush3.msra.mxu1 %v2638_v3  ;;  %4569 = vmatprep.mubr.msk.f32.mxu1 %vm5171_vm1, %v5170_v37 }
 0xf88   :  { %4577 = vmatprep.subr.mxu1 %v5170_v37 }
 0xfa9   :  { %v2634_v11 = vpop.xlane.xlu0 %2633 }
 0xfaa   :  { %4875 = vrcp.f32 %v2634_v11 }
 0xfab   :  { %4877 = vrcp.f32 %v2801_v28 }
 0xfad   :  { %v2982_v61 = vpop.xlane.xlu0 %2981 }
 0xfae   :  { %4879 = vrcp.f32 %v2982_v61 }
 0xfb1   :  { %v3316_v16 = vpop.xlane.xlu0 %3315 }
 0xfb4   :  { %v4876_v14 = vpop.eup %4875 }
 0xfb5   :  { %v2636_v15 = vmul.f32 %v4876_v14, %v4862_v54  ;;  %v3149_v17 = vpop.xlane.xlu1 %3148  ;;  %v4878_v19 = vpop.eup %4877 }
 0xfb6   :  { %4881 = vrcp.f32 %v3149_v17  ;;  %v2803_v20 = vmul.f32 %v4878_v19, %v5892_v44  ;;  %v4237_v44 = vld [vmem:[%s6066_s6 + $0x28] sm:$0xff] }
 0xfb7   :  { %4570 = vmatmul.mubr.msk.f32.vlgmr.msra.gmra.mrb[28].mxu1 %vm356_vm2, %v2636_v15  ;;  %4883 = vrcp.f32 %v3316_v16  ;;  %v4733_v46 = vpack.c.bf16 %v4237_v44, %v4236_v43  ;;  %v4244_v44 = vld [vmem:[#allocation13 + $0x1] ss:$0 sm:$0xff] }
 0xfb8   :  { %4578 = vmatpush3.msra.mxu1 %v2805_v4  ;;  %4579 = vmatprep.mubr.msk.f32.mxu1 %vm5171_vm1, %v5170_v37  ;;  %v4880_v21 = vpop.eup %4879 }
 0xfb9   :  { %4587 = vmatprep.subr.mxu1 %v5170_v37  ;;  %v2984_v24 = vmul.f32 %v4880_v21, %v4864_v55  ;;  %v3487_v32 = vpop.permute.xlu1 %3486  ;;  %4734 = vmatprep.subr.bf16.mxu0 %v4733_v46 }
 0xfba   :  { %4736 = vmatpush3.bf16.msra.mxu0 %v4733_v46 }
 0xfbb   :  { %4580 = vmatmul.mubr.msk.f32.vlgmr.msra.gmra.mrb[30].mxu1 %vm356_vm2, %v2803_v20  ;;  %4738 = vmatprep.subr.bf16.mxu0 %v4737_v36 }
 0xfbc   :  { %4588 = vmatpush3.msra.mxu1 %v2986_v5  ;;  %4589 = vmatprep.mubr.msk.f32.mxu1 %vm5171_vm1, %v5170_v37 }
 0xfbd   :  { %v3483_v25 = vpop.xlane.xlu0 %3482  ;;  %4597 = vmatprep.subr.mxu1 %v5170_v37 }
 0xfbe   :  { %4885 = vrcp.f32 %v3483_v25  ;;  %4740 = vmatpush3.bf16.msra.mxu0 %v4737_v36  ;;  %v4246_v25 = vld [vmem:[%s6070_s10 + $0x28] sm:$0xff]  ;;  %v4252_v36 = vld [vmem:[%s6072_s12 + $0x40] sm:$0xff] }
 0xfbf   :  { %4590 = vmatmul.mubr.msk.f32.vlgmr.msra.gmra.mrb[32].mxu1 %vm356_vm2, %v2984_v24 }
 0xfc0   :  { %v4882_v26 = vpop.eup %4881  ;;  %4598 = vmatpush3.msra.mxu1 %v3153_v13  ;;  %4599 = vmatprep.mubr.msk.f32.mxu1 %vm5171_vm1, %v5170_v37 }
 0xfc1   :  { %v3151_v29 = vmul.f32 %v4882_v26, %v4868_v63  ;;  %v3320_v30 = vpop.permute.xlu0 %3319  ;;  %4607 = vmatprep.subr.mxu1 %v5170_v37  ;;  %v4884_v18 = vpop.eup %4883 }
 0xfc2   :  { %v3318_v31 = vmul.f32 %v4884_v18, %v5903_v58 }
 0xfc3   :  { %4600 = vmatmul.mubr.msk.f32.vlgmr.msra.gmra.mrb[34].mxu1 %vm356_vm2, %v3151_v29  ;;  %v4247_v29 = vld [vmem:[%s6070_s10 + $0x30] sm:$0xff] }
 0xfc4   :  { %4608 = vmatpush3.msra.mxu1 %v3320_v30  ;;  %4609 = vmatprep.mubr.msk.f32.mxu1 %vm5171_vm1, %v5170_v37  ;;  %v4248_v30 = vld [vmem:[%s6070_s10 + $0x38] sm:$0xff] }
 0xfc5   :  { %4617 = vmatprep.subr.mxu1 %v5170_v37  ;;  %v4745_v18 = vpack.c.bf16 %v4248_v30, %v4247_v29 }
 0xfc7   :  { %4610 = vmatmul.mubr.msk.f32.vlgmr.msra.gmra.mrb[36].mxu1 %vm356_vm2, %v3318_v31 }
 0xfc8   :  { %v4886_v42 = vpop.eup %4885  ;;  %4618 = vmatpush3.msra.mxu1 %v3487_v32  ;;  %4619 = vmatprep.mubr.msk.f32.mxu1 %vm5171_vm1, %v5170_v37 }
 0xfc9   :  { %v3485_v33 = vmul.f32 %v4886_v42, %v5908_v1 }
 0xfcb   :  { %4620 = vmatmul.mubr.msk.f32.vlgmr.msra.gmra.mrb[38].mxu1 %vm356_vm2, %v3485_v33 }
0x1055   :  { %v2375_v35 = vpop.f32.mrb[24].mxu1 }
0x1056   :  { %v4551_v38 = vpop.f32.mrb[25].mxu1 }
0x1059   :  { %v2542_v39 = vpop.f32.mrb[26].mxu1 }
0x105a   :  { %2881 = vrot.lane.b32.xlu0 %v2542_v39, %s5164_s19  ;;  %v4561_v40 = vpop.f32.mrb[27].mxu1 }
0x105b   :  { %v4243_v40 = vld [vmem:[#allocation11 + $0x1] ss:$0 sm:$0xff] }
0x108a   :  { %v2709_v45 = vpop.f32.mrb[28].mxu1 }
0x108b   :  { %2885 = vrot.lane.b32.xlu1 %v2709_v45, %s5157_s24  ;;  %v4571_v47 = vpop.f32.mrb[29].mxu1 }
0x108e   :  { %v2876_v50 = vpop.f32.mrb[30].mxu1 }
0x108f   :  { %2889 = vrot.lane.b32.xlu1 %v2876_v50, %s6097_s30  ;;  %v4581_v34 = vpop.f32.mrb[31].mxu1 }
0x1090   :  { %v4253_v34 = vld [vmem:[%s6072_s12 + $0x48] sm:$0xff] }
0x1092   :  { %v3057_v51 = vpop.f32.mrb[32].mxu1 }
0x1093   :  { %v4591_v52 = vpop.f32.mrb[33].mxu1 }
0x1094   :  { %v4254_v52 = vld [vmem:[%s6072_s12 + $0x50] sm:$0xff] }
0x1096   :  { %v3224_v53 = vpop.f32.mrb[34].mxu1 }
0x1097   :  { %3563 = vrot.lane.b32.xlu0 %v3224_v53, %s5164_s19  ;;  %v4601_v54 = vpop.f32.mrb[35].mxu1  ;;  %v4255_v53 = vld [vmem:[%s6072_s12 + $0x58] sm:$0xff] }
0x1098   :  { %v4753_v54 = vpack.c.bf16 %v4255_v53, %v4254_v52 }
0x109a   :  { %v3391_v27 = vpop.f32.mrb[36].mxu1 }
0x109b   :  { %3567 = vrot.lane.b32.xlu0 %v3391_v27, %s5157_s24  ;;  %v4611_v55 = vpop.f32.mrb[37].mxu1  ;;  %v4256_v27 = vld [vmem:[%s6072_s12 + $0x60] sm:$0xff] }
0x109c   :  { %v4257_v55 = vld [vmem:[%s6072_s12 + $0x68] sm:$0xff] }
0x109e   :  { %v3558_v56 = vpop.f32.mrb[38].mxu1 }
0x109f   :  { %3571 = vrot.lane.b32.xlu1 %v3558_v56, %s6097_s30  ;;  %v4621_v57 = vpop.f32.mrb[39].mxu1  ;;  %v4757_v56 = vpack.c.bf16 %v4257_v55, %v4256_v27 }
0x10a0   :  { %v4258_v57 = vld [vmem:[%s6072_s12 + $0x70] sm:$0xff] }
0x10cc   :  { %v2882_v58 = vpop.permute.xlu0 %2881 }
0x10cd   :  { %v2892_v60 = vsel %vm356_vm2, %v2375_v35, %v2882_v58  ;;  %v4259_v58 = vld [vmem:[%s6072_s12 + $0x78] sm:$0xff] }
0x10fd   :  { %v2886_v59 = vpop.permute.xlu1 %2885 }
0x10fe   :  { %v2893_v62 = vsel %vm1038_vm3, %v2892_v60, %v2886_v59  ;;  %v4761_v59 = vpack.c.bf16 %v4259_v58, %v4258_v57  ;;  %v4249_v60 = vld [vmem:[#allocation14 + $0x1] ss:$0 sm:$0xff]  ;;  %v4264_v57 = vld [vmem:[#allocation19 + $0x1] ss:$0 sm:$0xff] }
0x1101   :  { %v2890_v63 = vpop.permute.xlu1 %2889 }
0x1102   :  { %v2894_v0 = vsel %vm1040_vm4, %v2893_v62, %v2890_v63 }
0x1103   :  { %4630 = vmatprep.mubr.msk.f32.mxu0 %vm216_vm0, %v2894_v0 }
0x1109   :  { %v3564_v1 = vpop.permute.xlu0 %3563 }
0x110a   :  { %v3574_v3 = vsel %vm356_vm2, %v3057_v51, %v3564_v1  ;;  %v4749_v51 = vpack.c.bf16 %v4253_v34, %v4252_v36 }
0x110c   :  { %4750 = vmatprep.subr.bf16.mxu0 %v4749_v51 }
0x110d   :  { %v3568_v2 = vpop.permute.xlu0 %3567 }
0x110e   :  { %v3575_v4 = vsel %vm1038_vm3, %v3574_v3, %v3568_v2 }
0x1111   :  { %v3572_v5 = vpop.permute.xlu1 %3571 }
0x1112   :  { %v3576_v6 = vsel %vm1040_vm4, %v3575_v4, %v3572_v5 }
0x1113   :  { %4631 = vmatmul.mubr.msk.f32.vlgmr.msra.gmra.mrb[34].mxu0 %vm216_vm0, %v3576_v6 }
0x1114   :  { %4752 = vmatpush3.bf16.msra.mxu0 %v4749_v51 }
0x1115   :  { %4754 = vmatprep.subr.bf16.mxu0 %v4753_v54 }
0x1118   :  { %4756 = vmatpush3.bf16.msra.mxu0 %v4753_v54  ;;  %v4263_v54 = vld [vmem:[#allocation17 + $0x1] ss:$0 sm:$0xff] }
0x1119   :  { %4758 = vmatprep.subr.bf16.mxu0 %v4757_v56 }
0x111c   :  { %4760 = vmatpush3.bf16.msra.mxu0 %v4757_v56 }
0x111d   :  { %4762 = vmatprep.subr.bf16.mxu0 %v4761_v59 }
0x1120   :  { %4764 = vmatpush3.bf16.msra.mxu0 %v4761_v59 }
0x11e6   :  { %v4632_v8 = vpop.f32.mrb[34].mxu0 }
0x11e7   :  { %v3668_v9 = vadd.f32 %v4632_v8, %v4240_v7  ;;  %v3662_v10 = vpop.f32.mrb[35].mxu0 }
0x11e8   :  { %v3663_v41 = vadd.f32 %v4240_v7, %v3662_v10 }
0x11e9   :  { %v3672_v12 = vadd.f32 %v3668_v9, %v5780_v23 }
0x11ea   :  { %v3671_v28 = vadd.f32 %v3663_v41, %v5778_v22  ;;  %v4245_v22 = vld [vmem:[%s6070_s10 + $0x20] sm:$0xff] }
0x11eb   :  { %v3680_v11 = vsel %vm216_vm0, %v3672_v12, 0.0  ;;  %v4741_v26 = vpack.c.bf16 %v4246_v25, %v4245_v22 }
0x11ec   :  { %3681 = vadd.xlane.f32.xlu1 %v3680_v11  ;;  %v3677_v61 = vsel %vm216_vm0, %v3671_v28, 0.0 }
0x11ed   :  { %3678 = vadd.xlane.f32.xlu0 %v3677_v61  ;;  %4742 = vmatprep.subr.bf16.mxu1 %v4741_v26 }
0x11ee   :  { %4744 = vmatpush3.bf16.msra.mxu1 %v4741_v26 }
0x11ef   :  { %4746 = vmatprep.subr.bf16.mxu1 %v4745_v18 }
0x11f2   :  { %4748 = vmatpush3.bf16.msra.mxu1 %v4745_v18 }
0x1279   :  { %v3682_v13 = vpop.xlane.xlu1 %3681 }
0x127a   :  { %v3684_v14 = vmul.f32 0.03125, %v3682_v13  ;;  %v3679_v15 = vpop.xlane.xlu0 %3678 }
0x127b   :  { %v3683_v16 = vmul.f32 0.03125, %v3679_v15 }
0x127c   :  { %v3686_v17 = vsub.f32 %v3672_v12, %v3684_v14 }
0x127d   :  { %v3685_v19 = vsub.f32 %v3671_v28, %v3683_v16 }
0x127e   :  { %v3688_v24 = vmul.f32 %v3686_v17, %v3686_v17 }
0x127f   :  { %v3687_v20 = vmul.f32 %v3685_v19, %v3685_v19 }
0x1280   :  { %v3692_v23 = vsel %vm216_vm0, %v3688_v24, 0.0 }
0x1281   :  { %v3689_v21 = vsel %vm216_vm0, %v3687_v20, 0.0 }
0x1282   :  { %3690 = vadd.xlane.f32.xlu0 %v3689_v21 }
0x1286   :  { %3693 = vadd.xlane.f32.xlu0 %v3692_v23 }
0x130f   :  { %v3691_v31 = vpop.xlane.xlu0 %3690 }
0x1310   :  { %v3695_v32 = vmul.f32 0.03125, %v3691_v31 }
0x1312   :  { %v3697_v42 = vadd.f32 1e-12, %v3695_v32 }
0x1313   :  { %v3694_v33 = vpop.xlane.xlu0 %3693 }
0x1314   :  { %4887 = vrsqrt.f32 %v3697_v42  ;;  %v3696_v35 = vmul.f32 0.03125, %v3694_v33 }
0x1316   :  { %v3698_v38 = vadd.f32 1e-12, %v3696_v35 }
0x1318   :  { %4889 = vrsqrt.f32 %v3698_v38 }
0x131e   :  { %v4888_v39 = vpop.eup %4887 }
0x131f   :  { %v3701_v43 = vmul.f32 %v4888_v39, %v3685_v19 }
0x1321   :  { %v3709_v45 = vmul.f32 %v4243_v40, %v3701_v43  ;;  %v3983_v43 = vld [vmem:[%s6076_s16 + $0x8] sm:$0xff] }
0x1322   :  { %v4890_v46 = vpop.eup %4889 }
0x1323   :  { %v3702_v47 = vmul.f32 %v4890_v46, %v3686_v17  ;;  %v3717_v48 = vadd.f32 %v4244_v44, %v3709_v45  ;;  %v4260_v17 = vld [vmem:[#allocation16 + $0x1] ss:$0 sm:$0xff]  ;;  %v3984_v45 = vld [vmem:[%s6076_s16 + $0x10] sm:$0xff]  ;;  %v3985_v46 = vld [vmem:[%s6076_s16 + $0x18] sm:$0xff] }
0x1325   :  { %v3710_v49 = vmul.f32 %v4243_v40, %v3702_v47  ;;  %4641 = vmatprep.mubr.msk.f32.mxu1 %vm216_vm0, %v3717_v48  ;;  %v3982_v40 = vld [vmem:[%s6076_s16] sm:$0xff]  ;;  %v5184_v47 = vmov 0.0|0.0  }
0x1326   :  { %4765 = vmatprep.subr.bf16.mxu1 %v5184_v47 }
0x1327   :  { %v3718_v50 = vadd.f32 %v4244_v44, %v3710_v49  ;;  %v4766_v44 = vpack.c.bf16 %v3983_v43, %v3982_v40 }
0x1329   :  { %4642 = vmatmul.mubr.msk.f32.vlgmr.msra.gmra.mrb[40].mxu1 %vm216_vm0, %v3718_v50 }
0x132a   :  { %4671 = vmatprep.mubr.msk.f32.mxu1 %vm5171_vm1, %v5170_v37  ;;  %4767 = vmatpush3.bf16.msra.mxu1 %v4766_v44 }
0x132b   :  { %4768 = vmatprep.subr.bf16.mxu1 %v5184_v47 }
0x13fc   :  { %v4643_v62 = vpop.f32.mrb[40].mxu1 }
0x13fd   :  { %v3810_v63 = vadd.f32 %v4643_v62, %v4249_v60  ;;  %v3804_v0 = vpop.f32.mrb[41].mxu1 }
0x13fe   :  { %v3805_v1 = vadd.f32 %v4249_v60, %v3804_v0 }
0x13ff   :  { %v3816_v2 = vmul.f32 0.044715, %v3810_v63  ;;  %v3814_v14 = vmul.f32 0.5, %v3810_v63 }
0x1400   :  { %v3815_v3 = vmul.f32 0.044715, %v3805_v1  ;;  %v3813_v61 = vmul.f32 0.5, %v3805_v1 }
0x1401   :  { %v3818_v4 = vmul.f32 %v3816_v2, %v3810_v63  ;;  %v4068_v2 = vld [vmem:[%s6078_s18 + $0x8] sm:$0xff] }
0x1402   :  { %v3817_v5 = vmul.f32 %v3815_v3, %v3805_v1  ;;  %v4069_v3 = vld [vmem:[%s6078_s18 + $0x10] sm:$0xff] }
0x1403   :  { %v3820_v6 = vmul.f32 %v3818_v4, %v3810_v63 }
0x1404   :  { %v3819_v7 = vmul.f32 %v3817_v5, %v3805_v1  ;;  %v4070_v5 = vld [vmem:[%s6078_s18 + $0x18] sm:$0xff] }
0x1405   :  { %v3822_v8 = vadd.f32 %v3820_v6, %v3810_v63  ;;  %v4775_v6 = vpack.c.bf16 %v4070_v5, %v4069_v3 }
0x1406   :  { %v3821_v9 = vadd.f32 %v3819_v7, %v3805_v1  ;;  %v4067_v1 = vld [vmem:[%s6078_s18] sm:$0xff] }
0x1407   :  { %v3824_v10 = vmul.f32 0.7978846, %v3822_v8  ;;  %v4772_v4 = vpack.c.bf16 %v4068_v2, %v4067_v1 }
0x1408   :  { %v3823_v41 = vmul.f32 0.7978846, %v3821_v9 }
0x1409   :  { %4891 = vtanh.f32 %v3824_v10 }
0x140a   :  { %4893 = vtanh.f32 %v3823_v41  ;;  %v4267_v41 = vld [vmem:[#allocation2] ss:$0 sm:$0xff] }
0x1413   :  { %v4892_v12 = vpop.eup %4891 }
0x1414   :  { %v4894_v28 = vpop.eup %4893  ;;  %v3828_v11 = vadd.f32 1.0, %v4892_v12 }
0x1415   :  { %v3827_v13 = vadd.f32 1.0, %v4894_v28 }
0x1416   :  { %v3830_v16 = vmul.f32 %v3828_v11, %v3814_v14 }
0x1417   :  { %v3829_v15 = vmul.f32 %v3827_v13, %v3813_v61 }
0x1419   :  { %4660 = vmatprep.mubr.msk.f32.mxu0 %vm1991_vm5, %v3829_v15 }
0x141a   :  { %4661 = vmatmul.mubr.msk.f32.vlgmr.msra.gmra.mrb[36].mxu0 %vm1991_vm5, %v3830_v16 }
0x14ed   :  { %v4662_v19 = vpop.f32.mrb[36].mxu0 }
0x14ee   :  { %v3926_v20 = vadd.f32 %v4662_v19, %v4260_v17  ;;  %v3920_v21 = vpop.f32.mrb[37].mxu0 }
0x14ef   :  { %v3921_v24 = vadd.f32 %v4260_v17, %v3920_v21 }
0x14f0   :  { %v3930_v23 = vadd.f32 %v3926_v20, %v3718_v50 }
0x14f1   :  { %v3929_v22 = vadd.f32 %v3921_v24, %v3717_v48  ;;  %v4769_v48 = vpack.c.bf16 %v3985_v46, %v3984_v45 }
0x14f2   :  { %v3938_v25 = vsel %vm216_vm0, %v3930_v23, 0.0 }
0x14f3   :  { %3939 = vadd.xlane.f32.xlu0 %v3938_v25  ;;  %v3935_v26 = vsel %vm216_vm0, %v3929_v22, 0.0  ;;  %4770 = vmatpush3.bf16.msra.mxu1 %v4769_v48 }
0x14f4   :  { %3936 = vadd.xlane.f32.xlu1 %v3935_v26  ;;  %4771 = vmatprep.subr.bf16.mxu1 %v5184_v47 }
0x1580   :  { %v3940_v29 = vpop.xlane.xlu0 %3939 }
0x1581   :  { %v3942_v30 = vmul.f32 0.03125, %v3940_v29  ;;  %v3937_v18 = vpop.xlane.xlu1 %3936 }
0x1582   :  { %v3941_v31 = vmul.f32 0.03125, %v3937_v18 }
0x1583   :  { %v3944_v32 = vsub.f32 %v3930_v23, %v3942_v30 }
0x1584   :  { %v3943_v42 = vsub.f32 %v3929_v22, %v3941_v31 }
0x1585   :  { %v3946_v33 = vmul.f32 %v3944_v32, %v3944_v32 }
0x1586   :  { %v3945_v35 = vmul.f32 %v3943_v42, %v3943_v42 }
0x1587   :  { %v3950_v38 = vsel %vm216_vm0, %v3946_v33, 0.0 }
0x1588   :  { %3951 = vadd.xlane.f32.xlu0 %v3950_v38  ;;  %v3947_v39 = vsel %vm216_vm0, %v3945_v35, 0.0 }
0x1589   :  { %3948 = vadd.xlane.f32.xlu1 %v3947_v39 }
0x1615   :  { %v3952_v49 = vpop.xlane.xlu0 %3951 }
0x1616   :  { %v3954_v50 = vmul.f32 0.03125, %v3952_v49  ;;  %v3949_v36 = vpop.xlane.xlu1 %3948 }
0x1617   :  { %v3953_v34 = vmul.f32 0.03125, %v3949_v36 }
0x1618   :  { %v3956_v51 = vadd.f32 1e-12, %v3954_v50 }
0x1619   :  { %v3955_v52 = vadd.f32 1e-12, %v3953_v34 }
0x161a   :  { %4895 = vrsqrt.f32 %v3956_v51 }
0x161b   :  { %4897 = vrsqrt.f32 %v3955_v52 }
0x1624   :  { %v4896_v53 = vpop.eup %4895 }
0x1625   :  { %v4898_v27 = vpop.eup %4897  ;;  %v3960_v55 = vmul.f32 %v4896_v53, %v3944_v32 }
0x1626   :  { %v3959_v56 = vmul.f32 %v4898_v27, %v3943_v42 }
0x1627   :  { %v3968_v58 = vmul.f32 %v4263_v54, %v3960_v55 }
0x1628   :  { %v3967_v59 = vmul.f32 %v4263_v54, %v3959_v56 }
0x1629   :  { %v3976_v60 = vadd.f32 %v4264_v57, %v3968_v58 }
0x162a   :  { %v3975_v62 = vadd.f32 %v4264_v57, %v3967_v59 }
0x162b   :  { %v3978_v63 = vrot.slane %v3976_v60, 7 }
0x162d   :  { %v3981_v0 = vsel %vm3980_vm6, %v3975_v62, %v3978_v63 }
0x162e   :  { %4672 = vmatmul.mubr.msk.f32.vlgmr.msra.gmra.mrb[42].mxu1 %vm216_vm0, %v3981_v0 }
0x162f   :  { %4682 = vmatprep.mubr.msk.f32.mxu1 %vm5171_vm1, %v5170_v37  ;;  %4773 = vmatpush3.bf16.msra.mxu1 %v4772_v4  ;;  %v4265_v37 = vld [vmem:[%s6077_s17] ss:$0 sm:$0xff] }
0x1630   :  { %4774 = vmatprep.subr.bf16.mxu1 %v5184_v47 }
0x1633   :  { %4776 = vmatpush3.bf16.msra.mxu1 %v4775_v6 }
0x1701   :  { %v4062_v7 = vpop.f32.mrb[42].mxu1 }
0x1702   :  { %v4063_v8 = vadd.f32 %v4265_v37, %v4062_v7  ;;  %v4673_v9 = vpop.f32.mrb[43].mxu1 }
0x1704   :  { %4899 = vtanh.f32 %v4063_v8 }
0x170e   :  { %v4900_v10 = vpop.eup %4899 }
0x170f   :  { %4683 = vmatmul.mubr.msk.f32.vlgmr.msra.gmra.mrb[44].mxu1 %vm216_vm0, %v4900_v10 }
0x17e2   :  { %v4147_v12 = vpop.f32.mrb[44].mxu1 }
0x17e3   :  { %v4148_v28 = vadd.f32 %v4267_v41, %v4147_v12  ;;  %v4684_v11 = vpop.f32.mrb[45].mxu1 }
0x17e5   :  { %4152 = vst.msk [vmem:[%s6080_s20] sm:$0x3] %vm4151_vm7, %v4148_v28 }
0x17e6   :  { %4157 = vsyncpa [#allocation4], 1 }
0x17e7   :  { %4158 = vsyncpa [#allocation6], 1 }
0x17e8   :  { %4159 = vsyncpa [#allocation9], 1 }
0x17e9   :  { %4160 = vsyncpa [#allocation12], 1 }
0x17ea   :  { %4161 = vsyncpa [#allocation15], 1 }
0x17eb   :  { %4162 = vsyncpa [#allocation18], 1 }

</bundles_post_ra>
